<compile_context>
chip_gen: v7x
topology: tpu7x:2x2x1
jax: 0.10.0
libtpu: 0.0.40
codegen_flags: <defaults>
</compile_context>

<pallas_src>
import functools

import jax
import jax.numpy as jnp
import numpy as np
from jax.experimental import pallas as pl
from jax.experimental.pallas import tpu as pltpu

# ---------------- small hyperparameters consistent with FlowSpecDecoder.__init__ ----------------
B = 2            # batch
IN_CH = 4        # in_channels
HIDDEN = 32      # hidden_channels
KSIZE = 3        # kernel_size (odd, as WN asserts); tap construction below assumes 3
DIL_RATE = 2     # dilation_rate
N_BLOCKS = 2     # n_blocks
N_LAYERS = 3     # n_layers
N_SPLIT = 4      # n_split
N_SQZ = 2        # n_sqz
T = 16           # time frames
P_DROPOUT = 0.0  # dropout is identity
SIGMOID_SCALE = False
GIN_CHANNELS = 0  # g=None path

assert KSIZE == 3

C_SQ = IN_CH * N_SQZ          # channels after squeeze
T_SQ = T // N_SQZ             # frames after squeeze
C2 = C_SQ // 2                # coupling split
H = HIDDEN
LANE = 128
T_PAD = max(LANE, ((T_SQ + LANE - 1) // LANE) * LANE)   # lane-dense padded time per sample


# ---------------- commons.squeeze / commons.unsqueeze (pure-JAX glue, just reshapes) --------------
def squeeze(x, x_mask, n_sqz):
    b, c, t = x.shape
    t = (t // n_sqz) * n_sqz
    x = x[:, :, :t]
    x_sqz = x.reshape(b, c, t // n_sqz, n_sqz)
    x_sqz = jnp.transpose(x_sqz, (0, 3, 1, 2)).reshape(b, c * n_sqz, t // n_sqz)
    x_mask_sq = x_mask[:, :, n_sqz - 1::n_sqz]
    return x_sqz * x_mask_sq, x_mask_sq


def unsqueeze(x, x_mask, n_sqz):
    b, c, t = x.shape
    x_unsqz = x.reshape(b, n_sqz, c // n_sqz, t)
    x_unsqz = jnp.transpose(x_unsqz, (0, 2, 3, 1)).reshape(b, c // n_sqz, t * n_sqz)
    x_mask_up = jnp.repeat(x_mask, n_sqz, axis=2)
    return x_unsqz * x_mask_up, x_mask_up


# ---------------- pltpu.roll capability probe (fall back to jnp.roll if semantics differ) ---------
_ROLL_OK = None


def _use_pltpu_roll():
    """Verify once on-device that pltpu.roll matches jnp.roll semantics for a static lane shift."""
    global _ROLL_OK
    if _ROLL_OK is None:
        def probe(x_ref, o_ref):
            o_ref[...] = pltpu.roll(x_ref[...], 3, axis=1)
        x = jnp.arange(8 * LANE, dtype=jnp.float32).reshape(8, LANE)
        try:
            y = pl.pallas_call(
                probe,
                out_shape=jax.ShapeDtypeStruct((8, LANE), jnp.float32),
                in_specs=[pl.BlockSpec(memory_space=pltpu.MemorySpace.VMEM)],
                out_specs=pl.BlockSpec(memory_space=pltpu.MemorySpace.VMEM),
            )(x)
            _ROLL_OK = bool(jnp.array_equal(y, jnp.roll(x, 3, axis=1)))
        except Exception:
            _ROLL_OK = False
    return _ROLL_OK


# ------------------------------------ the Pallas kernel ------------------------------------------
def _flow_kernel(x_ref, m_ref, tapm_ref,
                 wmix0_ref, wmix1_ref, bmix_ref,
                 st_w_ref, st_b_ref, in_w_ref, in_b_ref,
                 rs_w_ref, rs_b_ref, rs_wl_ref, rs_bl_ref,
                 end_w_ref, end_b_ref,
                 z_ref, ldrow_ref, *, dot_dtype, use_pltpu_roll):
    f32 = jnp.float32
    mask = m_ref[...]                                   # (1, T_PAD), sublane-broadcast in multiplies
    x0 = x_ref[:C2, :]                                  # (C2, T_PAD) state halves kept in vregs
    x1 = x_ref[C2:, :]
    ld_row = jnp.zeros((1, T_PAD), f32)

    def wn_dot(w_ref_slice, v):
        # WN matmuls: bf16 (or f32) operands, f32 accumulation.
        return jnp.dot(w_ref_slice, v.astype(dot_dtype), preferred_element_type=f32)

    def lane_roll(v, shift):
        s = shift % T_PAD                               # non-negative static shift
        if use_pltpu_roll:
            return pltpu.roll(v, s, axis=1)             # XLU lane rotation
        return jnp.roll(v, s, axis=1)

    # TODO(synk): for real n_blocks (12) move this loop onto an "arbitrary" grid axis and the
    #             layer loop into lax.fori_loop with stacked weights indexed dynamically.
    for blk in range(N_BLOCKS):
        # ---------------- fused ActNorm + InvConvNear: y = (W' @ x + b') * mask ----------------
        y = (jnp.dot(wmix0_ref[blk], x0, preferred_element_type=f32)
             + jnp.dot(wmix1_ref[blk], x1, preferred_element_type=f32)
             + bmix_ref[blk]) * mask                    # (C_SQ, T_PAD)
        x0 = y[:C2, :]
        x1 = y[C2:, :]

        # ---------------- CouplingBlock (forward): start 1x1 -> WN -> end 1x1 ----------------
        h = (wn_dot(st_w_ref[blk], x0) + st_b_ref[blk]) * mask           # (H, T_PAD), f32
        wn_out = jnp.zeros((H, T_PAD), f32)
        for i in range(N_LAYERS):
            dil = DIL_RATE ** i
            # dilated zero-padded conv taps via lane rotations + (1, T_PAD) validity masks
            left = lane_roll(h, dil) * tapm_ref[i, 0]                    # h[:, t - dil]
            right = lane_roll(h, T_PAD - dil) * tapm_ref[i, 1]           # h[:, t + dil]
            taps = jnp.concatenate([left, h, right], axis=0)             # (KSIZE*H, T_PAD)
            # fused tap matmul: one K=KSIZE*H contraction instead of KSIZE separate dots
            x_in = wn_dot(in_w_ref[blk, i], taps) + in_b_ref[blk, i]     # (2H, T_PAD)
            # fused_add_tanh_sigmoid_multiply (g=None -> g_l = 0); dropout p=0 is identity
            acts = jnp.tanh(x_in[:H, :]) * jax.nn.sigmoid(x_in[H:, :])
            if i < N_LAYERS - 1:
                rs = wn_dot(rs_w_ref[blk, i], acts) + rs_b_ref[blk, i]   # (2H, T_PAD)
                h = (h + rs[:H, :]) * mask
                wn_out = wn_out + rs[H:, :]
            else:
                # last layer: only the first H output rows are ever used -> halved matmul
                wn_out = wn_out + wn_dot(rs_wl_ref[blk], acts) + rs_bl_ref[blk]
        wn_out = wn_out * mask
        out = (jnp.dot(end_w_ref[blk], wn_out, preferred_element_type=f32)
               + end_b_ref[blk])                                          # (C_SQ, T_PAD), f32
        m_ = out[:C2, :]
        logs_c = out[C2:, :]
        # sigmoid_scale == False
        x1 = (m_ + jnp.exp(logs_c) * x1) * mask
        # activation-dependent coupling logdet, kept lane-dense (final lane sum in the wrapper)
        ld_row = ld_row + jnp.sum(logs_c * mask, axis=0, keepdims=True)

    # single full (sublane-aligned) store of the state; output HBM buffer aliases the input
    z_ref[...] = jnp.concatenate([x0, x1], axis=0)
    ldrow_ref[...] = ld_row


# ---------------- parameter-only precomputation (wrapper glue) ------------------------------------
def _invconv_dense(inv_w):
    """Fold the InvConvNear gather permutation, grouped (n_split x n_split) mix and scatter
    permutation into one dense (C_SQ, C_SQ) channel-mixing matrix per block."""
    cg = C_SQ // N_SPLIT
    half = N_SPLIT // 2
    ch = np.arange(C_SQ)
    a = ch // (cg * half)
    q = (ch % (cg * half)) // half
    r = ch % half
    o = a * half + r                                     # row/col of W for each channel
    sel = jnp.asarray((q[:, None] == q[None, :]).astype(np.float32))
    return inv_w[:, o[:, None], o[None, :]] * sel[None]  # (N_BLOCKS, C_SQ, C_SQ)


def _resident(a):
    """Full-array block with a constant index map: DMA'd once, stays resident across batch tiles."""
    nd = a.ndim
    return pl.BlockSpec(tuple(a.shape), lambda b, _nd=nd: (0,) * _nd)


# ------------------------------------ wrapper -----------------------------------------------------
def flow_spec_decoder_forward(x, x_mask, p, use_bf16_dot=True):
    # the ActNorm (+) InvConv fold below relies on the mask being binary
    if not isinstance(x_mask, jax.core.Tracer):
        assert bool(jnp.all((x_mask == 0.0) | (x_mask == 1.0))), "x_mask must be {0,1}"

    x_sq, m_sq = squeeze(x, x_mask, N_SQZ)               # (B, C_SQ, T_SQ), (B, 1, T_SQ)
    x_len = jnp.sum(m_sq, axis=(1, 2))                   # (B,) valid squeezed frames

    # lane-dense padding of the time axis to a multiple of 128
    pad = T_PAD - T_SQ
    x_p = jnp.pad(x_sq, ((0, 0), (0, 0), (0, pad)))
    m_p = jnp.pad(m_sq, ((0, 0), (0, 0), (0, pad)))

    # tap-validity masks (reproduce the dilated conv's zero padding), (N_LAYERS, 2, 1, T_PAD)
    t_idx = np.arange(T_PAD)
    tap_masks = np.stack([
        np.stack([(t_idx >= DIL_RATE ** i).astype(np.float32),
                  (t_idx < T_SQ - DIL_RATE ** i).astype(np.float32)])
        for i in range(N_LAYERS)]).reshape(N_LAYERS, 2, 1, T_PAD)
    tap_masks = jnp.asarray(tap_masks)

    # ---- parameter-only precompute (independent of activations) ----
    w_full = _invconv_dense(p['inv_w'])                               # (NB, C, C)
    w_fused = w_full * jnp.transpose(jnp.exp(p['an_logs']), (0, 2, 1))  # fold ActNorm scale
    b_fused = jnp.einsum('bij,bjk->bik', w_full, p['an_bias'])          # fold ActNorm bias
    wmix0, wmix1 = w_fused[:, :, :C2], w_fused[:, :, C2:]               # split-column dots
    # ActNorm + InvConv logdet (parameter-only) scaled by per-batch length, done in the wrapper
    ld_base = jnp.sum(jnp.sum(p['an_logs'], axis=(1, 2))
                      + p['inv_ld'][:, 0, 0] * (C_SQ / N_SPLIT)) * x_len  # (B,)

    dot_dtype = jnp.bfloat16 if use_bf16_dot else jnp.float32
    st_w = p['st_w'].astype(dot_dtype)
    in_w_fused = jnp.transpose(p['in_w'], (0, 1, 3, 2, 4)).reshape(
        N_BLOCKS, N_LAYERS, 2 * H, KSIZE * H).astype(dot_dtype)        # columns [W_0 | W_1 | W_2]
    in_b = p['in_b']
    rs_w = p['rs_w'][:, :N_LAYERS - 1].astype(dot_dtype)
    rs_b = p['rs_b'][:, :N_LAYERS - 1]
    rs_wl = p['rs_w'][:, N_LAYERS - 1, :H, :].astype(dot_dtype)        # only rows used
    rs_bl = p['rs_b'][:, N_LAYERS - 1, :H, :]

    kernel = functools.partial(_flow_kernel, dot_dtype=dot_dtype,
                               use_pltpu_roll=_use_pltpu_roll())

    x_spec = pl.BlockSpec((None, C_SQ, T_PAD), lambda b: (b, 0, 0))
    m_spec = pl.BlockSpec((None, 1, T_PAD), lambda b: (b, 0, 0))
    z_spec = pl.BlockSpec((None, C_SQ, T_PAD), lambda b: (b, 0, 0))
    ld_spec = pl.BlockSpec((None, 1, T_PAD), lambda b: (b, 0, 0))

    operands = (x_p, m_p, tap_masks, wmix0, wmix1, b_fused,
                st_w, p['st_b'], in_w_fused, in_b,
                rs_w, rs_b, rs_wl, rs_bl, p['end_w'], p['end_b'])
    in_specs = [x_spec, m_spec] + [_resident(a) for a in operands[2:]]

    z_p, ld_rows = pl.pallas_call(
        kernel,
        grid=(B,),
        in_specs=in_specs,
        out_specs=(z_spec, ld_spec),
        out_shape=(jax.ShapeDtypeStruct((B, C_SQ, T_PAD), jnp.float32),
                   jax.ShapeDtypeStruct((B, 1, T_PAD), jnp.float32)),
        input_output_aliases={0: 0},                     # output state aliases the padded input
        compiler_params=pltpu.CompilerParams(dimension_semantics=("parallel",)),
    )(*operands)

    logdet = ld_base + jnp.sum(ld_rows, axis=(1, 2))
    z_sq = z_p[:, :, :T_SQ]
    z, _ = unsqueeze(z_sq, m_sq, N_SQZ)
    return z, logdet


# ---------------- deterministic synthetic parameters (shapes from module __init__) ---------------
def init_params(key):
    keys = jax.random.split(key, 12)
    p = {}
    # ActNorm: logs, bias of shape (channels, 1) per block (assumed DDI-initialized)
    p['an_logs'] = 0.1 * jax.random.normal(keys[0], (N_BLOCKS, C_SQ, 1), jnp.float32)
    p['an_bias'] = 0.1 * jax.random.normal(keys[1], (N_BLOCKS, C_SQ, 1), jnp.float32)
    # InvConvNear: orthogonal (n_split, n_split) weight with det > 0 (flip col 0 like torch)
    ws = []
    for bi in range(N_BLOCKS):
        w = jnp.linalg.qr(
            jax.random.normal(jax.random.fold_in(keys[2], bi), (N_SPLIT, N_SPLIT), jnp.float32))[0]
        w = w.at[:, 0].set(w[:, 0] * jnp.sign(jnp.linalg.det(w)))
        ws.append(w)
    p['inv_w'] = jnp.stack(ws)
    p['inv_ld'] = jnp.stack([jnp.linalg.slogdet(w)[1] for w in ws]).reshape(
        N_BLOCKS, 1, 1).astype(jnp.float32)
    # CouplingBlock: start (H, C2) 1x1 conv; WN in/res_skip convs; end (C_SQ, H) 1x1 conv.
    # (weight_norm is a reparameterization; synthetic weights make it a plain conv.)
    p['st_w'] = (1.0 / (C2 ** 0.5)) * jax.random.normal(keys[3], (N_BLOCKS, H, C2), jnp.float32)
    p['st_b'] = 0.1 * jax.random.normal(keys[4], (N_BLOCKS, H, 1), jnp.float32)
    p['in_w'] = 0.05 * jax.random.normal(keys[5], (N_BLOCKS, N_LAYERS, KSIZE, 2 * H, H), jnp.float32)
    p['in_b'] = 0.05 * jax.random.normal(keys[6], (N_BLOCKS, N_LAYERS, 2 * H, 1), jnp.float32)
    # last WN layer only has H output channels; rows [H:] of its (2H, ...) slot are unused
    p['rs_w'] = 0.05 * jax.random.normal(keys[7], (N_BLOCKS, N_LAYERS, 2 * H, H), jnp.float32)
    p['rs_b'] = 0.05 * jax.random.normal(keys[8], (N_BLOCKS, N_LAYERS, 2 * H, 1), jnp.float32)
    p['end_w'] = 0.05 * jax.random.normal(keys[9], (N_BLOCKS, C_SQ, H), jnp.float32)
    p['end_b'] = 0.05 * jax.random.normal(keys[10], (N_BLOCKS, C_SQ, 1), jnp.float32)
    return p


# ---------------- pure-JAX reference (mirrors the PyTorch forward) for a correctness check -------
def _reference_forward(x, x_mask, p):
    xs, ms = squeeze(x, x_mask, N_SQZ)
    b = xs.shape[0]
    x_len = jnp.sum(ms, axis=(1, 2))
    h = xs
    ld = jnp.zeros((b,), jnp.float32)
    cg = C_SQ // N_SPLIT
    half = N_SPLIT // 2
    for blk in range(N_BLOCKS):
        # ActNorm
        h = (p['an_bias'][blk][None] + jnp.exp(p['an_logs'][blk])[None] * h) * ms
        ld = ld + jnp.sum(p['an_logs'][blk]) * x_len
        # InvConvNear
        xr = h.reshape(b, 2, cg, half, T_SQ).transpose(0, 1, 3, 2, 4).reshape(b, N_SPLIT, cg, T_SQ)
        z4 = jnp.einsum('os,bsgt->bogt', p['inv_w'][blk], xr)
        h = z4.reshape(b, 2, half, cg, T_SQ).transpose(0, 1, 3, 2, 4).reshape(b, C_SQ, T_SQ) * ms
        ld = ld + p['inv_ld'][blk, 0, 0] * (C_SQ / N_SPLIT) * x_len
        # CouplingBlock
        x0, x1 = h[:, :C2], h[:, C2:]
        hh = (jnp.einsum('hc,bct->bht', p['st_w'][blk], x0) + p['st_b'][blk][None]) * ms
        wn_out = jnp.zeros_like(hh)
        for i in range(N_LAYERS):
            dil = DIL_RATE ** i
            pad = dil * (KSIZE - 1) // 2
            hp = jnp.pad(hh, ((0, 0), (0, 0), (pad, pad)))
            conv = p['in_b'][blk, i][None]
            for j in range(KSIZE):
                conv = conv + jnp.einsum('oh,bht->bot', p['in_w'][blk, i, j],
                                         hp[:, :, j * dil:j * dil + T_SQ])
            acts = jnp.tanh(conv[:, :H]) * jax.nn.sigmoid(conv[:, H:])
            rs = jnp.einsum('oh,bht->bot', p['rs_w'][blk, i], acts) + p['rs_b'][blk, i][None]
            if i < N_LAYERS - 1:
                hh = (hh + rs[:, :H]) * ms
                wn_out = wn_out + rs[:, H:]
            else:
                wn_out = wn_out + rs[:, :H]
        wn_out = wn_out * ms
        out = jnp.einsum('ch,bht->bct', p['end_w'][blk], wn_out) + p['end_b'][blk][None]
        m_, logs_c = out[:, :C2], out[:, C2:]
        z1 = (m_ + jnp.exp(logs_c) * x1) * ms
        ld = ld + jnp.sum(logs_c * ms, axis=(1, 2))
        h = jnp.concatenate([x0, z1], axis=1)
    zout, _ = unsqueeze(h, ms, N_SQZ)
    return zout, ld


if __name__ == "__main__":
    key = jax.random.PRNGKey(0)
    kx, kp = jax.random.split(key)
    x = jax.random.normal(kx, (B, IN_CH, T), jnp.float32)          # (B, C, T), NCT like torch
    lengths = jnp.array([T, T - 4], jnp.int32)
    x_mask = (jnp.arange(T)[None, None, :] < lengths[:, None, None]).astype(jnp.float32)  # (B,1,T)
    params = init_params(kp)

    z_ref, ld_ref = _reference_forward(x, x_mask, params)

    # f32-operand baseline first (per review: validate before enabling bf16 dot operands)
    z32, ld32 = flow_spec_decoder_forward(x, x_mask, params, use_bf16_dot=False)
    jax.block_until_ready((z32, ld32))
    assert z32.shape == (B, IN_CH, T) and ld32.shape == (B,)
    assert jnp.allclose(z32, z_ref, rtol=1e-2, atol=1e-2), "z mismatch vs reference (f32 dots)"
    assert jnp.allclose(ld32, ld_ref, rtol=1e-2, atol=1e-2), "logdet mismatch vs reference (f32 dots)"

    # default performance configuration: bf16 WN matmul operands, f32 accumulation/elementwise
    z, logdet = flow_spec_decoder_forward(x, x_mask, params, use_bf16_dot=True)
    jax.block_until_ready((z, logdet))
    assert z.shape == (B, IN_CH, T) and logdet.shape == (B,)
    assert jnp.allclose(z, z_ref, rtol=2e-2, atol=2e-2), "z mismatch vs reference (bf16 dots)"
    assert jnp.allclose(logdet, ld_ref, rtol=2e-2, atol=2e-2), "logdet mismatch vs reference (bf16 dots)"

    print("KERNEL_OK")
</pallas_src>

<mosaic_0001>
module attributes {stable_mosaic.version = 11 : i64} {
  func.func @probe(%arg0: memref<8x128xf32, #tpu.memory_space<vmem>>, %arg1: memref<8x128xf32, #tpu.memory_space<vmem>>) attributes {dimension_semantics = [], scalar_prefetch = 0 : i64, scratch_operands = 0 : i64, tpu.core_type = #tpu.core_type<tc>} {
    %c0 = arith.constant 0 : index
    %c0_0 = arith.constant 0 : index
    %0 = vector.load %arg0[%c0, %c0_0] : memref<8x128xf32, #tpu.memory_space<vmem>>, vector<8x128xf32>
    %c3_i32 = arith.constant 3 : i32
    %1 = tpu.dynamic_rotate %0 by %c3_i32 dim 1 : vector<8x128xf32>, i32 -> vector<8x128xf32>
    %c0_1 = arith.constant 0 : index
    %c0_2 = arith.constant 0 : index
    %2 = vector.load %arg1[%c0_1, %c0_2] : memref<8x128xf32, #tpu.memory_space<vmem>>, vector<8x128xf32>
    tpu.vector_store %arg1[%c0_1, %c0_2], %1 {strides = array<i32>} : memref<8x128xf32, #tpu.memory_space<vmem>>, vector<8x128xf32>,
    return
  }
}

module attributes {stable_mosaic.version = 11 : i64} {
  func.func @_flow_kernel(%arg0: i32, %arg1: memref<1x8x128xf32, #tpu.memory_space<vmem>>, %arg2: memref<1x1x128xf32, #tpu.memory_space<vmem>>, %arg3: memref<3x2x1x128xf32, #tpu.memory_space<vmem>>, %arg4: memref<2x8x4xf32, #tpu.memory_space<vmem>>, %arg5: memref<2x8x4xf32, #tpu.memory_space<vmem>>, %arg6: memref<2x8x1xf32, #tpu.memory_space<vmem>>, %arg7: memref<2x32x4xf32, #tpu.memory_space<vmem>>, %arg8: memref<2x32x1xf32, #tpu.memory_space<vmem>>, %arg9: memref<2x3x64x96xf32, #tpu.memory_space<vmem>>, %arg10: memref<2x3x64x1xf32, #tpu.memory_space<vmem>>, %arg11: memref<2x2x64x32xf32, #tpu.memory_space<vmem>>, %arg12: memref<2x2x64x1xf32, #tpu.memory_space<vmem>>, %arg13: memref<2x32x32xf32, #tpu.memory_space<vmem>>, %arg14: memref<2x32x1xf32, #tpu.memory_space<vmem>>, %arg15: memref<2x8x32xf32, #tpu.memory_space<vmem>>, %arg16: memref<2x8x1xf32, #tpu.memory_space<vmem>>, %arg17: memref<1x8x128xf32, #tpu.memory_space<vmem>>, %arg18: memref<1x1x128xf32, #tpu.memory_space<vmem>>) attributes {dimension_semantics = [#tpu.dimension_semantics<parallel>], iteration_bounds = array<i64: 2>, scalar_prefetch = 0 : i64, scratch_operands = 0 : i64, tpu.core_type = #tpu.core_type<tc>, window_params = [{transform_indices = @transform_0, window_bounds = array<i64: 1, 8, 128>}, {transform_indices = @transform_1, window_bounds = array<i64: 1, 1, 128>}, {pipeline_mode = #tpu.pipeline_mode<synchronous>, transform_indices = @transform_2, window_bounds = array<i64: 3, 2, 1, 128>}, {pipeline_mode = #tpu.pipeline_mode<synchronous>, transform_indices = @transform_3, window_bounds = array<i64: 2, 8, 4>}, {pipeline_mode = #tpu.pipeline_mode<synchronous>, transform_indices = @transform_4, window_bounds = array<i64: 2, 8, 4>}, {pipeline_mode = #tpu.pipeline_mode<synchronous>, transform_indices = @transform_5, window_bounds = array<i64: 2, 8, 1>}, {pipeline_mode = #tpu.pipeline_mode<synchronous>, transform_indices = @transform_6, window_bounds = array<i64: 2, 32, 4>}, {pipeline_mode = #tpu.pipeline_mode<synchronous>, transform_indices = @transform_7, window_bounds = array<i64: 2, 32, 1>}, {pipeline_mode = #tpu.pipeline_mode<synchronous>, transform_indices = @transform_8, window_bounds = array<i64: 2, 3, 64, 96>}, {pipeline_mode = #tpu.pipeline_mode<synchronous>, transform_indices = @transform_9, window_bounds = array<i64: 2, 3, 64, 1>}, {pipeline_mode = #tpu.pipeline_mode<synchronous>, transform_indices = @transform_10, window_bounds = array<i64: 2, 2, 64, 32>}, {pipeline_mode = #tpu.pipeline_mode<synchronous>, transform_indices = @transform_11, window_bounds = array<i64: 2, 2, 64, 1>}, {pipeline_mode = #tpu.pipeline_mode<synchronous>, transform_indices = @transform_12, window_bounds = array<i64: 2, 32, 32>}, {pipeline_mode = #tpu.pipeline_mode<synchronous>, transform_indices = @transform_13, window_bounds = array<i64: 2, 32, 1>}, {pipeline_mode = #tpu.pipeline_mode<synchronous>, transform_indices = @transform_14, window_bounds = array<i64: 2, 8, 32>}, {pipeline_mode = #tpu.pipeline_mode<synchronous>, transform_indices = @transform_15, window_bounds = array<i64: 2, 8, 1>}, {transform_indices = @transform_16, window_bounds = array<i64: 1, 8, 128>}, {transform_indices = @transform_17, window_bounds = array<i64: 1, 1, 128>}]} {
    %c0 = arith.constant 0 : index
    %c0_0 = arith.constant 0 : index
    %c0_1 = arith.constant 0 : index
    %0 = vector.load %arg2[%c0, %c0_0, %c0_1] : memref<1x1x128xf32, #tpu.memory_space<vmem>>, vector<1x1x128xf32>
    %1 = vector.shape_cast %0 : vector<1x1x128xf32> to vector<1x128xf32>
    %c0_2 = arith.constant 0 : index
    %c0_3 = arith.constant 0 : index
    %c0_4 = arith.constant 0 : index
    %2 = vector.load %arg1[%c0_2, %c0_3, %c0_4] : memref<1x8x128xf32, #tpu.memory_space<vmem>>, vector<1x4x128xf32>
    %3 = vector.shape_cast %2 : vector<1x4x128xf32> to vector<4x128xf32>
    %c0_5 = arith.constant 0 : index
    %c4 = arith.constant 4 : index
    %c0_6 = arith.constant 0 : index
    %4 = vector.load %arg1[%c0_5, %c4, %c0_6] : memref<1x8x128xf32, #tpu.memory_space<vmem>>, vector<1x4x128xf32>
    %5 = vector.shape_cast %4 : vector<1x4x128xf32> to vector<4x128xf32>
    %cst = arith.constant 0.000000e+00 : f32
    %6 = vector.broadcast %cst : f32 to vector<1x128xf32>
    %c0_7 = arith.constant 0 : index
    %c0_8 = arith.constant 0 : index
    %c0_9 = arith.constant 0 : index
    %7 = vector.load %arg4[%c0_7, %c0_8, %c0_9] : memref<2x8x4xf32, #tpu.memory_space<vmem>>, vector<1x8x4xf32>
    %8 = vector.shape_cast %7 : vector<1x8x4xf32> to vector<8x4xf32>
    %cst_10 = arith.constant dense<0.000000e+00> : vector<8x128xf32>
    %9 = tpu.matmul %8, %3, %cst_10 {dimension_numbers = #tpu.dot_dimension_numbers<[1], [0], [0], [1], [0, 0, 1, 1], [], []>} : vector<8x4xf32>, vector<4x128xf32>, vector<8x128xf32> -> vector<8x128xf32>
    %c0_11 = arith.constant 0 : index
    %c0_12 = arith.constant 0 : index
    %c0_13 = arith.constant 0 : index
    %10 = vector.load %arg5[%c0_11, %c0_12, %c0_13] : memref<2x8x4xf32, #tpu.memory_space<vmem>>, vector<1x8x4xf32>
    %11 = vector.shape_cast %10 : vector<1x8x4xf32> to vector<8x4xf32>
    %cst_14 = arith.constant dense<0.000000e+00> : vector<8x128xf32>
    %12 = tpu.matmul %11, %5, %cst_14 {dimension_numbers = #tpu.dot_dimension_numbers<[1], [0], [0], [1], [0, 0, 1, 1], [], []>} : vector<8x4xf32>, vector<4x128xf32>, vector<8x128xf32> -> vector<8x128xf32>
    %13 = arith.addf %9, %12 : vector<8x128xf32>
    %c0_15 = arith.constant 0 : index
    %c0_16 = arith.constant 0 : index
    %c0_17 = arith.constant 0 : index
    %14 = vector.load %arg6[%c0_15, %c0_16, %c0_17] : memref<2x8x1xf32, #tpu.memory_space<vmem>>, vector<1x8x1xf32>
    %15 = vector.shape_cast %14 : vector<1x8x1xf32> to vector<8x1xf32>
    %16 = vector.broadcast %15 : vector<8x1xf32> to vector<8x128xf32>
    %17 = arith.addf %13, %16 : vector<8x128xf32>
    %18 = vector.broadcast %1 : vector<1x128xf32> to vector<8x128xf32>
    %19 = arith.mulf %17, %18 : vector<8x128xf32>
    %20 = vector.extract_strided_slice %19 {offsets = [0, 0], sizes = [4, 128], strides = [1, 1]} : vector<8x128xf32> to vector<4x128xf32>
    %21 = vector.extract_strided_slice %19 {offsets = [4, 0], sizes = [4, 128], strides = [1, 1]} : vector<8x128xf32> to vector<4x128xf32>
    %c0_18 = arith.constant 0 : index
    %c0_19 = arith.constant 0 : index
    %c0_20 = arith.constant 0 : index
    %22 = vector.load %arg7[%c0_18, %c0_19, %c0_20] : memref<2x32x4xf32, #tpu.memory_space<vmem>>, vector<1x32x4xf32>
    %23 = vector.shape_cast %22 : vector<1x32x4xf32> to vector<32x4xf32>
    %cst_21 = arith.constant dense<0.000000e+00> : vector<32x128xf32>
    %24 = tpu.matmul %23, %20, %cst_21 {dimension_numbers = #tpu.dot_dimension_numbers<[1], [0], [0], [1], [0, 0, 1, 1], [], []>} : vector<32x4xf32>, vector<4x128xf32>, vector<32x128xf32> -> vector<32x128xf32>
    %c0_22 = arith.constant 0 : index
    %c0_23 = arith.constant 0 : index
    %c0_24 = arith.constant 0 : index
    %25 = vector.load %arg8[%c0_22, %c0_23, %c0_24] : memref<2x32x1xf32, #tpu.memory_space<vmem>>, vector<1x32x1xf32>
    %26 = vector.shape_cast %25 : vector<1x32x1xf32> to vector<32x1xf32>
    %27 = vector.broadcast %26 : vector<32x1xf32> to vector<32x128xf32>
    %28 = arith.addf %24, %27 : vector<32x128xf32>
    %29 = vector.broadcast %1 : vector<1x128xf32> to vector<32x128xf32>
    %30 = arith.mulf %28, %29 : vector<32x128xf32>
    %cst_25 = arith.constant 0.000000e+00 : f32
    %31 = vector.broadcast %cst_25 : f32 to vector<32x128xf32>
    %32 = vector.extract_strided_slice %30 {offsets = [0, 127], sizes = [32, 1], strides = [1, 1]} : vector<32x128xf32> to vector<32x1xf32>
    %33 = vector.extract_strided_slice %30 {offsets = [0, 0], sizes = [32, 127], strides = [1, 1]} : vector<32x128xf32> to vector<32x127xf32>
    %34 = tpu.concatenate %32, %33 in 1 : vector<32x1xf32>, vector<32x127xf32> -> vector<32x128xf32>
    %c0_26 = arith.constant 0 : index
    %c0_27 = arith.constant 0 : index
    %c0_28 = arith.constant 0 : index
    %c0_29 = arith.constant 0 : index
    %35 = vector.load %arg3[%c0_26, %c0_27, %c0_28, %c0_29] : memref<3x2x1x128xf32, #tpu.memory_space<vmem>>, vector<1x1x1x128xf32>
    %36 = vector.shape_cast %35 : vector<1x1x1x128xf32> to vector<1x128xf32>
    %37 = vector.broadcast %36 : vector<1x128xf32> to vector<32x128xf32>
    %38 = arith.mulf %34, %37 : vector<32x128xf32>
    %39 = vector.extract_strided_slice %30 {offsets = [0, 1], sizes = [32, 127], strides = [1, 1]} : vector<32x128xf32> to vector<32x127xf32>
    %40 = vector.extract_strided_slice %30 {offsets = [0, 0], sizes = [32, 1], strides = [1, 1]} : vector<32x128xf32> to vector<32x1xf32>
    %41 = tpu.concatenate %39, %40 in 1 : vector<32x127xf32>, vector<32x1xf32> -> vector<32x128xf32>
    %c0_30 = arith.constant 0 : index
    %c1 = arith.constant 1 : index
    %c0_31 = arith.constant 0 : index
    %c0_32 = arith.constant 0 : index
    %42 = vector.load %arg3[%c0_30, %c1, %c0_31, %c0_32] : memref<3x2x1x128xf32, #tpu.memory_space<vmem>>, vector<1x1x1x128xf32>
    %43 = vector.shape_cast %42 : vector<1x1x1x128xf32> to vector<1x128xf32>
    %44 = vector.broadcast %43 : vector<1x128xf32> to vector<32x128xf32>
    %45 = arith.mulf %41, %44 : vector<32x128xf32>
    %46 = tpu.concatenate %38, %30, %45 in 0 : vector<32x128xf32>, vector<32x128xf32>, vector<32x128xf32> -> vector<96x128xf32>
    %c0_33 = arith.constant 0 : index
    %c0_34 = arith.constant 0 : index
    %c0_35 = arith.constant 0 : index
    %c0_36 = arith.constant 0 : index
    %47 = vector.load %arg9[%c0_33, %c0_34, %c0_35, %c0_36] : memref<2x3x64x96xf32, #tpu.memory_space<vmem>>, vector<1x1x64x96xf32>
    %48 = vector.shape_cast %47 : vector<1x1x64x96xf32> to vector<64x96xf32>
    %cst_37 = arith.constant dense<0.000000e+00> : vector<64x128xf32>
    %49 = tpu.matmul %48, %46, %cst_37 {dimension_numbers = #tpu.dot_dimension_numbers<[1], [0], [0], [1], [0, 0, 1, 1], [], []>} : vector<64x96xf32>, vector<96x128xf32>, vector<64x128xf32> -> vector<64x128xf32>
    %c0_38 = arith.constant 0 : index
    %c0_39 = arith.constant 0 : index
    %c0_40 = arith.constant 0 : index
    %c0_41 = arith.constant 0 : index
    %50 = vector.load %arg10[%c0_38, %c0_39, %c0_40, %c0_41] : memref<2x3x64x1xf32, #tpu.memory_space<vmem>>, vector<1x1x64x1xf32>
    %51 = vector.shape_cast %50 : vector<1x1x64x1xf32> to vector<64x1xf32>
    %52 = vector.broadcast %51 : vector<64x1xf32> to vector<64x128xf32>
    %53 = arith.addf %49, %52 : vector<64x128xf32>
    %54 = vector.extract_strided_slice %53 {offsets = [0, 0], sizes = [32, 128], strides = [1, 1]} : vector<64x128xf32> to vector<32x128xf32>
    %55 = math.tanh %54 : vector<32x128xf32>
    %56 = vector.extract_strided_slice %53 {offsets = [32, 0], sizes = [32, 128], strides = [1, 1]} : vector<64x128xf32> to vector<32x128xf32>
    %57 = arith.negf %56 : vector<32x128xf32>
    %58 = math.exp %57 : vector<32x128xf32>
    %cst_42 = arith.constant 1.000000e+00 : f32
    %59 = vector.broadcast %cst_42 : f32 to vector<32x128xf32>
    %60 = arith.addf %59, %58 : vector<32x128xf32>
    %61 = arith.divf %59, %60 : vector<32x128xf32>
    %62 = arith.mulf %55, %61 : vector<32x128xf32>
    %c0_43 = arith.constant 0 : index
    %c0_44 = arith.constant 0 : index
    %c0_45 = arith.constant 0 : index
    %c0_46 = arith.constant 0 : index
    %63 = vector.load %arg11[%c0_43, %c0_44, %c0_45, %c0_46] : memref<2x2x64x32xf32, #tpu.memory_space<vmem>>, vector<1x1x64x32xf32>
    %64 = vector.shape_cast %63 : vector<1x1x64x32xf32> to vector<64x32xf32>
    %cst_47 = arith.constant dense<0.000000e+00> : vector<64x128xf32>
    %65 = tpu.matmul %64, %62, %cst_47 {dimension_numbers = #tpu.dot_dimension_numbers<[1], [0], [0], [1], [0, 0, 1, 1], [], []>} : vector<64x32xf32>, vector<32x128xf32>, vector<64x128xf32> -> vector<64x128xf32>
    %c0_48 = arith.constant 0 : index
    %c0_49 = arith.constant 0 : index
    %c0_50 = arith.constant 0 : index
    %c0_51 = arith.constant 0 : index
    %66 = vector.load %arg12[%c0_48, %c0_49, %c0_50, %c0_51] : memref<2x2x64x1xf32, #tpu.memory_space<vmem>>, vector<1x1x64x1xf32>
    %67 = vector.shape_cast %66 : vector<1x1x64x1xf32> to vector<64x1xf32>
    %68 = vector.broadcast %67 : vector<64x1xf32> to vector<64x128xf32>
    %69 = arith.addf %65, %68 : vector<64x128xf32>
    %70 = vector.extract_strided_slice %69 {offsets = [0, 0], sizes = [32, 128], strides = [1, 1]} : vector<64x128xf32> to vector<32x128xf32>
    %71 = arith.addf %30, %70 : vector<32x128xf32>
    %72 = vector.broadcast %1 : vector<1x128xf32> to vector<32x128xf32>
    %73 = arith.mulf %71, %72 : vector<32x128xf32>
    %74 = vector.extract_strided_slice %69 {offsets = [32, 0], sizes = [32, 128], strides = [1, 1]} : vector<64x128xf32> to vector<32x128xf32>
    %75 = arith.addf %31, %74 : vector<32x128xf32>
    %76 = vector.extract_strided_slice %73 {offsets = [0, 126], sizes = [32, 2], strides = [1, 1]} : vector<32x128xf32> to vector<32x2xf32>
    %77 = vector.extract_strided_slice %73 {offsets = [0, 0], sizes = [32, 126], strides = [1, 1]} : vector<32x128xf32> to vector<32x126xf32>
    %78 = tpu.concatenate %76, %77 in 1 : vector<32x2xf32>, vector<32x126xf32> -> vector<32x128xf32>
    %c1_52 = arith.constant 1 : index
    %c0_53 = arith.constant 0 : index
    %c0_54 = arith.constant 0 : index
    %c0_55 = arith.constant 0 : index
    %79 = vector.load %arg3[%c1_52, %c0_53, %c0_54, %c0_55] : memref<3x2x1x128xf32, #tpu.memory_space<vmem>>, vector<1x1x1x128xf32>
    %80 = vector.shape_cast %79 : vector<1x1x1x128xf32> to vector<1x128xf32>
    %81 = vector.broadcast %80 : vector<1x128xf32> to vector<32x128xf32>
    %82 = arith.mulf %78, %81 : vector<32x128xf32>
    %83 = vector.extract_strided_slice %73 {offsets = [0, 2], sizes = [32, 126], strides = [1, 1]} : vector<32x128xf32> to vector<32x126xf32>
    %84 = vector.extract_strided_slice %73 {offsets = [0, 0], sizes = [32, 2], strides = [1, 1]} : vector<32x128xf32> to vector<32x2xf32>
    %85 = tpu.concatenate %83, %84 in 1 : vector<32x126xf32>, vector<32x2xf32> -> vector<32x128xf32>
    %c1_56 = arith.constant 1 : index
    %c1_57 = arith.constant 1 : index
    %c0_58 = arith.constant 0 : index
    %c0_59 = arith.constant 0 : index
    %86 = vector.load %arg3[%c1_56, %c1_57, %c0_58, %c0_59] : memref<3x2x1x128xf32, #tpu.memory_space<vmem>>, vector<1x1x1x128xf32>
    %87 = vector.shape_cast %86 : vector<1x1x1x128xf32> to vector<1x128xf32>
    %88 = vector.broadcast %87 : vector<1x128xf32> to vector<32x128xf32>
    %89 = arith.mulf %85, %88 : vector<32x128xf32>
    %90 = tpu.concatenate %82, %73, %89 in 0 : vector<32x128xf32>, vector<32x128xf32>, vector<32x128xf32> -> vector<96x128xf32>
    %c0_60 = arith.constant 0 : index
    %c1_61 = arith.constant 1 : index
    %c0_62 = arith.constant 0 : index
    %c0_63 = arith.constant 0 : index
    %91 = vector.load %arg9[%c0_60, %c1_61, %c0_62, %c0_63] : memref<2x3x64x96xf32, #tpu.memory_space<vmem>>, vector<1x1x64x96xf32>
    %92 = vector.shape_cast %91 : vector<1x1x64x96xf32> to vector<64x96xf32>
    %cst_64 = arith.constant dense<0.000000e+00> : vector<64x128xf32>
    %93 = tpu.matmul %92, %90, %cst_64 {dimension_numbers = #tpu.dot_dimension_numbers<[1], [0], [0], [1], [0, 0, 1, 1], [], []>} : vector<64x96xf32>, vector<96x128xf32>, vector<64x128xf32> -> vector<64x128xf32>
    %c0_65 = arith.constant 0 : index
    %c1_66 = arith.constant 1 : index
    %c0_67 = arith.constant 0 : index
    %c0_68 = arith.constant 0 : index
    %94 = vector.load %arg10[%c0_65, %c1_66, %c0_67, %c0_68] : memref<2x3x64x1xf32, #tpu.memory_space<vmem>>, vector<1x1x64x1xf32>
    %95 = vector.shape_cast %94 : vector<1x1x64x1xf32> to vector<64x1xf32>
    %96 = vector.broadcast %95 : vector<64x1xf32> to vector<64x128xf32>
    %97 = arith.addf %93, %96 : vector<64x128xf32>
    %98 = vector.extract_strided_slice %97 {offsets = [0, 0], sizes = [32, 128], strides = [1, 1]} : vector<64x128xf32> to vector<32x128xf32>
    %99 = math.tanh %98 : vector<32x128xf32>
    %100 = vector.extract_strided_slice %97 {offsets = [32, 0], sizes = [32, 128], strides = [1, 1]} : vector<64x128xf32> to vector<32x128xf32>
    %101 = arith.negf %100 : vector<32x128xf32>
    %102 = math.exp %101 : vector<32x128xf32>
    %cst_69 = arith.constant 1.000000e+00 : f32
    %103 = vector.broadcast %cst_69 : f32 to vector<32x128xf32>
    %104 = arith.addf %103, %102 : vector<32x128xf32>
    %105 = arith.divf %103, %104 : vector<32x128xf32>
    %106 = arith.mulf %99, %105 : vector<32x128xf32>
    %c0_70 = arith.constant 0 : index
    %c1_71 = arith.constant 1 : index
    %c0_72 = arith.constant 0 : index
    %c0_73 = arith.constant 0 : index
    %107 = vector.load %arg11[%c0_70, %c1_71, %c0_72, %c0_73] : memref<2x2x64x32xf32, #tpu.memory_space<vmem>>, vector<1x1x64x32xf32>
    %108 = vector.shape_cast %107 : vector<1x1x64x32xf32> to vector<64x32xf32>
    %cst_74 = arith.constant dense<0.000000e+00> : vector<64x128xf32>
    %109 = tpu.matmul %108, %106, %cst_74 {dimension_numbers = #tpu.dot_dimension_numbers<[1], [0], [0], [1], [0, 0, 1, 1], [], []>} : vector<64x32xf32>, vector<32x128xf32>, vector<64x128xf32> -> vector<64x128xf32>
    %c0_75 = arith.constant 0 : index
    %c1_76 = arith.constant 1 : index
    %c0_77 = arith.constant 0 : index
    %c0_78 = arith.constant 0 : index
    %110 = vector.load %arg12[%c0_75, %c1_76, %c0_77, %c0_78] : memref<2x2x64x1xf32, #tpu.memory_space<vmem>>, vector<1x1x64x1xf32>
    %111 = vector.shape_cast %110 : vector<1x1x64x1xf32> to vector<64x1xf32>
    %112 = vector.broadcast %111 : vector<64x1xf32> to vector<64x128xf32>
    %113 = arith.addf %109, %112 : vector<64x128xf32>
    %114 = vector.extract_strided_slice %113 {offsets = [0, 0], sizes = [32, 128], strides = [1, 1]} : vector<64x128xf32> to vector<32x128xf32>
    %115 = arith.addf %73, %114 : vector<32x128xf32>
    %116 = vector.broadcast %1 : vector<1x128xf32> to vector<32x128xf32>
    %117 = arith.mulf %115, %116 : vector<32x128xf32>
    %118 = vector.extract_strided_slice %113 {offsets = [32, 0], sizes = [32, 128], strides = [1, 1]} : vector<64x128xf32> to vector<32x128xf32>
    %119 = arith.addf %75, %118 : vector<32x128xf32>
    %120 = vector.extract_strided_slice %117 {offsets = [0, 124], sizes = [32, 4], strides = [1, 1]} : vector<32x128xf32> to vector<32x4xf32>
    %121 = vector.extract_strided_slice %117 {offsets = [0, 0], sizes = [32, 124], strides = [1, 1]} : vector<32x128xf32> to vector<32x124xf32>
    %122 = tpu.concatenate %120, %121 in 1 : vector<32x4xf32>, vector<32x124xf32> -> vector<32x128xf32>
    %c2 = arith.constant 2 : index
    %c0_79 = arith.constant 0 : index
    %c0_80 = arith.constant 0 : index
    %c0_81 = arith.constant 0 : index
    %123 = vector.load %arg3[%c2, %c0_79, %c0_80, %c0_81] : memref<3x2x1x128xf32, #tpu.memory_space<vmem>>, vector<1x1x1x128xf32>
    %124 = vector.shape_cast %123 : vector<1x1x1x128xf32> to vector<1x128xf32>
    %125 = vector.broadcast %124 : vector<1x128xf32> to vector<32x128xf32>
    %126 = arith.mulf %122, %125 : vector<32x128xf32>
    %127 = vector.extract_strided_slice %117 {offsets = [0, 4], sizes = [32, 124], strides = [1, 1]} : vector<32x128xf32> to vector<32x124xf32>
    %128 = vector.extract_strided_slice %117 {offsets = [0, 0], sizes = [32, 4], strides = [1, 1]} : vector<32x128xf32> to vector<32x4xf32>
    %129 = tpu.concatenate %127, %128 in 1 : vector<32x124xf32>, vector<32x4xf32> -> vector<32x128xf32>
    %c2_82 = arith.constant 2 : index
    %c1_83 = arith.constant 1 : index
    %c0_84 = arith.constant 0 : index
    %c0_85 = arith.constant 0 : index
    %130 = vector.load %arg3[%c2_82, %c1_83, %c0_84, %c0_85] : memref<3x2x1x128xf32, #tpu.memory_space<vmem>>, vector<1x1x1x128xf32>
    %131 = vector.shape_cast %130 : vector<1x1x1x128xf32> to vector<1x128xf32>
    %132 = vector.broadcast %131 : vector<1x128xf32> to vector<32x128xf32>
    %133 = arith.mulf %129, %132 : vector<32x128xf32>
    %134 = tpu.concatenate %126, %117, %133 in 0 : vector<32x128xf32>, vector<32x128xf32>, vector<32x128xf32> -> vector<96x128xf32>
    %c0_86 = arith.constant 0 : index
    %c2_87 = arith.constant 2 : index
    %c0_88 = arith.constant 0 : index
    %c0_89 = arith.constant 0 : index
    %135 = vector.load %arg9[%c0_86, %c2_87, %c0_88, %c0_89] : memref<2x3x64x96xf32, #tpu.memory_space<vmem>>, vector<1x1x64x96xf32>
    %136 = vector.shape_cast %135 : vector<1x1x64x96xf32> to vector<64x96xf32>
    %cst_90 = arith.constant dense<0.000000e+00> : vector<64x128xf32>
    %137 = tpu.matmul %136, %134, %cst_90 {dimension_numbers = #tpu.dot_dimension_numbers<[1], [0], [0], [1], [0, 0, 1, 1], [], []>} : vector<64x96xf32>, vector<96x128xf32>, vector<64x128xf32> -> vector<64x128xf32>
    %c0_91 = arith.constant 0 : index
    %c2_92 = arith.constant 2 : index
    %c0_93 = arith.constant 0 : index
    %c0_94 = arith.constant 0 : index
    %138 = vector.load %arg10[%c0_91, %c2_92, %c0_93, %c0_94] : memref<2x3x64x1xf32, #tpu.memory_space<vmem>>, vector<1x1x64x1xf32>
    %139 = vector.shape_cast %138 : vector<1x1x64x1xf32> to vector<64x1xf32>
    %140 = vector.broadcast %139 : vector<64x1xf32> to vector<64x128xf32>
    %141 = arith.addf %137, %140 : vector<64x128xf32>
    %142 = vector.extract_strided_slice %141 {offsets = [0, 0], sizes = [32, 128], strides = [1, 1]} : vector<64x128xf32> to vector<32x128xf32>
    %143 = math.tanh %142 : vector<32x128xf32>
    %144 = vector.extract_strided_slice %141 {offsets = [32, 0], sizes = [32, 128], strides = [1, 1]} : vector<64x128xf32> to vector<32x128xf32>
    %145 = arith.negf %144 : vector<32x128xf32>
    %146 = math.exp %145 : vector<32x128xf32>
    %cst_95 = arith.constant 1.000000e+00 : f32
    %147 = vector.broadcast %cst_95 : f32 to vector<32x128xf32>
    %148 = arith.addf %147, %146 : vector<32x128xf32>
    %149 = arith.divf %147, %148 : vector<32x128xf32>
    %150 = arith.mulf %143, %149 : vector<32x128xf32>
    %c0_96 = arith.constant 0 : index
    %c0_97 = arith.constant 0 : index
    %c0_98 = arith.constant 0 : index
    %151 = vector.load %arg13[%c0_96, %c0_97, %c0_98] : memref<2x32x32xf32, #tpu.memory_space<vmem>>, vector<1x32x32xf32>
    %152 = vector.shape_cast %151 : vector<1x32x32xf32> to vector<32x32xf32>
    %cst_99 = arith.constant dense<0.000000e+00> : vector<32x128xf32>
    %153 = tpu.matmul %152, %150, %cst_99 {dimension_numbers = #tpu.dot_dimension_numbers<[1], [0], [0], [1], [0, 0, 1, 1], [], []>} : vector<32x32xf32>, vector<32x128xf32>, vector<32x128xf32> -> vector<32x128xf32>
    %154 = arith.addf %119, %153 : vector<32x128xf32>
    %c0_100 = arith.constant 0 : index
    %c0_101 = arith.constant 0 : index
    %c0_102 = arith.constant 0 : index
    %155 = vector.load %arg14[%c0_100, %c0_101, %c0_102] : memref<2x32x1xf32, #tpu.memory_space<vmem>>, vector<1x32x1xf32>
    %156 = vector.shape_cast %155 : vector<1x32x1xf32> to vector<32x1xf32>
    %157 = vector.broadcast %156 : vector<32x1xf32> to vector<32x128xf32>
    %158 = arith.addf %154, %157 : vector<32x128xf32>
    %159 = vector.broadcast %1 : vector<1x128xf32> to vector<32x128xf32>
    %160 = arith.mulf %158, %159 : vector<32x128xf32>
    %c0_103 = arith.constant 0 : index
    %c0_104 = arith.constant 0 : index
    %c0_105 = arith.constant 0 : index
    %161 = vector.load %arg15[%c0_103, %c0_104, %c0_105] : memref<2x8x32xf32, #tpu.memory_space<vmem>>, vector<1x8x32xf32>
    %162 = vector.shape_cast %161 : vector<1x8x32xf32> to vector<8x32xf32>
    %cst_106 = arith.constant dense<0.000000e+00> : vector<8x128xf32>
    %163 = tpu.matmul %162, %160, %cst_106 {dimension_numbers = #tpu.dot_dimension_numbers<[1], [0], [0], [1], [0, 0, 1, 1], [], []>} : vector<8x32xf32>, vector<32x128xf32>, vector<8x128xf32> -> vector<8x128xf32>
    %c0_107 = arith.constant 0 : index
    %c0_108 = arith.constant 0 : index
    %c0_109 = arith.constant 0 : index
    %164 = vector.load %arg16[%c0_107, %c0_108, %c0_109] : memref<2x8x1xf32, #tpu.memory_space<vmem>>, vector<1x8x1xf32>
    %165 = vector.shape_cast %164 : vector<1x8x1xf32> to vector<8x1xf32>
    %166 = vector.broadcast %165 : vector<8x1xf32> to vector<8x128xf32>
    %167 = arith.addf %163, %166 : vector<8x128xf32>
    %168 = vector.extract_strided_slice %167 {offsets = [0, 0], sizes = [4, 128], strides = [1, 1]} : vector<8x128xf32> to vector<4x128xf32>
    %169 = vector.extract_strided_slice %167 {offsets = [4, 0], sizes = [4, 128], strides = [1, 1]} : vector<8x128xf32> to vector<4x128xf32>
    %170 = math.exp %169 : vector<4x128xf32>
    %171 = arith.mulf %170, %21 : vector<4x128xf32>
    %172 = arith.addf %168, %171 : vector<4x128xf32>
    %173 = vector.broadcast %1 : vector<1x128xf32> to vector<4x128xf32>
    %174 = arith.mulf %172, %173 : vector<4x128xf32>
    %175 = vector.broadcast %1 : vector<1x128xf32> to vector<4x128xf32>
    %176 = arith.mulf %169, %175 : vector<4x128xf32>
    %cst_110 = arith.constant dense<0.000000e+00> : vector<128xf32>
    %177 = vector.multi_reduction <add>, %176, %cst_110 [0] : vector<4x128xf32> to vector<128xf32>
    %178 = vector.shape_cast %177 : vector<128xf32> to vector<1x128xf32>
    %179 = arith.addf %6, %178 : vector<1x128xf32>
    %c1_111 = arith.constant 1 : index
    %c0_112 = arith.constant 0 : index
    %c0_113 = arith.constant 0 : index
    %180 = vector.load %arg4[%c1_111, %c0_112, %c0_113] : memref<2x8x4xf32, #tpu.memory_space<vmem>>, vector<1x8x4xf32>
    %181 = vector.shape_cast %180 : vector<1x8x4xf32> to vector<8x4xf32>
    %cst_114 = arith.constant dense<0.000000e+00> : vector<8x128xf32>
    %182 = tpu.matmul %181, %20, %cst_114 {dimension_numbers = #tpu.dot_dimension_numbers<[1], [0], [0], [1], [0, 0, 1, 1], [], []>} : vector<8x4xf32>, vector<4x128xf32>, vector<8x128xf32> -> vector<8x128xf32>
    %c1_115 = arith.constant 1 : index
    %c0_116 = arith.constant 0 : index
    %c0_117 = arith.constant 0 : index
    %183 = vector.load %arg5[%c1_115, %c0_116, %c0_117] : memref<2x8x4xf32, #tpu.memory_space<vmem>>, vector<1x8x4xf32>
    %184 = vector.shape_cast %183 : vector<1x8x4xf32> to vector<8x4xf32>
    %cst_118 = arith.constant dense<0.000000e+00> : vector<8x128xf32>
    %185 = tpu.matmul %184, %174, %cst_118 {dimension_numbers = #tpu.dot_dimension_numbers<[1], [0], [0], [1], [0, 0, 1, 1], [], []>} : vector<8x4xf32>, vector<4x128xf32>, vector<8x128xf32> -> vector<8x128xf32>
    %186 = arith.addf %182, %185 : vector<8x128xf32>
    %c1_119 = arith.constant 1 : index
    %c0_120 = arith.constant 0 : index
    %c0_121 = arith.constant 0 : index
    %187 = vector.load %arg6[%c1_119, %c0_120, %c0_121] : memref<2x8x1xf32, #tpu.memory_space<vmem>>, vector<1x8x1xf32>
    %188 = vector.shape_cast %187 : vector<1x8x1xf32> to vector<8x1xf32>
    %189 = vector.broadcast %188 : vector<8x1xf32> to vector<8x128xf32>
    %190 = arith.addf %186, %189 : vector<8x128xf32>
    %191 = vector.broadcast %1 : vector<1x128xf32> to vector<8x128xf32>
    %192 = arith.mulf %190, %191 : vector<8x128xf32>
    %193 = vector.extract_strided_slice %192 {offsets = [0, 0], sizes = [4, 128], strides = [1, 1]} : vector<8x128xf32> to vector<4x128xf32>
    %194 = vector.extract_strided_slice %192 {offsets = [4, 0], sizes = [4, 128], strides = [1, 1]} : vector<8x128xf32> to vector<4x128xf32>
    %c1_122 = arith.constant 1 : index
    %c0_123 = arith.constant 0 : index
    %c0_124 = arith.constant 0 : index
    %195 = vector.load %arg7[%c1_122, %c0_123, %c0_124] : memref<2x32x4xf32, #tpu.memory_space<vmem>>, vector<1x32x4xf32>
    %196 = vector.shape_cast %195 : vector<1x32x4xf32> to vector<32x4xf32>
    %cst_125 = arith.constant dense<0.000000e+00> : vector<32x128xf32>
    %197 = tpu.matmul %196, %193, %cst_125 {dimension_numbers = #tpu.dot_dimension_numbers<[1], [0], [0], [1], [0, 0, 1, 1], [], []>} : vector<32x4xf32>, vector<4x128xf32>, vector<32x128xf32> -> vector<32x128xf32>
    %c1_126 = arith.constant 1 : index
    %c0_127 = arith.constant 0 : index
    %c0_128 = arith.constant 0 : index
    %198 = vector.load %arg8[%c1_126, %c0_127, %c0_128] : memref<2x32x1xf32, #tpu.memory_space<vmem>>, vector<1x32x1xf32>
    %199 = vector.shape_cast %198 : vector<1x32x1xf32> to vector<32x1xf32>
    %200 = vector.broadcast %199 : vector<32x1xf32> to vector<32x128xf32>
    %201 = arith.addf %197, %200 : vector<32x128xf32>
    %202 = vector.broadcast %1 : vector<1x128xf32> to vector<32x128xf32>
    %203 = arith.mulf %201, %202 : vector<32x128xf32>
    %cst_129 = arith.constant 0.000000e+00 : f32
    %204 = vector.broadcast %cst_129 : f32 to vector<32x128xf32>
    %205 = vector.extract_strided_slice %203 {offsets = [0, 127], sizes = [32, 1], strides = [1, 1]} : vector<32x128xf32> to vector<32x1xf32>
    %206 = vector.extract_strided_slice %203 {offsets = [0, 0], sizes = [32, 127], strides = [1, 1]} : vector<32x128xf32> to vector<32x127xf32>
    %207 = tpu.concatenate %205, %206 in 1 : vector<32x1xf32>, vector<32x127xf32> -> vector<32x128xf32>
    %c0_130 = arith.constant 0 : index
    %c0_131 = arith.constant 0 : index
    %c0_132 = arith.constant 0 : index
    %c0_133 = arith.constant 0 : index
    %208 = vector.load %arg3[%c0_130, %c0_131, %c0_132, %c0_133] : memref<3x2x1x128xf32, #tpu.memory_space<vmem>>, vector<1x1x1x128xf32>
    %209 = vector.shape_cast %208 : vector<1x1x1x128xf32> to vector<1x128xf32>
    %210 = vector.broadcast %209 : vector<1x128xf32> to vector<32x128xf32>
    %211 = arith.mulf %207, %210 : vector<32x128xf32>
    %212 = vector.extract_strided_slice %203 {offsets = [0, 1], sizes = [32, 127], strides = [1, 1]} : vector<32x128xf32> to vector<32x127xf32>
    %213 = vector.extract_strided_slice %203 {offsets = [0, 0], sizes = [32, 1], strides = [1, 1]} : vector<32x128xf32> to vector<32x1xf32>
    %214 = tpu.concatenate %212, %213 in 1 : vector<32x127xf32>, vector<32x1xf32> -> vector<32x128xf32>
    %c0_134 = arith.constant 0 : index
    %c1_135 = arith.constant 1 : index
    %c0_136 = arith.constant 0 : index
    %c0_137 = arith.constant 0 : index
    %215 = vector.load %arg3[%c0_134, %c1_135, %c0_136, %c0_137] : memref<3x2x1x128xf32, #tpu.memory_space<vmem>>, vector<1x1x1x128xf32>
    %216 = vector.shape_cast %215 : vector<1x1x1x128xf32> to vector<1x128xf32>
    %217 = vector.broadcast %216 : vector<1x128xf32> to vector<32x128xf32>
    %218 = arith.mulf %214, %217 : vector<32x128xf32>
    %219 = tpu.concatenate %211, %203, %218 in 0 : vector<32x128xf32>, vector<32x128xf32>, vector<32x128xf32> -> vector<96x128xf32>
    %c1_138 = arith.constant 1 : index
    %c0_139 = arith.constant 0 : index
    %c0_140 = arith.constant 0 : index
    %c0_141 = arith.constant 0 : index
    %220 = vector.load %arg9[%c1_138, %c0_139, %c0_140, %c0_141] : memref<2x3x64x96xf32, #tpu.memory_space<vmem>>, vector<1x1x64x96xf32>
    %221 = vector.shape_cast %220 : vector<1x1x64x96xf32> to vector<64x96xf32>
    %cst_142 = arith.constant dense<0.000000e+00> : vector<64x128xf32>
    %222 = tpu.matmul %221, %219, %cst_142 {dimension_numbers = #tpu.dot_dimension_numbers<[1], [0], [0], [1], [0, 0, 1, 1], [], []>} : vector<64x96xf32>, vector<96x128xf32>, vector<64x128xf32> -> vector<64x128xf32>
    %c1_143 = arith.constant 1 : index
    %c0_144 = arith.constant 0 : index
    %c0_145 = arith.constant 0 : index
    %c0_146 = arith.constant 0 : index
    %223 = vector.load %arg10[%c1_143, %c0_144, %c0_145, %c0_146] : memref<2x3x64x1xf32, #tpu.memory_space<vmem>>, vector<1x1x64x1xf32>
    %224 = vector.shape_cast %223 : vector<1x1x64x1xf32> to vector<64x1xf32>
    %225 = vector.broadcast %224 : vector<64x1xf32> to vector<64x128xf32>
    %226 = arith.addf %222, %225 : vector<64x128xf32>
    %227 = vector.extract_strided_slice %226 {offsets = [0, 0], sizes = [32, 128], strides = [1, 1]} : vector<64x128xf32> to vector<32x128xf32>
    %228 = math.tanh %227 : vector<32x128xf32>
    %229 = vector.extract_strided_slice %226 {offsets = [32, 0], sizes = [32, 128], strides = [1, 1]} : vector<64x128xf32> to vector<32x128xf32>
    %230 = arith.negf %229 : vector<32x128xf32>
    %231 = math.exp %230 : vector<32x128xf32>
    %cst_147 = arith.constant 1.000000e+00 : f32
    %232 = vector.broadcast %cst_147 : f32 to vector<32x128xf32>
    %233 = arith.addf %232, %231 : vector<32x128xf32>
    %234 = arith.divf %232, %233 : vector<32x128xf32>
    %235 = arith.mulf %228, %234 : vector<32x128xf32>
    %c1_148 = arith.constant 1 : index
    %c0_149 = arith.constant 0 : index
    %c0_150 = arith.constant 0 : index
    %c0_151 = arith.constant 0 : index
    %236 = vector.load %arg11[%c1_148, %c0_149, %c0_150, %c0_151] : memref<2x2x64x32xf32, #tpu.memory_space<vmem>>, vector<1x1x64x32xf32>
    %237 = vector.shape_cast %236 : vector<1x1x64x32xf32> to vector<64x32xf32>
    %cst_152 = arith.constant dense<0.000000e+00> : vector<64x128xf32>
    %238 = tpu.matmul %237, %235, %cst_152 {dimension_numbers = #tpu.dot_dimension_numbers<[1], [0], [0], [1], [0, 0, 1, 1], [], []>} : vector<64x32xf32>, vector<32x128xf32>, vector<64x128xf32> -> vector<64x128xf32>
    %c1_153 = arith.constant 1 : index
    %c0_154 = arith.constant 0 : index
    %c0_155 = arith.constant 0 : index
    %c0_156 = arith.constant 0 : index
    %239 = vector.load %arg12[%c1_153, %c0_154, %c0_155, %c0_156] : memref<2x2x64x1xf32, #tpu.memory_space<vmem>>, vector<1x1x64x1xf32>
    %240 = vector.shape_cast %239 : vector<1x1x64x1xf32> to vector<64x1xf32>
    %241 = vector.broadcast %240 : vector<64x1xf32> to vector<64x128xf32>
    %242 = arith.addf %238, %241 : vector<64x128xf32>
    %243 = vector.extract_strided_slice %242 {offsets = [0, 0], sizes = [32, 128], strides = [1, 1]} : vector<64x128xf32> to vector<32x128xf32>
    %244 = arith.addf %203, %243 : vector<32x128xf32>
    %245 = vector.broadcast %1 : vector<1x128xf32> to vector<32x128xf32>
    %246 = arith.mulf %244, %245 : vector<32x128xf32>
    %247 = vector.extract_strided_slice %242 {offsets = [32, 0], sizes = [32, 128], strides = [1, 1]} : vector<64x128xf32> to vector<32x128xf32>
    %248 = arith.addf %204, %247 : vector<32x128xf32>
    %249 = vector.extract_strided_slice %246 {offsets = [0, 126], sizes = [32, 2], strides = [1, 1]} : vector<32x128xf32> to vector<32x2xf32>
    %250 = vector.extract_strided_slice %246 {offsets = [0, 0], sizes = [32, 126], strides = [1, 1]} : vector<32x128xf32> to vector<32x126xf32>
    %251 = tpu.concatenate %249, %250 in 1 : vector<32x2xf32>, vector<32x126xf32> -> vector<32x128xf32>
    %c1_157 = arith.constant 1 : index
    %c0_158 = arith.constant 0 : index
    %c0_159 = arith.constant 0 : index
    %c0_160 = arith.constant 0 : index
    %252 = vector.load %arg3[%c1_157, %c0_158, %c0_159, %c0_160] : memref<3x2x1x128xf32, #tpu.memory_space<vmem>>, vector<1x1x1x128xf32>
    %253 = vector.shape_cast %252 : vector<1x1x1x128xf32> to vector<1x128xf32>
    %254 = vector.broadcast %253 : vector<1x128xf32> to vector<32x128xf32>
    %255 = arith.mulf %251, %254 : vector<32x128xf32>
    %256 = vector.extract_strided_slice %246 {offsets = [0, 2], sizes = [32, 126], strides = [1, 1]} : vector<32x128xf32> to vector<32x126xf32>
    %257 = vector.extract_strided_slice %246 {offsets = [0, 0], sizes = [32, 2], strides = [1, 1]} : vector<32x128xf32> to vector<32x2xf32>
    %258 = tpu.concatenate %256, %257 in 1 : vector<32x126xf32>, vector<32x2xf32> -> vector<32x128xf32>
    %c1_161 = arith.constant 1 : index
    %c1_162 = arith.constant 1 : index
    %c0_163 = arith.constant 0 : index
    %c0_164 = arith.constant 0 : index
    %259 = vector.load %arg3[%c1_161, %c1_162, %c0_163, %c0_164] : memref<3x2x1x128xf32, #tpu.memory_space<vmem>>, vector<1x1x1x128xf32>
    %260 = vector.shape_cast %259 : vector<1x1x1x128xf32> to vector<1x128xf32>
    %261 = vector.broadcast %260 : vector<1x128xf32> to vector<32x128xf32>
    %262 = arith.mulf %258, %261 : vector<32x128xf32>
    %263 = tpu.concatenate %255, %246, %262 in 0 : vector<32x128xf32>, vector<32x128xf32>, vector<32x128xf32> -> vector<96x128xf32>
    %c1_165 = arith.constant 1 : index
    %c1_166 = arith.constant 1 : index
    %c0_167 = arith.constant 0 : index
    %c0_168 = arith.constant 0 : index
    %264 = vector.load %arg9[%c1_165, %c1_166, %c0_167, %c0_168] : memref<2x3x64x96xf32, #tpu.memory_space<vmem>>, vector<1x1x64x96xf32>
    %265 = vector.shape_cast %264 : vector<1x1x64x96xf32> to vector<64x96xf32>
    %cst_169 = arith.constant dense<0.000000e+00> : vector<64x128xf32>
    %266 = tpu.matmul %265, %263, %cst_169 {dimension_numbers = #tpu.dot_dimension_numbers<[1], [0], [0], [1], [0, 0, 1, 1], [], []>} : vector<64x96xf32>, vector<96x128xf32>, vector<64x128xf32> -> vector<64x128xf32>
    %c1_170 = arith.constant 1 : index
    %c1_171 = arith.constant 1 : index
    %c0_172 = arith.constant 0 : index
    %c0_173 = arith.constant 0 : index
    %267 = vector.load %arg10[%c1_170, %c1_171, %c0_172, %c0_173] : memref<2x3x64x1xf32, #tpu.memory_space<vmem>>, vector<1x1x64x1xf32>
    %268 = vector.shape_cast %267 : vector<1x1x64x1xf32> to vector<64x1xf32>
    %269 = vector.broadcast %268 : vector<64x1xf32> to vector<64x128xf32>
    %270 = arith.addf %266, %269 : vector<64x128xf32>
    %271 = vector.extract_strided_slice %270 {offsets = [0, 0], sizes = [32, 128], strides = [1, 1]} : vector<64x128xf32> to vector<32x128xf32>
    %272 = math.tanh %271 : vector<32x128xf32>
    %273 = vector.extract_strided_slice %270 {offsets = [32, 0], sizes = [32, 128], strides = [1, 1]} : vector<64x128xf32> to vector<32x128xf32>
    %274 = arith.negf %273 : vector<32x128xf32>
    %275 = math.exp %274 : vector<32x128xf32>
    %cst_174 = arith.constant 1.000000e+00 : f32
    %276 = vector.broadcast %cst_174 : f32 to vector<32x128xf32>
    %277 = arith.addf %276, %275 : vector<32x128xf32>
    %278 = arith.divf %276, %277 : vector<32x128xf32>
    %279 = arith.mulf %272, %278 : vector<32x128xf32>
    %c1_175 = arith.constant 1 : index
    %c1_176 = arith.constant 1 : index
    %c0_177 = arith.constant 0 : index
    %c0_178 = arith.constant 0 : index
    %280 = vector.load %arg11[%c1_175, %c1_176, %c0_177, %c0_178] : memref<2x2x64x32xf32, #tpu.memory_space<vmem>>, vector<1x1x64x32xf32>
    %281 = vector.shape_cast %280 : vector<1x1x64x32xf32> to vector<64x32xf32>
    %cst_179 = arith.constant dense<0.000000e+00> : vector<64x128xf32>
    %282 = tpu.matmul %281, %279, %cst_179 {dimension_numbers = #tpu.dot_dimension_numbers<[1], [0], [0], [1], [0, 0, 1, 1], [], []>} : vector<64x32xf32>, vector<32x128xf32>, vector<64x128xf32> -> vector<64x128xf32>
    %c1_180 = arith.constant 1 : index
    %c1_181 = arith.constant 1 : index
    %c0_182 = arith.constant 0 : index
    %c0_183 = arith.constant 0 : index
    %283 = vector.load %arg12[%c1_180, %c1_181, %c0_182, %c0_183] : memref<2x2x64x1xf32, #tpu.memory_space<vmem>>, vector<1x1x64x1xf32>
    %284 = vector.shape_cast %283 : vector<1x1x64x1xf32> to vector<64x1xf32>
    %285 = vector.broadcast %284 : vector<64x1xf32> to vector<64x128xf32>
    %286 = arith.addf %282, %285 : vector<64x128xf32>
    %287 = vector.extract_strided_slice %286 {offsets = [0, 0], sizes = [32, 128], strides = [1, 1]} : vector<64x128xf32> to vector<32x128xf32>
    %288 = arith.addf %246, %287 : vector<32x128xf32>
    %289 = vector.broadcast %1 : vector<1x128xf32> to vector<32x128xf32>
    %290 = arith.mulf %288, %289 : vector<32x128xf32>
    %291 = vector.extract_strided_slice %286 {offsets = [32, 0], sizes = [32, 128], strides = [1, 1]} : vector<64x128xf32> to vector<32x128xf32>
    %292 = arith.addf %248, %291 : vector<32x128xf32>
    %293 = vector.extract_strided_slice %290 {offsets = [0, 124], sizes = [32, 4], strides = [1, 1]} : vector<32x128xf32> to vector<32x4xf32>
    %294 = vector.extract_strided_slice %290 {offsets = [0, 0], sizes = [32, 124], strides = [1, 1]} : vector<32x128xf32> to vector<32x124xf32>
    %295 = tpu.concatenate %293, %294 in 1 : vector<32x4xf32>, vector<32x124xf32> -> vector<32x128xf32>
    %c2_184 = arith.constant 2 : index
    %c0_185 = arith.constant 0 : index
    %c0_186 = arith.constant 0 : index
    %c0_187 = arith.constant 0 : index
    %296 = vector.load %arg3[%c2_184, %c0_185, %c0_186, %c0_187] : memref<3x2x1x128xf32, #tpu.memory_space<vmem>>, vector<1x1x1x128xf32>
    %297 = vector.shape_cast %296 : vector<1x1x1x128xf32> to vector<1x128xf32>
    %298 = vector.broadcast %297 : vector<1x128xf32> to vector<32x128xf32>
    %299 = arith.mulf %295, %298 : vector<32x128xf32>
    %300 = vector.extract_strided_slice %290 {offsets = [0, 4], sizes = [32, 124], strides = [1, 1]} : vector<32x128xf32> to vector<32x124xf32>
    %301 = vector.extract_strided_slice %290 {offsets = [0, 0], sizes = [32, 4], strides = [1, 1]} : vector<32x128xf32> to vector<32x4xf32>
    %302 = tpu.concatenate %300, %301 in 1 : vector<32x124xf32>, vector<32x4xf32> -> vector<32x128xf32>
    %c2_188 = arith.constant 2 : index
    %c1_189 = arith.constant 1 : index
    %c0_190 = arith.constant 0 : index
    %c0_191 = arith.constant 0 : index
    %303 = vector.load %arg3[%c2_188, %c1_189, %c0_190, %c0_191] : memref<3x2x1x128xf32, #tpu.memory_space<vmem>>, vector<1x1x1x128xf32>
    %304 = vector.shape_cast %303 : vector<1x1x1x128xf32> to vector<1x128xf32>
    %305 = vector.broadcast %304 : vector<1x128xf32> to vector<32x128xf32>
    %306 = arith.mulf %302, %305 : vector<32x128xf32>
    %307 = tpu.concatenate %299, %290, %306 in 0 : vector<32x128xf32>, vector<32x128xf32>, vector<32x128xf32> -> vector<96x128xf32>
    %c1_192 = arith.constant 1 : index
    %c2_193 = arith.constant 2 : index
    %c0_194 = arith.constant 0 : index
    %c0_195 = arith.constant 0 : index
    %308 = vector.load %arg9[%c1_192, %c2_193, %c0_194, %c0_195] : memref<2x3x64x96xf32, #tpu.memory_space<vmem>>, vector<1x1x64x96xf32>
    %309 = vector.shape_cast %308 : vector<1x1x64x96xf32> to vector<64x96xf32>
    %cst_196 = arith.constant dense<0.000000e+00> : vector<64x128xf32>
    %310 = tpu.matmul %309, %307, %cst_196 {dimension_numbers = #tpu.dot_dimension_numbers<[1], [0], [0], [1], [0, 0, 1, 1], [], []>} : vector<64x96xf32>, vector<96x128xf32>, vector<64x128xf32> -> vector<64x128xf32>
    %c1_197 = arith.constant 1 : index
    %c2_198 = arith.constant 2 : index
    %c0_199 = arith.constant 0 : index
    %c0_200 = arith.constant 0 : index
    %311 = vector.load %arg10[%c1_197, %c2_198, %c0_199, %c0_200] : memref<2x3x64x1xf32, #tpu.memory_space<vmem>>, vector<1x1x64x1xf32>
    %312 = vector.shape_cast %311 : vector<1x1x64x1xf32> to vector<64x1xf32>
    %313 = vector.broadcast %312 : vector<64x1xf32> to vector<64x128xf32>
    %314 = arith.addf %310, %313 : vector<64x128xf32>
    %315 = vector.extract_strided_slice %314 {offsets = [0, 0], sizes = [32, 128], strides = [1, 1]} : vector<64x128xf32> to vector<32x128xf32>
    %316 = math.tanh %315 : vector<32x128xf32>
    %317 = vector.extract_strided_slice %314 {offsets = [32, 0], sizes = [32, 128], strides = [1, 1]} : vector<64x128xf32> to vector<32x128xf32>
    %318 = arith.negf %317 : vector<32x128xf32>
    %319 = math.exp %318 : vector<32x128xf32>
    %cst_201 = arith.constant 1.000000e+00 : f32
    %320 = vector.broadcast %cst_201 : f32 to vector<32x128xf32>
    %321 = arith.addf %320, %319 : vector<32x128xf32>
    %322 = arith.divf %320, %321 : vector<32x128xf32>
    %323 = arith.mulf %316, %322 : vector<32x128xf32>
    %c1_202 = arith.constant 1 : index
    %c0_203 = arith.constant 0 : index
    %c0_204 = arith.constant 0 : index
    %324 = vector.load %arg13[%c1_202, %c0_203, %c0_204] : memref<2x32x32xf32, #tpu.memory_space<vmem>>, vector<1x32x32xf32>
    %325 = vector.shape_cast %324 : vector<1x32x32xf32> to vector<32x32xf32>
    %cst_205 = arith.constant dense<0.000000e+00> : vector<32x128xf32>
    %326 = tpu.matmul %325, %323, %cst_205 {dimension_numbers = #tpu.dot_dimension_numbers<[1], [0], [0], [1], [0, 0, 1, 1], [], []>} : vector<32x32xf32>, vector<32x128xf32>, vector<32x128xf32> -> vector<32x128xf32>
    %327 = arith.addf %292, %326 : vector<32x128xf32>
    %c1_206 = arith.constant 1 : index
    %c0_207 = arith.constant 0 : index
    %c0_208 = arith.constant 0 : index
    %328 = vector.load %arg14[%c1_206, %c0_207, %c0_208] : memref<2x32x1xf32, #tpu.memory_space<vmem>>, vector<1x32x1xf32>
    %329 = vector.shape_cast %328 : vector<1x32x1xf32> to vector<32x1xf32>
    %330 = vector.broadcast %329 : vector<32x1xf32> to vector<32x128xf32>
    %331 = arith.addf %327, %330 : vector<32x128xf32>
    %332 = vector.broadcast %1 : vector<1x128xf32> to vector<32x128xf32>
    %333 = arith.mulf %331, %332 : vector<32x128xf32>
    %c1_209 = arith.constant 1 : index
    %c0_210 = arith.constant 0 : index
    %c0_211 = arith.constant 0 : index
    %334 = vector.load %arg15[%c1_209, %c0_210, %c0_211] : memref<2x8x32xf32, #tpu.memory_space<vmem>>, vector<1x8x32xf32>
    %335 = vector.shape_cast %334 : vector<1x8x32xf32> to vector<8x32xf32>
    %cst_212 = arith.constant dense<0.000000e+00> : vector<8x128xf32>
    %336 = tpu.matmul %335, %333, %cst_212 {dimension_numbers = #tpu.dot_dimension_numbers<[1], [0], [0], [1], [0, 0, 1, 1], [], []>} : vector<8x32xf32>, vector<32x128xf32>, vector<8x128xf32> -> vector<8x128xf32>
    %c1_213 = arith.constant 1 : index
    %c0_214 = arith.constant 0 : index
    %c0_215 = arith.constant 0 : index
    %337 = vector.load %arg16[%c1_213, %c0_214, %c0_215] : memref<2x8x1xf32, #tpu.memory_space<vmem>>, vector<1x8x1xf32>
    %338 = vector.shape_cast %337 : vector<1x8x1xf32> to vector<8x1xf32>
    %339 = vector.broadcast %338 : vector<8x1xf32> to vector<8x128xf32>
    %340 = arith.addf %336, %339 : vector<8x128xf32>
    %341 = vector.extract_strided_slice %340 {offsets = [0, 0], sizes = [4, 128], strides = [1, 1]} : vector<8x128xf32> to vector<4x128xf32>
    %342 = vector.extract_strided_slice %340 {offsets = [4, 0], sizes = [4, 128], strides = [1, 1]} : vector<8x128xf32> to vector<4x128xf32>
    %343 = math.exp %342 : vector<4x128xf32>
    %344 = arith.mulf %343, %194 : vector<4x128xf32>
    %345 = arith.addf %341, %344 : vector<4x128xf32>
    %346 = vector.broadcast %1 : vector<1x128xf32> to vector<4x128xf32>
    %347 = arith.mulf %345, %346 : vector<4x128xf32>
    %348 = vector.broadcast %1 : vector<1x128xf32> to vector<4x128xf32>
    %349 = arith.mulf %342, %348 : vector<4x128xf32>
    %cst_216 = arith.constant dense<0.000000e+00> : vector<128xf32>
    %350 = vector.multi_reduction <add>, %349, %cst_216 [0] : vector<4x128xf32> to vector<128xf32>
    %351 = vector.shape_cast %350 : vector<128xf32> to vector<1x128xf32>
    %352 = arith.addf %179, %351 : vector<1x128xf32>
    %353 = tpu.concatenate %193, %347 in 0 : vector<4x128xf32>, vector<4x128xf32> -> vector<8x128xf32>
    %c0_217 = arith.constant 0 : index
    %c0_218 = arith.constant 0 : index
    %c0_219 = arith.constant 0 : index
    %354 = vector.load %arg17[%c0_217, %c0_218, %c0_219] : memref<1x8x128xf32, #tpu.memory_space<vmem>>, vector<1x8x128xf32>
    %355 = vector.shape_cast %354 : vector<1x8x128xf32> to vector<8x128xf32>
    %356 = vector.shape_cast %353 : vector<8x128xf32> to vector<1x8x128xf32>
    tpu.vector_store %arg17[%c0_217, %c0_218, %c0_219], %356 {strides = array<i32>} : memref<1x8x128xf32, #tpu.memory_space<vmem>>, vector<1x8x128xf32>,
    %c0_220 = arith.constant 0 : index
    %c0_221 = arith.constant 0 : index
    %c0_222 = arith.constant 0 : index
    %357 = vector.load %arg18[%c0_220, %c0_221, %c0_222] : memref<1x1x128xf32, #tpu.memory_space<vmem>>, vector<1x1x128xf32>
    %358 = vector.shape_cast %357 : vector<1x1x128xf32> to vector<1x128xf32>
    %359 = vector.shape_cast %352 : vector<1x128xf32> to vector<1x1x128xf32>
    tpu.vector_store %arg18[%c0_220, %c0_221, %c0_222], %359 {strides = array<i32>} : memref<1x1x128xf32, #tpu.memory_space<vmem>>, vector<1x1x128xf32>,
    return
  }
  func.func @transform_0(%arg0: i32) -> (i32, i32, i32) {
    %c0_i32 = arith.constant 0 : i32
    %c0_i32_0 = arith.constant 0 : i32
    %c0_i32_1 = arith.constant 0 : i32
    return %arg0, %c0_i32, %c0_i32_0 : i32, i32, i32
  }
  func.func @transform_1(%arg0: i32) -> (i32, i32, i32) {
    %c0_i32 = arith.constant 0 : i32
    %c0_i32_0 = arith.constant 0 : i32
    %c0_i32_1 = arith.constant 0 : i32
    return %arg0, %c0_i32, %c0_i32_0 : i32, i32, i32
  }
  func.func @transform_2(%arg0: i32) -> (i32, i32, i32, i32) {
    %c0_i32 = arith.constant 0 : i32
    %c0_i32_0 = arith.constant 0 : i32
    %c0_i32_1 = arith.constant 0 : i32
    %c0_i32_2 = arith.constant 0 : i32
    %c0_i32_3 = arith.constant 0 : i32
    return %c0_i32, %c0_i32_0, %c0_i32_1, %c0_i32_2 : i32, i32, i32, i32
  }
  func.func @transform_3(%arg0: i32) -> (i32, i32, i32) {
    %c0_i32 = arith.constant 0 : i32
    %c0_i32_0 = arith.constant 0 : i32
    %c0_i32_1 = arith.constant 0 : i32
    %c0_i32_2 = arith.constant 0 : i32
    return %c0_i32, %c0_i32_0, %c0_i32_1 : i32, i32, i32
  }
  func.func @transform_4(%arg0: i32) -> (i32, i32, i32) {
    %c0_i32 = arith.constant 0 : i32
    %c0_i32_0 = arith.constant 0 : i32
    %c0_i32_1 = arith.constant 0 : i32
    %c0_i32_2 = arith.constant 0 : i32
    return %c0_i32, %c0_i32_0, %c0_i32_1 : i32, i32, i32
  }
  func.func @transform_5(%arg0: i32) -> (i32, i32, i32) {
    %c0_i32 = arith.constant 0 : i32
    %c0_i32_0 = arith.constant 0 : i32
    %c0_i32_1 = arith.constant 0 : i32
    %c0_i32_2 = arith.constant 0 : i32
    return %c0_i32, %c0_i32_0, %c0_i32_1 : i32, i32, i32
  }
  func.func @transform_6(%arg0: i32) -> (i32, i32, i32) {
    %c0_i32 = arith.constant 0 : i32
    %c0_i32_0 = arith.constant 0 : i32
    %c0_i32_1 = arith.constant 0 : i32
    %c0_i32_2 = arith.constant 0 : i32
    return %c0_i32, %c0_i32_0, %c0_i32_1 : i32, i32, i32
  }
  func.func @transform_7(%arg0: i32) -> (i32, i32, i32) {
    %c0_i32 = arith.constant 0 : i32
    %c0_i32_0 = arith.constant 0 : i32
    %c0_i32_1 = arith.constant 0 : i32
    %c0_i32_2 = arith.constant 0 : i32
    return %c0_i32, %c0_i32_0, %c0_i32_1 : i32, i32, i32
  }
  func.func @transform_8(%arg0: i32) -> (i32, i32, i32, i32) {
    %c0_i32 = arith.constant 0 : i32
    %c0_i32_0 = arith.constant 0 : i32
    %c0_i32_1 = arith.constant 0 : i32
    %c0_i32_2 = arith.constant 0 : i32
    %c0_i32_3 = arith.constant 0 : i32
    return %c0_i32, %c0_i32_0, %c0_i32_1, %c0_i32_2 : i32, i32, i32, i32
  }
  func.func @transform_9(%arg0: i32) -> (i32, i32, i32, i32) {
    %c0_i32 = arith.constant 0 : i32
    %c0_i32_0 = arith.constant 0 : i32
    %c0_i32_1 = arith.constant 0 : i32
    %c0_i32_2 = arith.constant 0 : i32
    %c0_i32_3 = arith.constant 0 : i32
    return %c0_i32, %c0_i32_0, %c0_i32_1, %c0_i32_2 : i32, i32, i32, i32
  }
  func.func @transform_10(%arg0: i32) -> (i32, i32, i32, i32) {
    %c0_i32 = arith.constant 0 : i32
    %c0_i32_0 = arith.constant 0 : i32
    %c0_i32_1 = arith.constant 0 : i32
    %c0_i32_2 = arith.constant 0 : i32
    %c0_i32_3 = arith.constant 0 : i32
    return %c0_i32, %c0_i32_0, %c0_i32_1, %c0_i32_2 : i32, i32, i32, i32
  }
  func.func @transform_11(%arg0: i32) -> (i32, i32, i32, i32) {
    %c0_i32 = arith.constant 0 : i32
    %c0_i32_0 = arith.constant 0 : i32
    %c0_i32_1 = arith.constant 0 : i32
    %c0_i32_2 = arith.constant 0 : i32
    %c0_i32_3 = arith.constant 0 : i32
    return %c0_i32, %c0_i32_0, %c0_i32_1, %c0_i32_2 : i32, i32, i32, i32
  }
  func.func @transform_12(%arg0: i32) -> (i32, i32, i32) {
    %c0_i32 = arith.constant 0 : i32
    %c0_i32_0 = arith.constant 0 : i32
    %c0_i32_1 = arith.constant 0 : i32
    %c0_i32_2 = arith.constant 0 : i32
    return %c0_i32, %c0_i32_0, %c0_i32_1 : i32, i32, i32
  }
  func.func @transform_13(%arg0: i32) -> (i32, i32, i32) {
    %c0_i32 = arith.constant 0 : i32
    %c0_i32_0 = arith.constant 0 : i32
    %c0_i32_1 = arith.constant 0 : i32
    %c0_i32_2 = arith.constant 0 : i32
    return %c0_i32, %c0_i32_0, %c0_i32_1 : i32, i32, i32
  }
  func.func @transform_14(%arg0: i32) -> (i32, i32, i32) {
    %c0_i32 = arith.constant 0 : i32
    %c0_i32_0 = arith.constant 0 : i32
    %c0_i32_1 = arith.constant 0 : i32
    %c0_i32_2 = arith.constant 0 : i32
    return %c0_i32, %c0_i32_0, %c0_i32_1 : i32, i32, i32
  }
  func.func @transform_15(%arg0: i32) -> (i32, i32, i32) {
    %c0_i32 = arith.constant 0 : i32
    %c0_i32_0 = arith.constant 0 : i32
    %c0_i32_1 = arith.constant 0 : i32
    %c0_i32_2 = arith.constant 0 : i32
    return %c0_i32, %c0_i32_0, %c0_i32_1 : i32, i32, i32
  }
  func.func @transform_16(%arg0: i32) -> (i32, i32, i32) {
    %c0_i32 = arith.constant 0 : i32
    %c0_i32_0 = arith.constant 0 : i32
    %c0_i32_1 = arith.constant 0 : i32
    return %arg0, %c0_i32, %c0_i32_0 : i32, i32, i32
  }
  func.func @transform_17(%arg0: i32) -> (i32, i32, i32) {
    %c0_i32 = arith.constant 0 : i32
    %c0_i32_0 = arith.constant 0 : i32
    %c0_i32_1 = arith.constant 0 : i32
    return %arg0, %c0_i32, %c0_i32_0 : i32, i32, i32
  }
}

</mosaic_0001>

<bundles_post_ra>
// kernel: tpu_custom_call.1
= control target key start
LH: loop header
LB: loop body
LE: loop exit
PB: predicated region body
PF: predicated region fallthrough
CT: control target
= control target key end

     0   :  { %6 = vsyncpa [#allocation3], 0  ;;  %s128_s0 = inlined_call_operand.hbm [shape: f32[8,128], index: 0, kind: input, shape index: {}]   ;;  %s129_s1 = inlined_call_operand.hbm [shape: f32[8,128], index: 1, kind: output, shape index: {}]  }
   0x1   :  { %7 = vsyncpa [#allocation4], 0  ;;  %s91_s6 = smov [#allocation2]   ;;  %s43_s10 = scalar_lea.hbm %s128_s0, 128 }
   0x2   :  { %s14_s7 = sshll.u32 %s91_s6, 4  ;;  %p44_p0 = scmp.ne.s32.totalorder %s128_s0, %s43_s10  ;;  %s15_s7 = int_to_ptr.vmem [resolvable:$true] %s14_s7 }
   0x3   :  { %p47_p1 = scmp.lt.u32.totalorder %s43_s10, %s128_s0 }
   0x5   :  { %p49_p2 = pnand %p47_p1, %p44_p0 }
   0x7   :  { %52 = shalt.err (!%p49_p2)
}
   0x8   :  { %s53_s15 = scalar_lea.vmem %s15_s7, 128  ;;  %p58_p4 = scmp.lt.s32.totalorder %s15_s7, %s15_s7 }
   0x9   :  { %p54_p3 = scmp.ne.s32.totalorder %s15_s7, %s53_s15  ;;  %p59_p5 = scmp.lt.s32.totalorder %s53_s15, %s53_s15 }
   0xb   :  { %p60_p6 = por %p59_p5, %p58_p4 }
   0xd   :  { %p61_p7 = pnand %p60_p6, %p54_p3 }
   0xf   :  { %64 = shalt.err (!%p61_p7)
}
  0x10   :  { %17 = dma.hbm_to_vmem [thread:$0]  %s128_s0, 128, %s15_s7, [#allocation3]  }
  0x11   :  { %87 = dma.done.wait [#allocation3], 128  }
  0x12   :  { %88 = vsyncadd [#allocation3], 4294967168  ;;  %v21_v0 = vld [vmem:[#allocation2] sm:$0xff]  ;;  %s92_s18 = smov 3   ;;  %s93_s19 = smov [#allocation5]  }
  0x13   :  { %22 = vrot.lane.b32.xlu0 %v21_v0, %s92_s18  ;;  %s31_s20 = sshll.u32 %s93_s19, 4  ;;  %s32_s20 = int_to_ptr.vmem [resolvable:$true] %s31_s20 }
  0x14   :  { %s65_s21 = scalar_lea.vmem %s32_s20, 128  ;;  %p70_p9 = scmp.lt.s32.totalorder %s32_s20, %s32_s20 }
  0x15   :  { %p66_p8 = scmp.ne.s32.totalorder %s32_s20, %s65_s21  ;;  %p71_p10 = scmp.lt.s32.totalorder %s65_s21, %s65_s21 }
  0x17   :  { %p72_p11 = por %p71_p10, %p70_p9 }
  0x19   :  { %p73_p12 = pnand %p72_p11, %p66_p8 }
  0x85   :  { %v23_v1 = vpop.permute.xlu0 %22 }
  0x86   :  { %24 = vst [vmem:[#allocation5] sm:$0xff] %v23_v1 }
  0x87   :  { %76 = shalt.err (!%p73_p12)
}
  0x88   :  { %s77_s0 = scalar_lea.hbm %s129_s1, 128 }
  0x89   :  { %p78_p13 = scmp.ne.s32.totalorder %s129_s1, %s77_s0  ;;  %p81_p0 = scmp.lt.u32.totalorder %s77_s0, %s129_s1 }
  0x8b   :  { %p83_p1 = pnand %p81_p0, %p78_p13 }
  0x8d   :  { %86 = shalt.err (!%p83_p1)
}
  0x8e   :  { %34 = dma.vmem_to_hbm [thread:$0]  %s32_s20, 128, %s129_s1, [#allocation4]  }
  0x8f   :  { %89 = dma.done.wait [#allocation4], 128  }
  0x90   :  { %90 = vsyncadd [#allocation4], 4294967168 }
  0x91   :  { %38 = vsyncpa [#allocation3], 1 }
  0x92   :  { %39 = vsyncpa [#allocation4], 1 }

// kernel: tpu_custom_call.1
= control target key start
LH: loop header
LB: loop body
LE: loop exit
PB: predicated region body
PF: predicated region fallthrough
CT: control target
= control target key end

     0   :  { %s6971_s0 = inlined_call_operand.hbm [shape: f32[2,8,128], index: 0, kind: input, shape index: {}, may-alias: {0,16}]   ;;  %s6972_s1 = inlined_call_operand.vmem [shape: f32[2,1,128], index: 1, kind: input, shape index: {}]   ;;  %s6973_s2 = inlined_call_operand.vmem [shape: f32[3,2,1,128], index: 2, kind: input, shape index: {}]   ;;  %s6974_s3 = inlined_call_operand.vmem [shape: f32[2,8,4], index: 3, kind: input, shape index: {}]   ;;  %s6975_s4 = inlined_call_operand.vmem [shape: f32[2,8,4], index: 4, kind: input, shape index: {}]   ;;  %s6976_s5 = inlined_call_operand.vmem [shape: f32[2,8,1], index: 5, kind: input, shape index: {}]   ;;  %s6977_s6 = inlined_call_operand.vmem [shape: f32[2,32,4], index: 6, kind: input, shape index: {}]   ;;  %s6978_s7 = inlined_call_operand.vmem [shape: f32[2,32,1], index: 7, kind: input, shape index: {}]   ;;  %s6979_s8 = inlined_call_operand.vmem [shape: f32[2,3,64,96], index: 8, kind: input, shape index: {}]   ;;  %s6980_s9 = inlined_call_operand.vmem [shape: f32[2,3,64,1], index: 9, kind: input, shape index: {}]   ;;  %s6981_s10 = inlined_call_operand.vmem [shape: f32[2,2,64,32], index: 10, kind: input, shape index: {}]   ;;  %s6982_s11 = inlined_call_operand.vmem [shape: f32[2,2,64,1], index: 11, kind: input, shape index: {}]   ;;  %s6983_s12 = inlined_call_operand.vmem [shape: f32[2,32,32], index: 12, kind: input, shape index: {}]   ;;  %s6984_s13 = inlined_call_operand.vmem [shape: f32[2,32,1], index: 13, kind: input, shape index: {}]   ;;  %s6985_s14 = inlined_call_operand.vmem [shape: f32[2,8,32], index: 14, kind: input, shape index: {}]   ;;  %s6986_s15 = inlined_call_operand.vmem [shape: f32[2,8,1], index: 15, kind: input, shape index: {}]   ;;  %s6987_s16 = inlined_call_operand.hbm [shape: f32[2,8,128], index: 16, kind: output, shape index: {0}, may-alias: {0,16}]   ;;  %s6988_s17 = inlined_call_operand.hbm [shape: f32[2,1,128], index: 17, kind: output, shape index: {1}]  }
   0x1   :  { %7012 = sst [smem:[#allocation15_spill]] %s6971_s0 }
   0x2   :  { %7013 = sst [smem:[#allocation16_spill]] %s6972_s1 }
   0x3   :  { %7014 = sst [smem:[#allocation17_spill]] %s6973_s2 }
   0x4   :  { %7015 = sst [smem:[#allocation18_spill]] %s6974_s3 }
   0x5   :  { %7016 = sst [smem:[#allocation19_spill]] %s6975_s4 }
   0x6   :  { %7017 = sst [smem:[#allocation20_spill]] %s6976_s5 }
   0x7   :  { %7018 = sst [smem:[#allocation21_spill]] %s6985_s14 }
   0x8   :  { %7019 = sst [smem:[#allocation22_spill]] %s6987_s16 }
   0x9   :  { %7020 = sst [smem:[#allocation23_spill]] %s6988_s17 }
   0xa   :  { %23 = vsyncpa [#allocation3], 0 }
   0xb   :  { %25 = vsyncpa [#allocation3 + $0x1], 0 }
   0xc   :  { %26 = vsyncpa [#allocation4], 0 }
   0xd   :  { %28 = vsyncpa [#allocation4 + $0x1], 0 }
   0xe   :  { %29 = vsyncpa [#allocation7], 0 }
   0xf   :  { %31 = vsyncpa [#allocation7 + $0x1], 0  ;;  %s5770_s24 = smov 0   ;;  %s5772_s25 = smov 0  }
  0x10   :  { %s5774_s26 = smov 0   ;;  %s5776_s27 = smov 0  }
  0x11 LB: > { %7021 = sst [smem:[#allocation11_spill]] %s5653_s24  ;;  %s5791_s28 = sadd.s32 4294967295, %s5665_s27   ;;  %s5665_s27 = sphi %s5776_s27, %s7056_s27   ;;  %s5661_s26 = sphi %s5774_s26, %s7060_s26   ;;  %s5657_s25 = sphi %s5772_s25, %s7059_s25   ;;  %s5653_s24 = sphi %s5770_s24, %s7058_s24  }
  0x12   : > { %s4182_s29 = sadd.s32 4294967294, %s5665_s27   ;;  %s5795_s0 = sadd.s32 1, %s5665_s27  }
  0x13   : > { %7022 = sst [smem:[#allocation12_spill]] %s5795_s0  ;;  %s44_s30 = sadd.s32 1, %s5661_s26 }
  0x14   : > { %s41_s18 = ssub.s32 %s5665_s27, %s5795_s0  ;;  %p51_p0 = scmp.ne.s32.totalorder %s5661_s26, %s5657_s25 }
  0x15   : > { %p42_p1 = scmp.eq.s32.totalorder %s41_s18, 0  ;;  %p52_p2 = scmp.eq.s32.totalorder %s5665_s27, 0 }
  0x16   : > { %p57_p3 = scmp.ne.s32.totalorder %s5657_s25, %s5653_s24  ;;  %p58_p4 = scmp.eq.s32.totalorder %s5791_s28, 0 }
  0x17   : > { %s5807_s19 = scalar_select %p42_p1, %s5661_s26, %s44_s30  }
  0x18   : > { %p5809_p5 = por %p52_p2, %p51_p0  ;;  %p5813_p6 = por %p58_p4, %p57_p3 }
  0x19   : > { %7023 = sst [smem:[#allocation13_spill]] %s5807_s19  ;;  %p401_p7 = scmp.eq.s32.totalorder %s5791_s28, 1 }
  0x1a   : > { %p407_p8 = scmp.eq.s32.totalorder %s4182_s29, 1  ;;  %p5335_p10 = scmp.lt.s32.totalorder %s5665_s27, 2 }
  0x1b   : > { %p5820_p11 = por %p401_p7, %p51_p0  ;;  %s495_s23 = sand.u32 1, %s5661_s26  }
  0x1c   : > { %p5824_p12 = por %p407_p8, %p57_p3  ;;  %s4186_s30 = sshll.u32 %s5665_s27, 7 }
  0x1d   : > { %s7026_s21 = scalar_select %p5820_p11, 1, 0 }
  0x1e   : > { %s7028_s22 = scalar_select %p5824_p12, 1, 0 }
  0x1f   : > { %7027 = sst [smem:[#allocation14_spill]] %s7026_s21  ;;  %s4185_s18 = sshll.u32 %s495_s23, 3 }
  0x20   : > { %s7029_s24 = sld [smem:[#allocation15_spill]]  ;;  %s499_s29 = scalar_lea.vmem [#allocation2], %s4185_s18 }
  0x21   : > { %s506_s14 = sshll.u32 %s499_s29, 4  ;;  %p5837_p13 = pnand %p5335_p10, %p5809_p5  ;;  %s5841_s14 = int_to_ptr.vmem [resolvable:$true] %s506_s14 }
  0x22   : > { %s496_s0 = scalar_lea.sflag [#allocation3], %s495_s23 }
  0x23   : > { %p5539_p3 = pneg %p5837_p13 }
  0x26   : > { %s7030_s16 = smov %s7029_s24  ;;  %s5833_s17 = scalar_lea.hbm %s7029_s24, %s4186_s30 }
  0x27   : > { %s5537_s24 = scalar_lea.hbm %s5833_s17, 128  ;;  %s5542_s30 = scalar_lea.hbm %s7030_s16, 256 }
  0x28   : > { %p5538_p2 = scmp.ne.s32.totalorder %s5833_s17, %s5537_s24  ;;  %p5543_p5 = scmp.lt.u32.totalorder %s5833_s17, %s7030_s16 }
  0x29   : > { %p5544_p8 = scmp.lt.u32.totalorder %s5542_s30, %s5537_s24  ;;  %p5546_p9 = scmp.lt.u32.totalorder %s5537_s24, %s5833_s17 }
  0x2a   : > { %p5540_p4 = pnand %p5539_p3, %p5538_p2 }
  0x2b   : > { %p5545_p10 = por %p5544_p8, %p5543_p5 }
  0x2c   : > { %p5541_p7 = pneg %p5540_p4 }
  0x2d   : > { %p5547_p0 = por %p5546_p9, %p5545_p10 }
  0x2f   : > { %p5548_p1 = pnand %p5547_p0, %p5541_p7 }
  0x31   : > { %5551 = shalt.err (!%p5548_p1)
}
  0x32   : > { %s5552_s23 = scalar_lea.vmem %s5841_s14, 128  ;;  %s5667_s19 = smov [#allocation2]  }
  0x33   : > { %p5553_p2 = scmp.ne.s32.totalorder %s5841_s14, %s5552_s23  ;;  %s5557_s1 = sshll.u32 %s5667_s19, 4  ;;  %s5558_s1 = int_to_ptr.vmem [resolvable:$false] %s5557_s1 }
  0x34   : > { %s5559_s18 = scalar_lea.vmem %s5558_s1, 256  ;;  %p5560_p11 = scmp.lt.s32.totalorder %s5841_s14, %s5558_s1 }
  0x35   : > { %p5555_p4 = pnand %p5553_p2, %p5539_p3  ;;  %p5561_p5 = scmp.lt.s32.totalorder %s5559_s18, %s5552_s23 }
  0x37   : > { %p5556_p12 = pneg %p5555_p4  ;;  %p5562_p8 = por %p5561_p5, %p5560_p11 }
  0x39   : > { %p5563_p9 = pnand %p5562_p8, %p5556_p12 }
  0x3b   : > { %5566 = shalt.err (!%p5563_p9)
}
  0x3c   : > { %5327 = dma.hbm_to_vmem [thread:$0]  (!%p5837_p13), %s5833_s17, 128, %s5841_s14, %s496_s0  }
  0x3d   : > { %p7032_p0 = scmp.lt.s32.totalorder %s5665_s27, 3  ;;  %p7033_p1 = scmp.ge.s32.totalorder %s5665_s27, 1 }
  0x3f   : > { %p518_p3 = pnand %p7033_p1, %p7032_p0 }
  0x40   : > { %s5875_s24 = sand.u32 (!%p518_p3), 1, %s5657_s25  }
  0x41   : > { %521 = sbr.rel (%p518_p3) target bundleno = 5225 (0x1469), region = 84  ;;  %s6999_s30 = sshll.u32 (!%p518_p3), %s5875_s24, 3 }
  0x42   : > { %s524_s29 = scalar_lea.sflag (!%p518_p3), [#allocation3], %s5875_s24  ;;  %s527_s21 = scalar_lea.vmem (!%p518_p3), [#allocation2], %s6999_s30 }
  0x48   : > { %5640 = dma.done.wait (%p5813_p6), %s524_s29, 128  }
  0x49   : > { %5642 = vsyncadd (%p5813_p6), %s524_s29, 4294967168  ;;  %v5668_v0 = vmov 0.0   ;;  %vm5669_vm0 = vmmov 0   ;;  %v5670_v1 = vmov 0   ;;  %vm597_vm1 = vcmask 1043456   ;;  %s7034_s4 = sld [smem:[#allocation19_spill]] }
  0x4a   : > { %4700 = vmatprep.subr.mxu1 %v5668_v0  ;;  %4702 = vmatprep.mubr.msk.f32.mxu1 %vm5669_vm0, %v5668_v0  ;;  %vm593_vm2 = vcmask 31744   ;;  %v590_v2 = vld [vmem:[%s527_s21 + $0x4] sm:$0xf]  ;;  %v589_v4 = vld [vmem:[%s527_s21] sm:$0xf]  ;;  %s7035_s5 = sld [smem:[#allocation20_spill]] }
  0x4b   : > { %5379 = vset.pattern.permute.xlu0 %v5670_v1  ;;  %5380 = vset.pattern.permute.xlu1 %v5670_v1  ;;  %s7036_s3 = sld [smem:[#allocation18_spill]]  ;;  %v765_v7 = vld [vmem:[%s6978_s7] sm:$0xff]  ;;  %v768_v8 = vld [vmem:[%s6978_s7 + $0x18] sm:$0xff]  ;;  %v766_v10 = vld [vmem:[%s6978_s7 + $0x8] sm:$0xff]  ;;  %p585_p6 = scmp.lt.s32.totalorder %s5791_s28, 1  ;;  %vm1000_vm3 = vcmask 785408  }
  0x4c   : > { %4701 = vmatpush3.msk.msra.mxu1 %vm597_vm1, %v590_v2  ;;  %v761_v9 = vld [vmem:[%s6977_s6] sm:$0xff]  ;;  %776 = vperm.xlu1 %5380, %v766_v10   ;;  %v767_v11 = vld [vmem:[%s6978_s7 + $0x10] sm:$0xff]  ;;  %s7037_s21 = sld [smem:[#allocation16_spill]]  ;;  %v762_v21 = vld [vmem:[%s6977_s6 + $0x8] sm:$0xff]  ;;  %s7002_s18 = smov 1   ;;  %vm1218_vm4 = vcmask 261120  }
  0x4d   : > { %4705 = vmatprep.subr.mxu1 %v5668_v0  ;;  %4712 = vmatprep.mubr.msk.f32.mxu0 %vm593_vm2, %v761_v9  ;;  %s586_s1 = scalar_select %p585_p6, %s5791_s28, 1  ;;  %v763_v22 = vld [vmem:[%s6977_s6 + $0x10] sm:$0xff]  ;;  %v764_v23 = vld [vmem:[%s6977_s6 + $0x18] sm:$0xff]  ;;  %v957_v40 = vld [vmem:[%s6980_s9 + $0x28] sm:$0xff] }
  0x4e   : > { %s7000_s29 = smov 127   ;;  %v944_v41 = vld [vmem:[%s6979_s8] sm:$0xff]  ;;  %v959_v43 = vld [vmem:[%s6980_s9 + $0x38] sm:$0xff]  ;;  %v958_v44 = vld [vmem:[%s6980_s9 + $0x30] sm:$0xff]  ;;  %s7038_s2 = sld [smem:[#allocation17_spill]] }
  0x4f   : > { %v592_v3 = vld [vmem:[%s7034_s4] sm:$0xff]  ;;  %v953_v45 = vld [vmem:[%s6980_s9 + $0x8] sm:$0xff]  ;;  %v955_v47 = vld [vmem:[%s6980_s9 + $0x18] sm:$0xff]  ;;  %s7006_s0 = smov 2   ;;  %s7010_s19 = smov 4  }
  0x50   : > { %v747_v5 = vld [vmem:[%s7035_s5] sm:$0xff]  ;;  %4703 = vmatmul.mubr.msk.f32.vlgmr.msra.gmra.mrb[0].mxu1 %vm593_vm2, %v592_v3  ;;  %781 = vperm.xlu1 %5380, %v767_v11   ;;  %v954_v48 = vld [vmem:[%s6980_s9 + $0x10] sm:$0xff]  ;;  %v1171_v49 = vld [vmem:[%s6982_s11 + $0x8] sm:$0xff]  ;;  %s7008_s30 = smov 124   ;;  %s7045_s17 = smov 124  }
  0x51   : > { %4706 = vmatpush3.msk.msra.mxu1 %vm597_vm1, %v589_v4  ;;  %4707 = vmatprep.mubr.msk.f32.mxu1 %vm5669_vm0, %v5668_v0  ;;  %v591_v6 = vld [vmem:[%s7036_s3] sm:$0xff]  ;;  %v1173_v51 = vld [vmem:[%s6982_s11 + $0x18] sm:$0xff]  ;;  %v1172_v52 = vld [vmem:[%s6982_s11 + $0x10] sm:$0xff]  ;;  %s584_s20 = scalar_lea.vmem [#allocation6], %s5875_s24 }
  0x52   : > { %750 = vperm.xlu0 %5379, %v747_v5   ;;  %s5925_s14 = scalar_lea.vmem %s7037_s21, %s586_s1  ;;  %v956_v42 = vld [vmem:[%s6980_s9 + $0x20] sm:$0xff]  ;;  %s7004_s1 = smov 126  }
  0x53   : > { %v5928_v18 = vld [vmem:[%s5925_s14] ss:$0 sm:$0xff]  ;;  %s7044_s21 = smov 4  }
  0x54   : > { %4708 = vmatmul.mubr.msk.f32.vlgmr.msra.gmra.mrb[2].mxu1 %vm593_vm2, %v591_v6  ;;  %v952_v46 = vld [vmem:[%s6980_s9] sm:$0xff] }
  0x55   : > { %4742 = vmatprep.mubr.msk.f32.mxu1 %vm1000_vm3, %v944_v41  ;;  %v1170_v50 = vld [vmem:[%s6982_s11] sm:$0xff] }
  0x56   : > { %771 = vperm.xlu0 %5379, %v765_v7   ;;  %v4200_v53 = vld [vmem:[%s7038_s2] ss:$0 sm:$0xff]  ;;  %v4202_v4 = vld [vmem:[%s7038_s2 + $0x1] ss:$0 sm:$0xff] }
  0x5a   : > { %786 = vperm.xlu0 %5379, %v768_v8  }
  0xcb   : > { %v777_v25 = vpop.permute.xlu1 %776 }
  0xcf   : > { %v782_v34 = vpop.permute.xlu1 %781 }
  0xd1   : > { %v751_v17 = vpop.permute.xlu0 %750 }
  0xd5   : > { %v772_v24 = vpop.permute.xlu0 %771 }
  0xd9   : > { %v787_v31 = vpop.permute.xlu0 %786 }
 0x123   : > { %v667_v12 = vpop.f32.mrb[0].mxu1 }
 0x124   : > { %v4704_v13 = vpop.f32.mrb[1].mxu1 }
 0x127   : > { %v743_v14 = vpop.f32.mrb[2].mxu1 }
 0x128   : > { %v744_v15 = vadd.f32 %v743_v14, %v667_v12  ;;  %v4709_v16 = vpop.f32.mrb[3].mxu1  ;;  %v945_v14 = vld [vmem:[%s6979_s8 + $0x8] sm:$0xff] }
 0x129   : > { %v947_v16 = vld [vmem:[%s6979_s8 + $0x18] sm:$0xff] }
 0x12a   : > { %v753_v19 = vadd.f32 %v751_v17, %v744_v15  ;;  %v946_v15 = vld [vmem:[%s6979_s8 + $0x10] sm:$0xff]  ;;  %v948_v17 = vld [vmem:[%s6979_s8 + $0x20] sm:$0xff] }
 0x12c   : > { %v5931_v20 = vmul.f32 %v5928_v18, %v753_v19  ;;  %v949_v19 = vld [vmem:[%s6979_s8 + $0x28] sm:$0xff] }
 0x12e   : > { %4710 = vmatprep.subr.msk.mxu0 %vm597_vm1, %v5931_v20 }
 0x12f   : > { %4711 = vmatpush3.msk.msra.mxu0 %vm597_vm1, %v5931_v20 }
 0x130   : > { %4713 = vmatmul.mubr.msk.f32.vlgmr.msra.gmra.mrb[0].mxu0 %vm593_vm2, %v762_v21  ;;  %v950_v21 = vld [vmem:[%s6979_s8 + $0x30] sm:$0xff] }
 0x131   : > { %4715 = vmatprep.mubr.msk.f32.mxu0 %vm593_vm2, %v763_v22  ;;  %v951_v22 = vld [vmem:[%s6979_s8 + $0x38] sm:$0xff] }
 0x134   : > { %4716 = vmatmul.mubr.msk.f32.gmra.mrb[2].mxu0 %vm593_vm2, %v764_v23  ;;  %v1162_v23 = vld [vmem:[%s6981_s10] sm:$0xff] }
 0x135   : > { %4762 = vmatprep.mubr.msk.f32.mxu0 %vm1218_vm4, %v1162_v23 }
 0x203   : > { %v4714_v26 = vpop.f32.mrb[0].mxu0 }
 0x204   : > { %v876_v27 = vadd.f32 %v4714_v26, %v777_v25  ;;  %v870_v28 = vpop.f32.mrb[1].mxu0 }
 0x205   : > { %v871_v29 = vadd.f32 %v870_v28, %v772_v24 }
 0x206   : > { %v5950_v30 = vmul.f32 %v5928_v18, %v876_v27 }
 0x207   : > { %v5953_v32 = vmul.f32 %v5928_v18, %v871_v29  ;;  %v4717_v33 = vpop.f32.mrb[2].mxu0 }
 0x208   : > { %v886_v35 = vadd.f32 %v4717_v33, %v787_v31  ;;  %899 = vrot.lane.b32.xlu0 %v5950_v30, %s7002_s18  ;;  %v880_v36 = vpop.f32.mrb[3].mxu0 }
 0x209   : > { %v881_v37 = vadd.f32 %v880_v36, %v782_v34  ;;  %897 = vrot.lane.b32.xlu1 %v5953_v32, %s7002_s18  ;;  %v5090_v3 = vpack.c.bf16 %v5950_v30, %v5953_v32 }
 0x20a   : > { %v5960_v38 = vmul.f32 %v5928_v18, %v886_v35 }
 0x20b   : > { %v5963_v39 = vmul.f32 %v5928_v18, %v881_v37 }
 0x20c   : > { %903 = vrot.lane.b32.xlu0 %v5960_v38, %s7002_s18 }
 0x20d   : > { %901 = vrot.lane.b32.xlu1 %v5963_v39, %s7002_s18  ;;  %v5094_v7 = vpack.c.bf16 %v5960_v38, %v5963_v39  ;;  %s7047_s18 = sld [smem:[#allocation23_spill]] }
 0x210   : > { %922 = vrot.lane.b32.xlu0 %v5950_v30, %s7000_s29 }
 0x211   : > { %920 = vrot.lane.b32.xlu1 %v5953_v32, %s7000_s29 }
 0x214   : > { %926 = vrot.lane.b32.xlu0 %v5960_v38, %s7000_s29 }
 0x215   : > { %924 = vrot.lane.b32.xlu1 %v5963_v39, %s7000_s29  ;;  %s7039_s29 = sld [smem:[#allocation21_spill]] }
 0x218   : > { %987 = vperm.xlu0 %5379, %v957_v40  }
 0x219   : > { %982 = vperm.xlu1 %5380, %v956_v42  }
 0x21c   : > { %997 = vperm.xlu0 %5379, %v959_v43  }
 0x21d   : > { %992 = vperm.xlu1 %5380, %v958_v44  }
 0x220   : > { %967 = vperm.xlu0 %5379, %v953_v45  }
 0x221   : > { %962 = vperm.xlu1 %5380, %v952_v46  }
 0x224   : > { %977 = vperm.xlu0 %5379, %v955_v47  }
 0x225   : > { %972 = vperm.xlu1 %5380, %v954_v48  }
 0x228   : > { %1185 = vperm.xlu0 %5379, %v1171_v49  }
 0x229   : > { %1180 = vperm.xlu1 %5380, %v1170_v50  }
 0x22c   : > { %1195 = vperm.xlu0 %5379, %v1173_v51  }
 0x22d   : > { %1190 = vperm.xlu1 %5380, %v1172_v52  }
 0x27a   : > { %v900_v54 = vpop.permute.xlu0 %899 }
 0x27b   : > { %v917_v55 = vmul.f32 %v4200_v53, %v900_v54  ;;  %v898_v56 = vpop.permute.xlu1 %897 }
 0x27c   : > { %v916_v57 = vmul.f32 %v4200_v53, %v898_v56 }
 0x27e   : > { %v5082_v58 = vpack.c.bf16 %v917_v55, %v916_v57  ;;  %v904_v59 = vpop.permute.xlu0 %903 }
 0x27f   : > { %v919_v60 = vmul.f32 %v4200_v53, %v904_v59  ;;  %v902_v61 = vpop.permute.xlu1 %901 }
 0x280   : > { %v918_v62 = vmul.f32 %v4200_v53, %v902_v61  ;;  %5083 = vmatprep.subr.bf16.mxu1 %v5082_v58 }
 0x281   : > { %5085 = vmatpush3.bf16.msra.mxu1 %v5082_v58 }
 0x282   : > { %v5086_v63 = vpack.c.bf16 %v919_v60, %v918_v62  ;;  %v923_v1 = vpop.permute.xlu0 %922 }
 0x283   : > { %v921_v2 = vpop.permute.xlu1 %920  ;;  %v941_v5 = vmul.f32 %v4202_v4, %v923_v1 }
 0x284   : > { %5087 = vmatprep.subr.bf16.mxu1 %v5086_v63  ;;  %v940_v6 = vmul.f32 %v4202_v4, %v921_v2 }
 0x285   : > { %5089 = vmatpush3.bf16.msra.mxu1 %v5086_v63 }
 0x286   : > { %5091 = vmatprep.subr.bf16.mxu1 %v5090_v3  ;;  %v927_v8 = vpop.permute.xlu0 %926  ;;  %v5098_v10 = vpack.c.bf16 %v941_v5, %v940_v6 }
 0x287   : > { %v925_v9 = vpop.permute.xlu1 %924  ;;  %v943_v11 = vmul.f32 %v4202_v4, %v927_v8 }
 0x288   : > { %v942_v12 = vmul.f32 %v4202_v4, %v925_v9 }
 0x289   : > { %5093 = vmatpush3.bf16.msra.mxu1 %v5090_v3 }
 0x28a   : > { %5095 = vmatprep.subr.bf16.mxu1 %v5094_v7  ;;  %v5102_v13 = vpack.c.bf16 %v943_v11, %v942_v12 }
 0x28d   : > { %5097 = vmatpush3.bf16.msra.mxu1 %v5094_v7 }
 0x28e   : > { %5099 = vmatprep.subr.bf16.mxu1 %v5098_v10 }
 0x291   : > { %5101 = vmatpush3.bf16.msra.mxu1 %v5098_v10 }
 0x292   : > { %5103 = vmatprep.subr.bf16.mxu1 %v5102_v13 }
 0x295   : > { %5105 = vmatpush3.bf16.msra.mxu1 %v5102_v13 }
 0x297   : > { %v988_v27 = vpop.permute.xlu0 %987 }
 0x298   : > { %4743 = vmatmul.mubr.msk.f32.vlgmr.msra.gmra.mrb[4].mxu1 %vm1000_vm3, %v945_v14  ;;  %v983_v29 = vpop.permute.xlu1 %982 }
 0x299   : > { %4745 = vmatprep.mubr.msk.f32.mxu1 %vm1000_vm3, %v946_v15  ;;  %v1163_v15 = vld [vmem:[%s6981_s10 + $0x8] sm:$0xff] }
 0x29b   : > { %v998_v36 = vpop.permute.xlu0 %997 }
 0x29c   : > { %4746 = vmatmul.mubr.msk.f32.gmra.mrb[6].mxu1 %vm1000_vm3, %v947_v16  ;;  %v993_v40 = vpop.permute.xlu1 %992  ;;  %v1164_v16 = vld [vmem:[%s6981_s10 + $0x10] sm:$0xff] }
 0x29d   : > { %4748 = vmatprep.mubr.msk.f32.mxu1 %vm1000_vm3, %v948_v17  ;;  %v1165_v17 = vld [vmem:[%s6981_s10 + $0x18] sm:$0xff] }
 0x29f   : > { %v968_v48 = vpop.permute.xlu0 %967 }
 0x2a0   : > { %4749 = vmatmul.mubr.msk.f32.gmra.mrb[8].mxu1 %vm1000_vm3, %v949_v19  ;;  %v963_v49 = vpop.permute.xlu1 %962 }
 0x2a1   : > { %4751 = vmatprep.mubr.msk.f32.mxu1 %vm1000_vm3, %v950_v21 }
 0x2a3   : > { %v978_v53 = vpop.permute.xlu0 %977 }
 0x2a4   : > { %4752 = vmatmul.mubr.msk.f32.gmra.mrb[10].mxu1 %vm1000_vm3, %v951_v22  ;;  %v973_v55 = vpop.permute.xlu1 %972 }
 0x2a7   : > { %v1186_v19 = vpop.permute.xlu0 %1185 }
 0x2a8   : > { %v1181_v21 = vpop.permute.xlu1 %1180 }
 0x36b   : > { %v4744_v24 = vpop.f32.mrb[4].mxu1 }
 0x36c   : > { %v1091_v25 = vpop.f32.mrb[5].mxu1  ;;  %v1097_v50 = vadd.f32 %v4744_v24, %v968_v48  ;;  %v4241_v48 = vld [vmem:[%s6980_s9 + $0x70] sm:$0xff] }
 0x36d   : > { %v1092_v51 = vadd.f32 %v1091_v25, %v963_v49  ;;  %v4236_v49 = vld [vmem:[%s6980_s9 + $0x48] sm:$0xff] }
 0x36f   : > { %v4747_v26 = vpop.f32.mrb[6].mxu1 }
 0x370   : > { %v1101_v28 = vpop.f32.mrb[7].mxu1  ;;  %v1107_v56 = vadd.f32 %v4747_v26, %v978_v53  ;;  %v4264_v53 = vld [vmem:[%s6982_s11 + $0x48] sm:$0xff] }
 0x371   : > { %v1102_v58 = vadd.f32 %v1101_v28, %v973_v55  ;;  %v4266_v55 = vld [vmem:[%s6982_s11 + $0x58] sm:$0xff] }
 0x373   : > { %v4750_v31 = vpop.f32.mrb[8].mxu1 }
 0x374   : > { %v1117_v33 = vadd.f32 %v4750_v31, %v988_v27  ;;  %v1111_v34 = vpop.f32.mrb[9].mxu1  ;;  %v1196_v27 = vpop.permute.xlu0 %1195 }
 0x375   : > { %v1112_v35 = vadd.f32 %v1111_v34, %v983_v29  ;;  %v1191_v31 = vpop.permute.xlu1 %1190 }
 0x376   : > { %v4212_v37 = vmul.f32 -1.442695, %v1117_v33 }
 0x377   : > { %v4211_v41 = vmul.f32 -1.442695, %v1112_v35  ;;  %v4753_v42 = vpop.f32.mrb[10].mxu1 }
 0x378   : > { %5381 = vpow2.f32 %v4212_v37  ;;  %v1127_v43 = vadd.f32 %v4753_v42, %v998_v36  ;;  %v1121_v44 = vpop.f32.mrb[11].mxu1  ;;  %v1168_v42 = vld [vmem:[%s6981_s10 + $0x30] sm:$0xff] }
 0x379   : > { %5383 = vpow2.f32 %v4211_v41  ;;  %v1122_v45 = vadd.f32 %v1121_v44, %v993_v40  ;;  %v4240_v44 = vld [vmem:[%s6980_s9 + $0x68] sm:$0xff] }
 0x37a   : > { %v4214_v46 = vmul.f32 -1.442695, %v1127_v43  ;;  %v1169_v43 = vld [vmem:[%s6981_s10 + $0x38] sm:$0xff] }
 0x37b   : > { %v4213_v47 = vmul.f32 -1.442695, %v1122_v45  ;;  %v4227_v45 = vld [vmem:[%s6979_s8 + $0x40] sm:$0xff] }
 0x37c   : > { %5385 = vpow2.f32 %v4214_v46  ;;  %v4239_v46 = vld [vmem:[%s6980_s9 + $0x60] sm:$0xff] }
 0x37d   : > { %5387 = vpow2.f32 %v4213_v47  ;;  %v4242_v47 = vld [vmem:[%s6980_s9 + $0x78] sm:$0xff] }
 0x37e   : > { %5389 = vtanh.f32 %v1097_v50  ;;  %v4235_v50 = vld [vmem:[%s6980_s9 + $0x40] sm:$0xff] }
 0x37f   : > { %5391 = vtanh.f32 %v1092_v51  ;;  %v4238_v51 = vld [vmem:[%s6980_s9 + $0x58] sm:$0xff] }
 0x382   : > { %v5382_v52 = vpop.eup %5381 }
 0x383   : > { %v5384_v54 = vpop.eup %5383  ;;  %v1147_v57 = vadd.f32 1.0, %v5382_v52  ;;  %v4237_v52 = vld [vmem:[%s6980_s9 + $0x50] sm:$0xff] }
 0x384   : > { %v1146_v59 = vadd.f32 1.0, %v5384_v54  ;;  %v4263_v54 = vld [vmem:[%s6982_s11 + $0x40] sm:$0xff] }
 0x385   : > { %5393 = vrcp.f32 %v1147_v57  ;;  %v4224_v57 = vld [vmem:[%s7038_s2 + $0x2] ss:$0 sm:$0xff] }
 0x386   : > { %v5386_v60 = vpop.eup %5385  ;;  %5395 = vrcp.f32 %v1146_v59 }
 0x387   : > { %v5388_v61 = vpop.eup %5387  ;;  %5397 = vtanh.f32 %v1107_v56  ;;  %v1149_v62 = vadd.f32 1.0, %v5386_v60  ;;  %v4265_v56 = vld [vmem:[%s6982_s11 + $0x50] sm:$0xff] }
 0x388   : > { %5399 = vtanh.f32 %v1102_v58  ;;  %v1148_v63 = vadd.f32 1.0, %v5388_v61  ;;  %v5390_v1 = vpop.eup %5389 }
 0x389   : > { %5401 = vrcp.f32 %v1149_v62  ;;  %v5392_v2 = vpop.eup %5391 }
 0x38a   : > { %5403 = vrcp.f32 %v1148_v63 }
 0x38f   : > { %v5394_v3 = vpop.eup %5393 }
 0x390   : > { %v5396_v4 = vpop.eup %5395  ;;  %v1159_v5 = vmul.f32 %v5394_v3, %v5390_v1 }
 0x391   : > { %v5398_v6 = vpop.eup %5397  ;;  %v1158_v7 = vmul.f32 %v5396_v4, %v5392_v2 }
 0x392   : > { %v5400_v8 = vpop.eup %5399 }
 0x393   : > { %v5402_v9 = vpop.eup %5401  ;;  %v5106_v10 = vpack.c.bf16 %v1159_v5, %v1158_v7 }
 0x394   : > { %v5404_v11 = vpop.eup %5403  ;;  %v1161_v12 = vmul.f32 %v5402_v9, %v5398_v6 }
 0x395   : > { %5107 = vmatprep.subr.bf16.mxu0 %v5106_v10  ;;  %v1160_v13 = vmul.f32 %v5404_v11, %v5400_v8  ;;  %v4226_v8 = vld [vmem:[%s7038_s2 + $0x3] ss:$0 sm:$0xff] }
 0x396   : > { %5109 = vmatpush3.bf16.msra.mxu0 %v5106_v10 }
 0x397   : > { %v5110_v14 = vpack.c.bf16 %v1161_v12, %v1160_v13 }
 0x399   : > { %5111 = vmatprep.subr.bf16.mxu0 %v5110_v14 }
 0x39a   : > { %5113 = vmatpush3.bf16.msra.mxu0 %v5110_v14 }
 0x39d   : > { %4763 = vmatmul.mubr.msk.f32.vlgmr.msra.gmra.mrb[4].mxu0 %vm1218_vm4, %v1163_v15 }
 0x39e   : > { %4765 = vmatprep.mubr.msk.f32.mxu0 %vm1218_vm4, %v1164_v16 }
 0x3a1   : > { %4766 = vmatmul.mubr.msk.f32.gmra.mrb[6].mxu0 %vm1218_vm4, %v1165_v17 }
 0x470   : > { %v4764_v22 = vpop.f32.mrb[4].mxu0 }
 0x471   : > { %v1315_v23 = vadd.f32 %v4764_v22, %v1186_v19  ;;  %v1309_v24 = vpop.f32.mrb[5].mxu0  ;;  %v4228_v19 = vld [vmem:[%s6979_s8 + $0x48] sm:$0xff]  ;;  %v4230_v22 = vld [vmem:[%s6979_s8 + $0x58] sm:$0xff] }
 0x472   : > { %v1310_v25 = vadd.f32 %v1309_v24, %v1181_v21  ;;  %v4229_v21 = vld [vmem:[%s6979_s8 + $0x50] sm:$0xff]  ;;  %v4232_v24 = vld [vmem:[%s6979_s8 + $0x68] sm:$0xff] }
 0x473   : > { %v1349_v26 = vadd.f32 %v1315_v23, %v5950_v30  ;;  %v4231_v23 = vld [vmem:[%s6979_s8 + $0x60] sm:$0xff] }
 0x474   : > { %v1348_v28 = vadd.f32 %v1310_v25, %v5953_v32  ;;  %v4767_v29 = vpop.f32.mrb[6].mxu0  ;;  %v4233_v25 = vld [vmem:[%s6979_s8 + $0x70] sm:$0xff] }
 0x475   : > { %v6074_v33 = vmul.f32 %v5928_v18, %v1349_v26  ;;  %v1325_v34 = vadd.f32 %v4767_v29, %v1196_v27  ;;  %v1319_v35 = vpop.f32.mrb[7].mxu0  ;;  %v4234_v26 = vld [vmem:[%s6979_s8 + $0x78] sm:$0xff]  ;;  %v4255_v27 = vld [vmem:[%s6981_s10 + $0x40] sm:$0xff] }
 0x476   : > { %v6077_v36 = vmul.f32 %v5928_v18, %v1348_v28  ;;  %v1320_v37 = vadd.f32 %v1319_v35, %v1191_v31 }
 0x477   : > { %v1351_v40 = vadd.f32 %v1325_v34, %v5960_v38  ;;  %1366 = vrot.lane.b32.xlu0 %v6074_v33, %s7006_s0  ;;  %v1166_v38 = vld [vmem:[%s6981_s10 + $0x20] sm:$0xff] }
 0x478   : > { %v1350_v30 = vadd.f32 %v1320_v37, %v5963_v39  ;;  %1364 = vrot.lane.b32.xlu1 %v6077_v36, %s7006_s0  ;;  %v1167_v39 = vld [vmem:[%s6981_s10 + $0x28] sm:$0xff]  ;;  %4768 = vmatprep.mubr.msk.f32.mxu0 %vm1218_vm4, %v1166_v38  ;;  %v5122_v7 = vpack.c.bf16 %v6074_v33, %v6077_v36 }
 0x479   : > { %v6086_v32 = vmul.f32 %v5928_v18, %v1351_v40  ;;  %4769 = vmatmul.mubr.msk.f32.gmra.mrb[8].mxu0 %vm1218_vm4, %v1167_v39 }
 0x47a   : > { %v6089_v41 = vmul.f32 %v5928_v18, %v1350_v30  ;;  %4771 = vmatprep.mubr.msk.f32.mxu0 %vm1218_vm4, %v1168_v42 }
 0x47b   : > { %1370 = vrot.lane.b32.xlu0 %v6086_v32, %s7006_s0 }
 0x47c   : > { %1368 = vrot.lane.b32.xlu1 %v6089_v41, %s7006_s0  ;;  %v5126_v11 = vpack.c.bf16 %v6086_v32, %v6089_v41  ;;  %s7040_s0 = smov 1  }
 0x47d   : > { %4772 = vmatmul.mubr.msk.f32.gmra.mrb[10].mxu0 %vm1218_vm4, %v1169_v43 }
 0x47e   : > { %4798 = vmatprep.mubr.msk.f32.mxu0 %vm1000_vm3, %v4227_v45 }
 0x47f   : > { %1390 = vrot.lane.b32.xlu0 %v6074_v33, %s7004_s1 }
 0x480   : > { %1388 = vrot.lane.b32.xlu1 %v6077_v36, %s7004_s1 }
 0x483   : > { %1394 = vrot.lane.b32.xlu0 %v6086_v32, %s7004_s1 }
 0x484   : > { %1392 = vrot.lane.b32.xlu1 %v6089_v41, %s7004_s1  ;;  %s7041_s1 = smov 127  }
 0x487   : > { %1457 = vperm.xlu0 %5379, %v4240_v44  }
 0x488   : > { %1452 = vperm.xlu1 %5380, %v4239_v46  }
 0x48b   : > { %1467 = vperm.xlu0 %5379, %v4242_v47  }
 0x48c   : > { %1462 = vperm.xlu1 %5380, %v4241_v48  }
 0x48f   : > { %1437 = vperm.xlu0 %5379, %v4236_v49  }
 0x490   : > { %1432 = vperm.xlu1 %5380, %v4235_v50  }
 0x493   : > { %1447 = vperm.xlu0 %5379, %v4238_v51  }
 0x494   : > { %1442 = vperm.xlu1 %5380, %v4237_v52  }
 0x497   : > { %1656 = vperm.xlu0 %5379, %v4264_v53  }
 0x498   : > { %1651 = vperm.xlu1 %5380, %v4263_v54  }
 0x49b   : > { %1666 = vperm.xlu0 %5379, %v4266_v55  }
 0x49c   : > { %1661 = vperm.xlu1 %5380, %v4265_v56  }
 0x4e9   : > { %v1367_v58 = vpop.permute.xlu0 %1366 }
 0x4ea   : > { %v1385_v59 = vmul.f32 %v4224_v57, %v1367_v58  ;;  %v1365_v60 = vpop.permute.xlu1 %1364 }
 0x4eb   : > { %v1384_v61 = vmul.f32 %v4224_v57, %v1365_v60 }
 0x4ed   : > { %v5114_v62 = vpack.c.bf16 %v1385_v59, %v1384_v61  ;;  %v1371_v63 = vpop.permute.xlu0 %1370 }
 0x4ee   : > { %v1387_v1 = vmul.f32 %v4224_v57, %v1371_v63  ;;  %v1369_v2 = vpop.permute.xlu1 %1368 }
 0x4ef   : > { %v1386_v3 = vmul.f32 %v4224_v57, %v1369_v2  ;;  %5115 = vmatprep.subr.bf16.mxu0 %v5114_v62 }
 0x4f0   : > { %5117 = vmatpush3.bf16.msra.mxu0 %v5114_v62 }
 0x4f1   : > { %v5118_v4 = vpack.c.bf16 %v1387_v1, %v1386_v3  ;;  %v1391_v5 = vpop.permute.xlu0 %1390 }
 0x4f2   : > { %v1389_v6 = vpop.permute.xlu1 %1388  ;;  %v1409_v9 = vmul.f32 %v4226_v8, %v1391_v5 }
 0x4f3   : > { %5119 = vmatprep.subr.bf16.mxu0 %v5118_v4  ;;  %v1408_v10 = vmul.f32 %v4226_v8, %v1389_v6 }
 0x4f4   : > { %5121 = vmatpush3.bf16.msra.mxu0 %v5118_v4 }
 0x4f5   : > { %5123 = vmatprep.subr.bf16.mxu0 %v5122_v7  ;;  %v1395_v12 = vpop.permute.xlu0 %1394  ;;  %v5130_v14 = vpack.c.bf16 %v1409_v9, %v1408_v10 }
 0x4f6   : > { %v1393_v13 = vpop.permute.xlu1 %1392  ;;  %v1411_v15 = vmul.f32 %v4226_v8, %v1395_v12 }
 0x4f7   : > { %v1410_v16 = vmul.f32 %v4226_v8, %v1393_v13 }
 0x4f8   : > { %5125 = vmatpush3.bf16.msra.mxu0 %v5122_v7 }
 0x4f9   : > { %5127 = vmatprep.subr.bf16.mxu0 %v5126_v11  ;;  %v5134_v17 = vpack.c.bf16 %v1411_v15, %v1410_v16 }
 0x4fc   : > { %5129 = vmatpush3.bf16.msra.mxu0 %v5126_v11 }
 0x4fd   : > { %5131 = vmatprep.subr.bf16.mxu0 %v5130_v14 }
 0x500   : > { %5133 = vmatpush3.bf16.msra.mxu0 %v5130_v14 }
 0x501   : > { %5135 = vmatprep.subr.bf16.mxu0 %v5134_v17 }
 0x504   : > { %5137 = vmatpush3.bf16.msra.mxu0 %v5134_v17 }
 0x506   : > { %v1458_v34 = vpop.permute.xlu0 %1457 }
 0x507   : > { %4799 = vmatmul.mubr.msk.f32.vlgmr.msra.gmra.mrb[12].mxu0 %vm1000_vm3, %v4228_v19  ;;  %v1453_v37 = vpop.permute.xlu1 %1452 }
 0x508   : > { %4801 = vmatprep.mubr.msk.f32.mxu0 %vm1000_vm3, %v4229_v21  ;;  %v4256_v21 = vld [vmem:[%s6981_s10 + $0x48] sm:$0xff] }
 0x50a   : > { %v1468_v42 = vpop.permute.xlu0 %1467 }
 0x50b   : > { %4802 = vmatmul.mubr.msk.f32.gmra.mrb[14].mxu0 %vm1000_vm3, %v4230_v22  ;;  %v1463_v44 = vpop.permute.xlu1 %1462  ;;  %v4257_v22 = vld [vmem:[%s6981_s10 + $0x50] sm:$0xff] }
 0x50c   : > { %4804 = vmatprep.mubr.msk.f32.mxu0 %vm1000_vm3, %v4231_v23  ;;  %v4258_v23 = vld [vmem:[%s6981_s10 + $0x58] sm:$0xff] }
 0x50e   : > { %v1438_v52 = vpop.permute.xlu0 %1437 }
 0x50f   : > { %4805 = vmatmul.mubr.msk.f32.gmra.mrb[16].mxu0 %vm1000_vm3, %v4232_v24  ;;  %v1433_v53 = vpop.permute.xlu1 %1432 }
 0x510   : > { %4807 = vmatprep.mubr.msk.f32.mxu0 %vm1000_vm3, %v4233_v25 }
 0x512   : > { %v1448_v57 = vpop.permute.xlu0 %1447 }
 0x513   : > { %4808 = vmatmul.mubr.msk.f32.gmra.mrb[18].mxu0 %vm1000_vm3, %v4234_v26  ;;  %v1443_v59 = vpop.permute.xlu1 %1442 }
 0x514   : > { %4818 = vmatprep.mubr.msk.f32.mxu0 %vm1218_vm4, %v4255_v27 }
 0x516   : > { %v1657_v24 = vpop.permute.xlu0 %1656 }
 0x517   : > { %v1652_v25 = vpop.permute.xlu1 %1651 }
 0x5da   : > { %v4800_v28 = vpop.f32.mrb[12].mxu0 }
 0x5db   : > { %v1560_v29 = vpop.f32.mrb[13].mxu0  ;;  %v1566_v54 = vadd.f32 %v4800_v28, %v1438_v52  ;;  %v4294_v52 = vld [vmem:[%s6980_s9 + $0x98] sm:$0xff] }
 0x5dc   : > { %v1561_v55 = vadd.f32 %v1560_v29, %v1433_v53  ;;  %v4293_v53 = vld [vmem:[%s6980_s9 + $0x90] sm:$0xff] }
 0x5de   : > { %v4803_v31 = vpop.f32.mrb[14].mxu0 }
 0x5df   : > { %v1570_v35 = vpop.f32.mrb[15].mxu0  ;;  %v1576_v60 = vadd.f32 %v4803_v31, %v1448_v57  ;;  %v4267_v57 = vld [vmem:[%s6982_s11 + $0x60] sm:$0xff] }
 0x5e0   : > { %v1571_v62 = vadd.f32 %v1570_v35, %v1443_v59  ;;  %v1176_v59 = vld [vmem:[%s6982_s11 + $0x30] sm:$0xff] }
 0x5e2   : > { %v4806_v40 = vpop.f32.mrb[16].mxu0 }
 0x5e3   : > { %v1586_v30 = vadd.f32 %v4806_v40, %v1458_v34  ;;  %v1580_v38 = vpop.f32.mrb[17].mxu0  ;;  %v1667_v34 = vpop.permute.xlu0 %1666 }
 0x5e4   : > { %v1581_v39 = vadd.f32 %v1580_v38, %v1453_v37  ;;  %v1662_v40 = vpop.permute.xlu1 %1661 }
 0x5e5   : > { %v4252_v43 = vmul.f32 -1.442695, %v1586_v30 }
 0x5e6   : > { %v4251_v45 = vmul.f32 -1.442695, %v1581_v39  ;;  %v4809_v46 = vpop.f32.mrb[18].mxu0 }
 0x5e7   : > { %5405 = vpow2.f32 %v4252_v43  ;;  %v1596_v47 = vadd.f32 %v4809_v46, %v1468_v42  ;;  %v1590_v48 = vpop.f32.mrb[19].mxu0 }
 0x5e8   : > { %5407 = vpow2.f32 %v4251_v45  ;;  %v1591_v49 = vadd.f32 %v1590_v48, %v1463_v44  ;;  %v4298_v48 = vld [vmem:[%s6980_s9 + $0xb8] sm:$0xff] }
 0x5e9   : > { %v4254_v50 = vmul.f32 -1.442695, %v1596_v47 }
 0x5ea   : > { %v4253_v51 = vmul.f32 -1.442695, %v1591_v49  ;;  %v4297_v49 = vld [vmem:[%s6980_s9 + $0xb0] sm:$0xff] }
 0x5eb   : > { %5409 = vpow2.f32 %v4254_v50  ;;  %v4292_v50 = vld [vmem:[%s6980_s9 + $0x88] sm:$0xff] }
 0x5ec   : > { %5411 = vpow2.f32 %v4253_v51  ;;  %v4291_v51 = vld [vmem:[%s6980_s9 + $0x80] sm:$0xff] }
 0x5ed   : > { %5413 = vtanh.f32 %v1566_v54  ;;  %v1175_v54 = vld [vmem:[%s6982_s11 + $0x28] sm:$0xff] }
 0x5ee   : > { %5415 = vtanh.f32 %v1561_v55  ;;  %v1174_v55 = vld [vmem:[%s6982_s11 + $0x20] sm:$0xff] }
 0x5f1   : > { %v5406_v56 = vpop.eup %5405 }
 0x5f2   : > { %v5408_v58 = vpop.eup %5407  ;;  %v1616_v61 = vadd.f32 1.0, %v5406_v56  ;;  %v4268_v56 = vld [vmem:[%s6982_s11 + $0x68] sm:$0xff] }
 0x5f3   : > { %v1615_v63 = vadd.f32 1.0, %v5408_v58  ;;  %v1177_v58 = vld [vmem:[%s6982_s11 + $0x38] sm:$0xff] }
 0x5f4   : > { %5417 = vrcp.f32 %v1616_v61  ;;  %v4269_v61 = vld [vmem:[%s6982_s11 + $0x70] sm:$0xff] }
 0x5f5   : > { %v5410_v1 = vpop.eup %5409  ;;  %5419 = vrcp.f32 %v1615_v63  ;;  %v2206_v63 = vld [vmem:[%s6984_s13] sm:$0xff] }
 0x5f6   : > { %v5412_v2 = vpop.eup %5411  ;;  %5421 = vtanh.f32 %v1576_v60  ;;  %v1618_v3 = vadd.f32 1.0, %v5410_v1  ;;  %v4270_v60 = vld [vmem:[%s6982_s11 + $0x78] sm:$0xff] }
 0x5f7   : > { %5423 = vtanh.f32 %v1571_v62  ;;  %v1617_v4 = vadd.f32 1.0, %v5412_v2  ;;  %v5414_v5 = vpop.eup %5413  ;;  %v2207_v62 = vld [vmem:[%s6984_s13 + $0x8] sm:$0xff]  ;;  %v2209_v1 = vld [vmem:[%s6984_s13 + $0x18] sm:$0xff]  ;;  %v2208_v2 = vld [vmem:[%s6984_s13 + $0x10] sm:$0xff] }
 0x5f8   : > { %5425 = vrcp.f32 %v1618_v3  ;;  %v5416_v6 = vpop.eup %5415  ;;  %v4322_v3 = vld [vmem:[%s7035_s5 + $0x8] sm:$0xff] }
 0x5f9   : > { %5427 = vrcp.f32 %v1617_v4  ;;  %v2239_v4 = vld [vmem:[%s6986_s15] sm:$0xff] }
 0x5fe   : > { %v5418_v7 = vpop.eup %5417 }
 0x5ff   : > { %v5420_v8 = vpop.eup %5419  ;;  %v1628_v9 = vmul.f32 %v5418_v7, %v5414_v5  ;;  %v4328_v5 = vld [vmem:[%s6978_s7 + $0x28] sm:$0xff]  ;;  %v4330_v7 = vld [vmem:[%s6978_s7 + $0x38] sm:$0xff] }
 0x600   : > { %v5422_v10 = vpop.eup %5421  ;;  %v1627_v11 = vmul.f32 %v5420_v8, %v5416_v6  ;;  %v4327_v6 = vld [vmem:[%s6978_s7 + $0x20] sm:$0xff]  ;;  %v4329_v8 = vld [vmem:[%s6978_s7 + $0x30] sm:$0xff] }
 0x601   : > { %v5424_v12 = vpop.eup %5423 }
 0x602   : > { %v5426_v13 = vpop.eup %5425  ;;  %v5138_v14 = vpack.c.bf16 %v1628_v9, %v1627_v11  ;;  %v4280_v9 = vld [vmem:[%s7038_s2 + $0x4] ss:$0 sm:$0xff] }
 0x603   : > { %v5428_v15 = vpop.eup %5427  ;;  %v1630_v16 = vmul.f32 %v5426_v13, %v5422_v10 }
 0x604   : > { %5139 = vmatprep.subr.bf16.mxu0 %v5138_v14  ;;  %v1629_v17 = vmul.f32 %v5428_v15, %v5424_v12 }
 0x605   : > { %5141 = vmatpush3.bf16.msra.mxu0 %v5138_v14 }
 0x606   : > { %v5142_v19 = vpack.c.bf16 %v1630_v16, %v1629_v17 }
 0x608   : > { %5143 = vmatprep.subr.bf16.mxu0 %v5142_v19 }
 0x609   : > { %5145 = vmatpush3.bf16.msra.mxu0 %v5142_v19 }
 0x60c   : > { %4819 = vmatmul.mubr.msk.f32.vlgmr.msra.gmra.mrb[20].mxu0 %vm1218_vm4, %v4256_v21 }
 0x60d   : > { %4821 = vmatprep.mubr.msk.f32.mxu0 %vm1218_vm4, %v4257_v22 }
 0x610   : > { %4822 = vmatmul.mubr.msk.f32.gmra.mrb[22].mxu0 %vm1218_vm4, %v4258_v23 }
 0x6df   : > { %v4820_v26 = vpop.f32.mrb[20].mxu0 }
 0x6e0   : > { %v1785_v27 = vadd.f32 %v4820_v26, %v1657_v24  ;;  %v1779_v28 = vpop.f32.mrb[21].mxu0  ;;  %v4282_v24 = vld [vmem:[%s7038_s2 + $0x5] ss:$0 sm:$0xff] }
 0x6e1   : > { %v1780_v29 = vadd.f32 %v1779_v28, %v1652_v25 }
 0x6e2   : > { %v1819_v31 = vadd.f32 %v1785_v27, %v6074_v33 }
 0x6e3   : > { %v1818_v35 = vadd.f32 %v1780_v29, %v6077_v36  ;;  %v4823_v37 = vpop.f32.mrb[22].mxu0 }
 0x6e4   : > { %v1795_v30 = vadd.f32 %v4823_v37, %v1667_v34  ;;  %v1789_v38 = vpop.f32.mrb[23].mxu0  ;;  %v1823_v39 = vmul.f32 %v5928_v18, %v1819_v31  ;;  %v4284_v37 = vld [vmem:[%s6979_s8 + $0x88] sm:$0xff] }
 0x6e5   : > { %v1790_v42 = vadd.f32 %v1789_v38, %v1662_v40  ;;  %v1822_v43 = vmul.f32 %v5928_v18, %v1818_v35  ;;  %v4285_v40 = vld [vmem:[%s6979_s8 + $0x90] sm:$0xff]  ;;  %v4287_v38 = vld [vmem:[%s6979_s8 + $0xa0] sm:$0xff] }
 0x6e6   : > { %v1821_v44 = vadd.f32 %v1795_v30, %v6086_v32  ;;  %1836 = vrot.lane.b32.xlu0 %v1823_v39, %s7010_s19  ;;  %v4296_v32 = vld [vmem:[%s6980_s9 + $0xa8] sm:$0xff]  ;;  %v4286_v30 = vld [vmem:[%s6979_s8 + $0x98] sm:$0xff] }
 0x6e7   : > { %v1820_v45 = vadd.f32 %v1790_v42, %v6089_v41  ;;  %1834 = vrot.lane.b32.xlu1 %v1822_v43, %s7010_s19  ;;  %v6221_v33 = vpack.c.bf16 %v1823_v39, %v1822_v43  ;;  %v4295_v41 = vld [vmem:[%s6980_s9 + $0xa0] sm:$0xff]  ;;  %v4289_v42 = vld [vmem:[%s6979_s8 + $0xb0] sm:$0xff] }
 0x6e8   : > { %v1825_v36 = vmul.f32 %v5928_v18, %v1821_v44  ;;  %v4259_v44 = vld [vmem:[%s6981_s10 + $0x60] sm:$0xff] }
 0x6e9   : > { %v1824_v46 = vmul.f32 %v5928_v18, %v1820_v45  ;;  %v4283_v18 = vld [vmem:[%s6979_s8 + $0x80] sm:$0xff]  ;;  %v4260_v45 = vld [vmem:[%s6981_s10 + $0x68] sm:$0xff]  ;;  %4824 = vmatprep.mubr.msk.f32.mxu0 %vm1218_vm4, %v4259_v44 }
 0x6ea   : > { %1840 = vrot.lane.b32.xlu0 %v1825_v36, %s7010_s19  ;;  %4854 = vmatprep.mubr.msk.f32.mxu1 %vm1000_vm3, %v4283_v18 }
 0x6eb   : > { %1838 = vrot.lane.b32.xlu1 %v1824_v46, %s7010_s19  ;;  %v6227_v47 = vpack.c.bf16 %v1825_v36, %v1824_v46  ;;  %4825 = vmatmul.mubr.msk.f32.gmra.mrb[8].mxu0 %vm1218_vm4, %v4260_v45  ;;  %s7042_s19 = smov 2  }
 0x6ee   : > { %1860 = vrot.lane.b32.xlu0 %v1823_v39, %s7008_s30  ;;  %v4288_v39 = vld [vmem:[%s6979_s8 + $0xa8] sm:$0xff] }
 0x6ef   : > { %1858 = vrot.lane.b32.xlu1 %v1822_v43, %s7008_s30  ;;  %v4290_v43 = vld [vmem:[%s6979_s8 + $0xb8] sm:$0xff] }
 0x6f2   : > { %1864 = vrot.lane.b32.xlu0 %v1825_v36, %s7008_s30  ;;  %v4262_v36 = vld [vmem:[%s6981_s10 + $0x78] sm:$0xff] }
 0x6f3   : > { %1862 = vrot.lane.b32.xlu1 %v1824_v46, %s7008_s30  ;;  %v2101_v46 = vld [vmem:[%s6983_s12] sm:$0xff] }
 0x6f6   : > { %1927 = vperm.xlu0 %5379, %v4296_v32  }
 0x6f7   : > { %1922 = vperm.xlu1 %5380, %v4295_v41  }
 0x6fa   : > { %1937 = vperm.xlu0 %5379, %v4298_v48  }
 0x6fb   : > { %1932 = vperm.xlu1 %5380, %v4297_v49  }
 0x6fe   : > { %1907 = vperm.xlu0 %5379, %v4292_v50  }
 0x6ff   : > { %1902 = vperm.xlu1 %5380, %v4291_v51  }
 0x702   : > { %1917 = vperm.xlu0 %5379, %v4294_v52  }
 0x703   : > { %1912 = vperm.xlu1 %5380, %v4293_v53  }
 0x706   : > { %1205 = vperm.xlu0 %5379, %v1175_v54  }
 0x707   : > { %1200 = vperm.xlu1 %5380, %v1174_v55  }
 0x70a   : > { %1676 = vperm.xlu0 %5379, %v4268_v56  }
 0x70b   : > { %1671 = vperm.xlu1 %5380, %v4267_v57  }
 0x70e   : > { %1215 = vperm.xlu0 %5379, %v1177_v58  }
 0x70f   : > { %1210 = vperm.xlu1 %5380, %v1176_v59  }
 0x712   : > { %1686 = vperm.xlu0 %5379, %v4270_v60  }
 0x713   : > { %1681 = vperm.xlu1 %5380, %v4269_v61  }
 0x716   : > { %2217 = vperm.xlu0 %5379, %v2207_v62  }
 0x717   : > { %2212 = vperm.xlu1 %5380, %v2206_v63  }
 0x71a   : > { %2227 = vperm.xlu0 %5379, %v2209_v1  }
 0x71b   : > { %2222 = vperm.xlu1 %5380, %v2208_v2  }
 0x71e   : > { %2495 = vperm.xlu0 %5379, %v4322_v3  }
 0x71f   : > { %2242 = vperm.xlu1 %5380, %v2239_v4  }
 0x722   : > { %2517 = vperm.xlu0 %5379, %v4328_v5  }
 0x723   : > { %2512 = vperm.xlu1 %5380, %v4327_v6  }
 0x726   : > { %2527 = vperm.xlu0 %5379, %v4330_v7  }
 0x727   : > { %2522 = vperm.xlu1 %5380, %v4329_v8  }
 0x758   : > { %v1837_v10 = vpop.permute.xlu0 %1836 }
 0x759   : > { %v1855_v11 = vmul.f32 %v4280_v9, %v1837_v10  ;;  %v1835_v12 = vpop.permute.xlu1 %1834 }
 0x75a   : > { %v1854_v13 = vmul.f32 %v4280_v9, %v1835_v12 }
 0x75c   : > { %v5146_v14 = vpack.c.bf16 %v1855_v11, %v1854_v13  ;;  %v1841_v15 = vpop.permute.xlu0 %1840 }
 0x75d   : > { %v1857_v16 = vmul.f32 %v4280_v9, %v1841_v15  ;;  %v1839_v17 = vpop.permute.xlu1 %1838 }
 0x75e   : > { %v1856_v19 = vmul.f32 %v4280_v9, %v1839_v17  ;;  %5147 = vmatprep.subr.bf16.mxu1 %v5146_v14 }
 0x75f   : > { %5149 = vmatpush3.bf16.msra.mxu1 %v5146_v14 }
 0x760   : > { %v5150_v21 = vpack.c.bf16 %v1857_v16, %v1856_v19  ;;  %v1861_v22 = vpop.permute.xlu0 %1860 }
 0x761   : > { %v1859_v23 = vpop.permute.xlu1 %1858  ;;  %v1879_v25 = vmul.f32 %v4282_v24, %v1861_v22 }
 0x762   : > { %5151 = vmatprep.subr.bf16.mxu1 %v5150_v21  ;;  %v1878_v26 = vmul.f32 %v4282_v24, %v1859_v23 }
 0x763   : > { %5153 = vmatpush3.bf16.msra.mxu1 %v5150_v21 }
 0x764   : > { %5155 = vmatprep.subr.bf16.mxu1 %v6221_v33  ;;  %v1865_v27 = vpop.permute.xlu0 %1864  ;;  %v5162_v29 = vpack.c.bf16 %v1879_v25, %v1878_v26 }
 0x765   : > { %v1863_v28 = vpop.permute.xlu1 %1862  ;;  %v1881_v31 = vmul.f32 %v4282_v24, %v1865_v27 }
 0x766   : > { %v1880_v34 = vmul.f32 %v4282_v24, %v1863_v28 }
 0x767   : > { %5157 = vmatpush3.bf16.msra.mxu1 %v6221_v33  ;;  %v4261_v33 = vld [vmem:[%s6981_s10 + $0x70] sm:$0xff] }
 0x768   : > { %5159 = vmatprep.subr.bf16.mxu1 %v6227_v47  ;;  %v5166_v35 = vpack.c.bf16 %v1881_v31, %v1880_v34  ;;  %4827 = vmatprep.mubr.msk.f32.mxu0 %vm1218_vm4, %v4261_v33 }
 0x769   : > { %4828 = vmatmul.mubr.msk.f32.gmra.mrb[10].mxu0 %vm1218_vm4, %v4262_v36 }
 0x76a   : > { %4874 = vmatprep.mubr.msk.f32.mxu0 %vm1218_vm4, %v2101_v46 }
 0x76b   : > { %5161 = vmatpush3.bf16.msra.mxu1 %v6227_v47 }
 0x76c   : > { %5163 = vmatprep.subr.bf16.mxu1 %v5162_v29 }
 0x76f   : > { %5165 = vmatpush3.bf16.msra.mxu1 %v5162_v29 }
 0x770   : > { %5167 = vmatprep.subr.bf16.mxu1 %v5166_v35 }
 0x773   : > { %5169 = vmatpush3.bf16.msra.mxu1 %v5166_v35 }
 0x775   : > { %v1928_v41 = vpop.permute.xlu0 %1927 }
 0x776   : > { %4855 = vmatmul.mubr.msk.f32.vlgmr.msra.gmra.mrb[12].mxu1 %vm1000_vm3, %v4284_v37  ;;  %v1923_v49 = vpop.permute.xlu1 %1922  ;;  %v2102_v37 = vld [vmem:[%s6983_s12 + $0x8] sm:$0xff] }
 0x777   : > { %4857 = vmatprep.mubr.msk.f32.mxu1 %vm1000_vm3, %v4285_v40  ;;  %v2103_v40 = vld [vmem:[%s6983_s12 + $0x10] sm:$0xff] }
 0x779   : > { %v1938_v54 = vpop.permute.xlu0 %1937 }
 0x77a   : > { %4858 = vmatmul.mubr.msk.f32.gmra.mrb[14].mxu1 %vm1000_vm3, %v4286_v30  ;;  %v1933_v56 = vpop.permute.xlu1 %1932  ;;  %v2104_v30 = vld [vmem:[%s6983_s12 + $0x18] sm:$0xff] }
 0x77b   : > { %4860 = vmatprep.mubr.msk.f32.mxu1 %vm1000_vm3, %v4287_v38  ;;  %v5677_v38 = vmov 0.0|0.0  }
 0x77c   : > { %5178 = vmatprep.subr.bf16.mxu1 %v5677_v38 }
 0x77d   : > { %v1908_v1 = vpop.permute.xlu0 %1907 }
 0x77e   : > { %4861 = vmatmul.mubr.msk.f32.gmra.mrb[16].mxu1 %vm1000_vm3, %v4288_v39  ;;  %v1903_v2 = vpop.permute.xlu1 %1902 }
 0x77f   : > { %4863 = vmatprep.mubr.msk.f32.mxu1 %vm1000_vm3, %v4289_v42 }
 0x781   : > { %v1918_v6 = vpop.permute.xlu0 %1917 }
 0x782   : > { %4864 = vmatmul.mubr.msk.f32.gmra.mrb[18].mxu1 %vm1000_vm3, %v4290_v43  ;;  %v1913_v8 = vpop.permute.xlu1 %1912 }
 0x783   : > { %4888 = vmatprep.mubr.msk.f32.mxu1 %vm5669_vm0, %v5668_v0 }
 0x785   : > { %v1206_v39 = vpop.permute.xlu0 %1205 }
 0x786   : > { %v1201_v42 = vpop.permute.xlu1 %1200 }
 0x789   : > { %v1677_v43 = vpop.permute.xlu0 %1676 }
 0x78a   : > { %v1672_v44 = vpop.permute.xlu1 %1671 }
 0x78d   : > { %v1216_v45 = vpop.permute.xlu0 %1215 }
 0x78e   : > { %v1211_v33 = vpop.permute.xlu1 %1210 }
 0x791   : > { %v1687_v36 = vpop.permute.xlu0 %1686 }
 0x792   : > { %v1682_v46 = vpop.permute.xlu1 %1681 }
 0x849   : > { %v4856_v47 = vpop.f32.mrb[12].mxu1 }
 0x84a   : > { %v2030_v32 = vpop.f32.mrb[13].mxu1  ;;  %v2036_v3 = vadd.f32 %v4856_v47, %v1908_v1  ;;  %v5286_v47 = vadd.f32 %v1677_v43, %v1206_v39 }
 0x84b   : > { %v2031_v4 = vadd.f32 %v2030_v32, %v1903_v2  ;;  %v5288_v32 = vadd.f32 %v1672_v44, %v1201_v42 }
 0x84d   : > { %v4859_v18 = vpop.f32.mrb[14].mxu1 }
 0x84e   : > { %v2040_v48 = vpop.f32.mrb[15].mxu1  ;;  %v2046_v9 = vadd.f32 %v4859_v18, %v1918_v6  ;;  %v2218_v18 = vpop.permute.xlu0 %2217 }
 0x84f   : > { %v2041_v11 = vadd.f32 %v2040_v48, %v1913_v8  ;;  %v2213_v48 = vpop.permute.xlu1 %2212  ;;  %v2238_v8 = vld [vmem:[%s7039_s29] sm:$0xff] }
 0x851   : > { %v4862_v50 = vpop.f32.mrb[16].mxu1 }
 0x852   : > { %v2056_v51 = vadd.f32 %v4862_v50, %v1928_v41  ;;  %v2050_v52 = vpop.f32.mrb[17].mxu1 }
 0x853   : > { %v2051_v53 = vadd.f32 %v2050_v52, %v1923_v49  ;;  %v5290_v52 = vadd.f32 %v1687_v36, %v1216_v45  ;;  %v2223_v1 = vpop.permute.xlu1 %2222 }
 0x854   : > { %v4308_v55 = vmul.f32 -1.442695, %v2056_v51 }
 0x855   : > { %v4307_v57 = vmul.f32 -1.442695, %v2051_v53  ;;  %v4865_v58 = vpop.f32.mrb[18].mxu1 }
 0x856   : > { %5429 = vpow2.f32 %v4308_v55  ;;  %v2066_v59 = vadd.f32 %v4865_v58, %v1938_v54  ;;  %v2060_v60 = vpop.f32.mrb[19].mxu1  ;;  %v5292_v54 = vadd.f32 %v1682_v46, %v1211_v33 }
 0x857   : > { %5431 = vpow2.f32 %v4307_v57  ;;  %v2061_v61 = vadd.f32 %v2060_v60, %v1933_v56  ;;  %v6389_v57 = vld [vmem:[%s5925_s14] ss:$0 sm:$0xff] }
 0x858   : > { %v4310_v62 = vmul.f32 -1.442695, %v2066_v59 }
 0x859   : > { %v4309_v63 = vmul.f32 -1.442695, %v2061_v61  ;;  %v2228_v61 = vpop.permute.xlu0 %2227 }
 0x85a   : > { %5433 = vpow2.f32 %v4310_v62 }
 0x85b   : > { %5435 = vpow2.f32 %v4309_v63 }
 0x85c   : > { %5437 = vtanh.f32 %v2036_v3 }
 0x85d   : > { %5439 = vtanh.f32 %v2031_v4 }
 0x860   : > { %v5430_v5 = vpop.eup %5429 }
 0x861   : > { %v5432_v7 = vpop.eup %5431  ;;  %v2086_v10 = vadd.f32 1.0, %v5430_v5 }
 0x862   : > { %v2085_v12 = vadd.f32 1.0, %v5432_v7 }
 0x863   : > { %5441 = vrcp.f32 %v2086_v10 }
 0x864   : > { %v5434_v13 = vpop.eup %5433  ;;  %5443 = vrcp.f32 %v2085_v12 }
 0x865   : > { %v5436_v14 = vpop.eup %5435  ;;  %5445 = vtanh.f32 %v2046_v9  ;;  %v2088_v15 = vadd.f32 1.0, %v5434_v13  ;;  %v2243_v9 = vpop.permute.xlu1 %2242 }
 0x866   : > { %5447 = vtanh.f32 %v2041_v11  ;;  %v2087_v16 = vadd.f32 1.0, %v5436_v14  ;;  %v5438_v17 = vpop.eup %5437 }
 0x867   : > { %5449 = vrcp.f32 %v2088_v15  ;;  %v5440_v19 = vpop.eup %5439 }
 0x868   : > { %5451 = vrcp.f32 %v2087_v16 }
 0x86d   : > { %v5442_v21 = vpop.eup %5441 }
 0x86e   : > { %v5444_v22 = vpop.eup %5443  ;;  %v2098_v23 = vmul.f32 %v5442_v21, %v5438_v17  ;;  %v4317_v21 = vld [vmem:[%s7034_s4 + $0x8] sm:$0xff]  ;;  %s4050_s4 = scalar_lea.sflag [#allocation7], %s5875_s24 }
 0x86f   : > { %v5446_v24 = vpop.eup %5445  ;;  %v2097_v25 = vmul.f32 %v5444_v22, %v5440_v19  ;;  %v4316_v22 = vld [vmem:[%s7036_s3 + $0x8] sm:$0xff]  ;;  %s4075_s3 = sshll.u32 %s584_s20, 4  ;;  %s6887_s3 = int_to_ptr.vmem [resolvable:$true] %s4075_s3 }
 0x870   : > { %v5448_v26 = vpop.eup %5447  ;;  %s5567_s5 = scalar_lea.vmem %s6887_s3, 16 }
 0x871   : > { %v5450_v27 = vpop.eup %5449  ;;  %v5170_v28 = vpack.c.bf16 %v2098_v23, %v2097_v25  ;;  %v4323_v23 = vld [vmem:[%s6977_s6 + $0x20] sm:$0xff]  ;;  %p5568_p11 = scmp.ne.s32.totalorder %s6887_s3, %s5567_s5 }
 0x872   : > { %v5452_v29 = vpop.eup %5451  ;;  %v2100_v31 = vmul.f32 %v5450_v27, %v5446_v24 }
 0x873   : > { %5171 = vmatprep.subr.bf16.mxu0 %v5170_v28  ;;  %v2099_v34 = vmul.f32 %v5452_v29, %v5448_v26 }
 0x874   : > { %5173 = vmatpush3.bf16.msra.mxu0 %v5170_v28  ;;  %v2496_v28 = vpop.permute.xlu0 %2495 }
 0x875   : > { %v5174_v35 = vpack.c.bf16 %v2100_v31, %v2099_v34  ;;  %v4324_v34 = vld [vmem:[%s6977_s6 + $0x28] sm:$0xff] }
 0x877   : > { %5175 = vmatprep.subr.bf16.mxu0 %v5174_v35 }
 0x878   : > { %5177 = vmatpush3.bf16.msra.mxu0 %v5174_v35  ;;  %v4325_v35 = vld [vmem:[%s6977_s6 + $0x30] sm:$0xff] }
 0x87b   : > { %4875 = vmatmul.mubr.msk.f32.vlgmr.msra.gmra.mrb[8].mxu0 %vm1218_vm4, %v2102_v37  ;;  %v4326_v37 = vld [vmem:[%s6977_s6 + $0x38] sm:$0xff] }
 0x87c   : > { %4877 = vmatprep.mubr.msk.f32.mxu0 %vm1218_vm4, %v2103_v40  ;;  %v2518_v40 = vpop.permute.xlu0 %2517 }
 0x87f   : > { %4878 = vmatmul.mubr.msk.f32.gmra.mrb[10].mxu0 %vm1218_vm4, %v2104_v30  ;;  %v2513_v30 = vpop.permute.xlu1 %2512 }
 0x880   : > { %4903 = vmatprep.mubr.msk.f32.mxu0 %vm593_vm2, %v4323_v23  ;;  %v2528_v33 = vpop.permute.xlu0 %2527 }
 0x94e   : > { %v4876_v41 = vpop.f32.mrb[8].mxu0 }
 0x94f   : > { %v5287_v49 = vadd.f32 %v5286_v47, %v4876_v41  ;;  %v2183_v50 = vpop.f32.mrb[9].mxu0  ;;  %v2523_v47 = vpop.permute.xlu1 %2522 }
 0x950   : > { %v5289_v51 = vadd.f32 %v5288_v32, %v2183_v50  ;;  %v4349_v50 = vld [vmem:[%s6980_s9 + $0xe8] sm:$0xff] }
 0x951   : > { %v2231_v53 = vadd.f32 %v5287_v49, %v2218_v18 }
 0x952   : > { %v2230_v55 = vadd.f32 %v5289_v51, %v2213_v48  ;;  %v4879_v56 = vpop.f32.mrb[10].mxu0  ;;  %v4336_v51 = vld [vmem:[%s6979_s8 + $0xc0] sm:$0xff] }
 0x953   : > { %v2235_v58 = vmul.f32 %v6389_v57, %v2231_v53  ;;  %v5291_v59 = vadd.f32 %v5290_v52, %v4879_v56  ;;  %v2193_v60 = vpop.f32.mrb[11].mxu0  ;;  %v4348_v52 = vld [vmem:[%s6980_s9 + $0xe0] sm:$0xff]  ;;  %v4351_v53 = vld [vmem:[%s6980_s9 + $0xf8] sm:$0xff] }
 0x954   : > { %v2234_v62 = vmul.f32 %v6389_v57, %v2230_v55  ;;  %v5293_v63 = vadd.f32 %v5292_v54, %v2193_v60  ;;  %v4350_v54 = vld [vmem:[%s6980_s9 + $0xf0] sm:$0xff]  ;;  %v4345_v55 = vld [vmem:[%s6980_s9 + $0xc8] sm:$0xff]  ;;  %v4344_v56 = vld [vmem:[%s6980_s9 + $0xc0] sm:$0xff] }
 0x955   : > { %v2233_v2 = vadd.f32 %v5291_v59, %v2228_v61  ;;  %v4346_v59 = vld [vmem:[%s6980_s9 + $0xd0] sm:$0xff]  ;;  %v4373_v60 = vld [vmem:[%s6982_s11 + $0x88] sm:$0xff]  ;;  %v4372_v61 = vld [vmem:[%s6982_s11 + $0x80] sm:$0xff] }
 0x956   : > { %v5179_v3 = vpack.c.bf16 %v2235_v58, %v2234_v62  ;;  %v2232_v4 = vadd.f32 %v5293_v63, %v2223_v1  ;;  %v4347_v58 = vld [vmem:[%s6980_s9 + $0xd8] sm:$0xff]  ;;  %v4374_v63 = vld [vmem:[%s6982_s11 + $0x90] sm:$0xff] }
 0x957   : > { %v2237_v5 = vmul.f32 %v6389_v57, %v2233_v2  ;;  %v4375_v62 = vld [vmem:[%s6982_s11 + $0x98] sm:$0xff]  ;;  %v5530_v2 = vld [vmem:[%s7038_s2] ss:$0 sm:$0xff] }
 0x958   : > { %v2236_v6 = vmul.f32 %v6389_v57, %v2232_v4  ;;  %5180 = vmatpush3.bf16.msra.mxu1 %v5179_v3 }
 0x959   : > { %5181 = vmatprep.subr.bf16.mxu1 %v5677_v38 }
 0x95a   : > { %v5182_v7 = vpack.c.bf16 %v2237_v5, %v2236_v6 }
 0x95c   : > { %5183 = vmatpush3.bf16.msra.mxu1 %v5182_v7 }
 0x95d   : > { %4891 = vmatprep.subr.mxu1 %v5668_v0 }
 0x95f   : > { %4889 = vmatmul.mubr.msk.f32.vlgmr.msra.gmra.mrb[20].mxu1 %vm1218_vm4, %v2238_v8 }
 0x960   : > { %4893 = vmatprep.mubr.msk.f32.mxu1 %vm5669_vm0, %v5668_v0 }
 0xa32   : > { %v2314_v10 = vpop.f32.mrb[20].mxu1 }
 0xa33   : > { %v6403_v11 = vadd.f32 %v2314_v10, %v2243_v9  ;;  %v4890_v12 = vpop.f32.mrb[21].mxu1 }
 0xa35   : > { %v2318_v13 = vmul.f32 1.442695, %v6403_v11 }
 0xa37   : > { %5453 = vpow2.f32 %v2318_v13 }
 0xa41   : > { %v5454_v14 = vpop.eup %5453 }
 0xa42   : > { %v2320_v15 = vmul.f32 %v5454_v14, %v5931_v20 }
 0xa44   : > { %v2322_v16 = vrot.slane %v2320_v15, 4 }
 0xa46   : > { %v2324_v17 = vadd.f32 %v2322_v16, %v6403_v11  ;;  %v5531_v16 = vld [vmem:[%s7038_s2 + $0x1] ss:$0 sm:$0xff] }
 0xa48   : > { %v2325_v19 = vmul.f32 %v6389_v57, %v2324_v17 }
 0xa4a   : > { %4892 = vmatpush3.msk.msra.mxu1 %vm597_vm1, %v2325_v19 }
 0xa4b   : > { %4894 = vmatmul.mubr.msk.f32.vlgmr.msra.gmra.mrb[22].mxu1 %vm593_vm2, %v4317_v21  ;;  %4896 = vmatprep.subr.mxu1 %v5668_v0 }
 0xa4c   : > { %4897 = vmatpush3.msk.msra.mxu1 %vm597_vm1, %v5931_v20  ;;  %4898 = vmatprep.mubr.msk.f32.mxu1 %vm5669_vm0, %v5668_v0 }
 0xa4f   : > { %4899 = vmatmul.mubr.msk.f32.vlgmr.msra.gmra.mrb[24].mxu1 %vm593_vm2, %v4316_v22 }
 0xa50   : > { %4933 = vmatprep.mubr.msk.f32.mxu1 %vm1000_vm3, %v4336_v51 }
 0xb1e   : > { %v2414_v24 = vpop.f32.mrb[22].mxu1 }
 0xb1f   : > { %v4895_v25 = vpop.f32.mrb[23].mxu1 }
 0xb22   : > { %v2487_v26 = vpop.f32.mrb[24].mxu1 }
 0xb23   : > { %v2488_v27 = vadd.f32 %v2487_v26, %v2414_v24  ;;  %v4900_v20 = vpop.f32.mrb[25].mxu1 }
 0xb24   : > { %v4337_v20 = vld [vmem:[%s6979_s8 + $0xc8] sm:$0xff] }
 0xb25   : > { %v2498_v29 = vadd.f32 %v2496_v28, %v2488_v27  ;;  %v4338_v28 = vld [vmem:[%s6979_s8 + $0xd0] sm:$0xff] }
 0xb27   : > { %v6428_v31 = vmul.f32 %v6389_v57, %v2498_v29  ;;  %v4339_v29 = vld [vmem:[%s6979_s8 + $0xd8] sm:$0xff] }
 0xb29   : > { %4901 = vmatprep.subr.msk.mxu0 %vm597_vm1, %v6428_v31 }
 0xb2a   : > { %4902 = vmatpush3.msk.msra.mxu0 %vm597_vm1, %v6428_v31 }
 0xb2b   : > { %4904 = vmatmul.mubr.msk.f32.vlgmr.msra.gmra.mrb[24].mxu0 %vm593_vm2, %v4324_v34  ;;  %v4340_v34 = vld [vmem:[%s6979_s8 + $0xe0] sm:$0xff] }
 0xb2c   : > { %4906 = vmatprep.mubr.msk.f32.mxu0 %vm593_vm2, %v4325_v35  ;;  %v4341_v35 = vld [vmem:[%s6979_s8 + $0xe8] sm:$0xff] }
 0xb2f   : > { %4907 = vmatmul.mubr.msk.f32.gmra.mrb[26].mxu0 %vm593_vm2, %v4326_v37  ;;  %v4342_v37 = vld [vmem:[%s6979_s8 + $0xf0] sm:$0xff] }
 0xbfe   : > { %v4905_v39 = vpop.f32.mrb[24].mxu0 }
 0xbff   : > { %v2617_v42 = vadd.f32 %v4905_v39, %v2518_v40  ;;  %v2611_v43 = vpop.f32.mrb[25].mxu0  ;;  %v4343_v40 = vld [vmem:[%s6979_s8 + $0xf8] sm:$0xff] }
 0xc00   : > { %v2612_v44 = vadd.f32 %v2611_v43, %v2513_v30  ;;  %v4364_v30 = vld [vmem:[%s6981_s10 + $0x80] sm:$0xff] }
 0xc01   : > { %v6447_v45 = vmul.f32 %v6389_v57, %v2617_v42  ;;  %4953 = vmatprep.mubr.msk.f32.mxu0 %vm1218_vm4, %v4364_v30 }
 0xc02   : > { %v6450_v36 = vmul.f32 %v6389_v57, %v2612_v44  ;;  %v4908_v46 = vpop.f32.mrb[26].mxu0 }
 0xc03   : > { %v2627_v32 = vadd.f32 %v4908_v46, %v2528_v33  ;;  %2640 = vrot.lane.b32.xlu0 %v6447_v45, %s7040_s0  ;;  %v2621_v18 = vpop.f32.mrb[27].mxu0 }
 0xc04   : > { %v2622_v41 = vadd.f32 %v2621_v18, %v2523_v47  ;;  %2638 = vrot.lane.b32.xlu1 %v6450_v36, %s7040_s0  ;;  %v5192_v15 = vpack.c.bf16 %v6447_v45, %v6450_v36 }
 0xc05   : > { %v6457_v48 = vmul.f32 %v6389_v57, %v2627_v32 }
 0xc06   : > { %v6460_v49 = vmul.f32 %v6389_v57, %v2622_v41 }
 0xc07   : > { %2644 = vrot.lane.b32.xlu0 %v6457_v48, %s7040_s0 }
 0xc08   : > { %2642 = vrot.lane.b32.xlu1 %v6460_v49, %s7040_s0  ;;  %v5196_v21 = vpack.c.bf16 %v6457_v48, %v6460_v49  ;;  %s7043_s0 = smov 126  }
 0xc0b   : > { %2656 = vrot.lane.b32.xlu0 %v6447_v45, %s7041_s1 }
 0xc0c   : > { %2654 = vrot.lane.b32.xlu1 %v6450_v36, %s7041_s1 }
 0xc0f   : > { %2660 = vrot.lane.b32.xlu0 %v6457_v48, %s7041_s1 }
 0xc10   : > { %2658 = vrot.lane.b32.xlu1 %v6460_v49, %s7041_s1  ;;  %s7046_s1 = sld [smem:[#allocation14_spill]] }
 0xc13   : > { %2715 = vperm.xlu0 %5379, %v4349_v50  }
 0xc14   : > { %2710 = vperm.xlu1 %5380, %v4348_v52  }
 0xc16   : > { %p7049_p12 = scmp.ne.s32.totalorder %s7046_s1, 0 }
 0xc17   : > { %2725 = vperm.xlu0 %5379, %v4351_v53  }
 0xc18   : > { %2720 = vperm.xlu1 %5380, %v4350_v54   ;;  %p5569_p13 = pnand %p5568_p11, %p7049_p12 }
 0xc1a   : > { %p5570_p7 = pneg %p5569_p13 }
 0xc1b   : > { %2695 = vperm.xlu0 %5379, %v4345_v55  }
 0xc1c   : > { %2690 = vperm.xlu1 %5380, %v4344_v56  }
 0xc1f   : > { %2705 = vperm.xlu0 %5379, %v4347_v58  }
 0xc20   : > { %2700 = vperm.xlu1 %5380, %v4346_v59  }
 0xc23   : > { %2914 = vperm.xlu0 %5379, %v4373_v60  }
 0xc24   : > { %2909 = vperm.xlu1 %5380, %v4372_v61  }
 0xc27   : > { %2924 = vperm.xlu0 %5379, %v4375_v62  }
 0xc28   : > { %2919 = vperm.xlu1 %5380, %v4374_v63  }
 0xc75   : > { %v2641_v1 = vpop.permute.xlu0 %2640 }
 0xc76   : > { %v2651_v3 = vmul.f32 %v5530_v2, %v2641_v1  ;;  %v2639_v4 = vpop.permute.xlu1 %2638 }
 0xc77   : > { %v2650_v5 = vmul.f32 %v5530_v2, %v2639_v4 }
 0xc79   : > { %v5184_v6 = vpack.c.bf16 %v2651_v3, %v2650_v5  ;;  %v2645_v7 = vpop.permute.xlu0 %2644 }
 0xc7a   : > { %v2653_v8 = vmul.f32 %v5530_v2, %v2645_v7  ;;  %v2643_v9 = vpop.permute.xlu1 %2642 }
 0xc7b   : > { %v2652_v10 = vmul.f32 %v5530_v2, %v2643_v9  ;;  %5185 = vmatprep.subr.bf16.mxu1 %v5184_v6 }
 0xc7c   : > { %5187 = vmatpush3.bf16.msra.mxu1 %v5184_v6 }
 0xc7d   : > { %v5188_v12 = vpack.c.bf16 %v2653_v8, %v2652_v10  ;;  %v2657_v13 = vpop.permute.xlu0 %2656 }
 0xc7e   : > { %v2655_v14 = vpop.permute.xlu1 %2654  ;;  %v2667_v17 = vmul.f32 %v5531_v16, %v2657_v13 }
 0xc7f   : > { %5189 = vmatprep.subr.bf16.mxu1 %v5188_v12  ;;  %v2666_v19 = vmul.f32 %v5531_v16, %v2655_v14 }
 0xc80   : > { %5191 = vmatpush3.bf16.msra.mxu1 %v5188_v12 }
 0xc81   : > { %5193 = vmatprep.subr.bf16.mxu1 %v5192_v15  ;;  %v2661_v22 = vpop.permute.xlu0 %2660  ;;  %v5200_v24 = vpack.c.bf16 %v2667_v17, %v2666_v19 }
 0xc82   : > { %v2659_v23 = vpop.permute.xlu1 %2658  ;;  %v2669_v25 = vmul.f32 %v5531_v16, %v2661_v22 }
 0xc83   : > { %v2668_v26 = vmul.f32 %v5531_v16, %v2659_v23 }
 0xc84   : > { %5195 = vmatpush3.bf16.msra.mxu1 %v5192_v15 }
 0xc85   : > { %5197 = vmatprep.subr.bf16.mxu1 %v5196_v21  ;;  %v5204_v27 = vpack.c.bf16 %v2669_v25, %v2668_v26 }
 0xc88   : > { %5199 = vmatpush3.bf16.msra.mxu1 %v5196_v21 }
 0xc89   : > { %5201 = vmatprep.subr.bf16.mxu1 %v5200_v24 }
 0xc8c   : > { %5203 = vmatpush3.bf16.msra.mxu1 %v5200_v24 }
 0xc8d   : > { %5205 = vmatprep.subr.bf16.mxu1 %v5204_v27 }
 0xc90   : > { %5207 = vmatpush3.bf16.msra.mxu1 %v5204_v27 }
 0xc92   : > { %v2716_v44 = vpop.permute.xlu0 %2715 }
 0xc93   : > { %4934 = vmatmul.mubr.msk.f32.vlgmr.msra.gmra.mrb[26].mxu1 %vm1000_vm3, %v4337_v20  ;;  %v2711_v46 = vpop.permute.xlu1 %2710 }
 0xc94   : > { %4936 = vmatprep.mubr.msk.f32.mxu1 %vm1000_vm3, %v4338_v28 }
 0xc96   : > { %v2726_v50 = vpop.permute.xlu0 %2725 }
 0xc97   : > { %4937 = vmatmul.mubr.msk.f32.gmra.mrb[28].mxu1 %vm1000_vm3, %v4339_v29  ;;  %v2721_v52 = vpop.permute.xlu1 %2720 }
 0xc98   : > { %4939 = vmatprep.mubr.msk.f32.mxu1 %vm1000_vm3, %v4340_v34  ;;  %v4365_v34 = vld [vmem:[%s6981_s10 + $0x88] sm:$0xff] }
 0xc9a   : > { %v2696_v61 = vpop.permute.xlu0 %2695 }
 0xc9b   : > { %4940 = vmatmul.mubr.msk.f32.gmra.mrb[30].mxu1 %vm1000_vm3, %v4341_v35  ;;  %v2691_v62 = vpop.permute.xlu1 %2690  ;;  %v4366_v35 = vld [vmem:[%s6981_s10 + $0x90] sm:$0xff] }
 0xc9c   : > { %4942 = vmatprep.mubr.msk.f32.mxu1 %vm1000_vm3, %v4342_v37  ;;  %v4367_v37 = vld [vmem:[%s6981_s10 + $0x98] sm:$0xff] }
 0xc9e   : > { %v2706_v3 = vpop.permute.xlu0 %2705 }
 0xc9f   : > { %4943 = vmatmul.mubr.msk.f32.gmra.mrb[32].mxu1 %vm1000_vm3, %v4343_v40  ;;  %v2701_v5 = vpop.permute.xlu1 %2700 }
 0xca2   : > { %v2915_v40 = vpop.permute.xlu0 %2914 }
 0xca3   : > { %v2910_v30 = vpop.permute.xlu1 %2909 }
 0xd66   : > { %v4935_v39 = vpop.f32.mrb[26].mxu1 }
 0xd67   : > { %v2818_v42 = vpop.f32.mrb[27].mxu1  ;;  %v2824_v63 = vadd.f32 %v4935_v39, %v2696_v61  ;;  %v4400_v61 = vld [vmem:[%s6980_s9 + $0x120] sm:$0xff] }
 0xd68   : > { %v2819_v1 = vadd.f32 %v2818_v42, %v2691_v62  ;;  %v4403_v62 = vld [vmem:[%s6980_s9 + $0x138] sm:$0xff] }
 0xd6a   : > { %v4938_v43 = vpop.f32.mrb[28].mxu1 }
 0xd6b   : > { %v2828_v33 = vpop.f32.mrb[29].mxu1  ;;  %v2834_v6 = vadd.f32 %v4938_v43, %v2706_v3  ;;  %v4399_v3 = vld [vmem:[%s6980_s9 + $0x118] sm:$0xff] }
 0xd6c   : > { %v2829_v8 = vadd.f32 %v2828_v33, %v2701_v5  ;;  %v4425_v5 = vld [vmem:[%s6982_s11 + $0xc8] sm:$0xff] }
 0xd6e   : > { %v4941_v47 = vpop.f32.mrb[30].mxu1 }
 0xd6f   : > { %v2844_v32 = vadd.f32 %v4941_v47, %v2716_v44  ;;  %v2838_v18 = vpop.f32.mrb[31].mxu1 }
 0xd70   : > { %v2839_v41 = vadd.f32 %v2838_v18, %v2711_v46  ;;  %v2925_v46 = vpop.permute.xlu0 %2924  ;;  %v2920_v18 = vpop.permute.xlu1 %2919 }
 0xd71   : > { %v4361_v51 = vmul.f32 -1.442695, %v2844_v32 }
 0xd72   : > { %v4360_v53 = vmul.f32 -1.442695, %v2839_v41  ;;  %v4944_v54 = vpop.f32.mrb[32].mxu1 }
 0xd73   : > { %5455 = vpow2.f32 %v4361_v51  ;;  %v2854_v55 = vadd.f32 %v4944_v54, %v2726_v50  ;;  %v2848_v56 = vpop.f32.mrb[33].mxu1 }
 0xd74   : > { %5457 = vpow2.f32 %v4360_v53  ;;  %v2849_v58 = vadd.f32 %v2848_v56, %v2721_v52  ;;  %v4370_v56 = vld [vmem:[%s6981_s10 + $0xb0] sm:$0xff] }
 0xd75   : > { %v4363_v59 = vmul.f32 -1.442695, %v2854_v55 }
 0xd76   : > { %v4362_v60 = vmul.f32 -1.442695, %v2849_v58  ;;  %v4371_v58 = vld [vmem:[%s6981_s10 + $0xb8] sm:$0xff] }
 0xd77   : > { %5459 = vpow2.f32 %v4363_v59  ;;  %v4401_v59 = vld [vmem:[%s6980_s9 + $0x128] sm:$0xff] }
 0xd78   : > { %5461 = vpow2.f32 %v4362_v60  ;;  %v4388_v60 = vld [vmem:[%s6979_s8 + $0x100] sm:$0xff] }
 0xd79   : > { %5463 = vtanh.f32 %v2824_v63  ;;  %v4402_v63 = vld [vmem:[%s6980_s9 + $0x130] sm:$0xff] }
 0xd7a   : > { %5465 = vtanh.f32 %v2819_v1  ;;  %v4397_v1 = vld [vmem:[%s6980_s9 + $0x108] sm:$0xff] }
 0xd7d   : > { %v5456_v2 = vpop.eup %5455 }
 0xd7e   : > { %v5458_v4 = vpop.eup %5457  ;;  %v2874_v7 = vadd.f32 1.0, %v5456_v2  ;;  %v4396_v2 = vld [vmem:[%s6980_s9 + $0x100] sm:$0xff] }
 0xd7f   : > { %v2873_v9 = vadd.f32 1.0, %v5458_v4  ;;  %v4398_v4 = vld [vmem:[%s6980_s9 + $0x110] sm:$0xff] }
 0xd80   : > { %5467 = vrcp.f32 %v2874_v7  ;;  %v4427_v7 = vld [vmem:[%s6982_s11 + $0xd8] sm:$0xff] }
 0xd81   : > { %v5460_v10 = vpop.eup %5459  ;;  %5469 = vrcp.f32 %v2873_v9 }
 0xd82   : > { %v5462_v12 = vpop.eup %5461  ;;  %5471 = vtanh.f32 %v2834_v6  ;;  %v2876_v13 = vadd.f32 1.0, %v5460_v10  ;;  %v4424_v6 = vld [vmem:[%s6982_s11 + $0xc0] sm:$0xff] }
 0xd83   : > { %5473 = vtanh.f32 %v2829_v8  ;;  %v2875_v14 = vadd.f32 1.0, %v5462_v12  ;;  %v5464_v15 = vpop.eup %5463  ;;  %v4426_v8 = vld [vmem:[%s6982_s11 + $0xd0] sm:$0xff]  ;;  %v5532_v10 = vld [vmem:[%s7038_s2 + $0x2] ss:$0 sm:$0xff] }
 0xd84   : > { %5475 = vrcp.f32 %v2876_v13  ;;  %v5466_v16 = vpop.eup %5465 }
 0xd85   : > { %5477 = vrcp.f32 %v2875_v14 }
 0xd8a   : > { %v5468_v17 = vpop.eup %5467 }
 0xd8b   : > { %v5470_v19 = vpop.eup %5469  ;;  %v2886_v21 = vmul.f32 %v5468_v17, %v5464_v15 }
 0xd8c   : > { %v5472_v22 = vpop.eup %5471  ;;  %v2885_v23 = vmul.f32 %v5470_v19, %v5466_v16 }
 0xd8d   : > { %v5474_v24 = vpop.eup %5473 }
 0xd8e   : > { %v5476_v25 = vpop.eup %5475  ;;  %v5208_v26 = vpack.c.bf16 %v2886_v21, %v2885_v23 }
 0xd8f   : > { %v5478_v27 = vpop.eup %5477  ;;  %v2888_v20 = vmul.f32 %v5476_v25, %v5472_v22 }
 0xd90   : > { %5209 = vmatprep.subr.bf16.mxu0 %v5208_v26  ;;  %v2887_v28 = vmul.f32 %v5478_v27, %v5474_v24 }
 0xd91   : > { %5211 = vmatpush3.bf16.msra.mxu0 %v5208_v26  ;;  %v5533_v26 = vld [vmem:[%s7038_s2 + $0x3] ss:$0 sm:$0xff] }
 0xd92   : > { %v5212_v29 = vpack.c.bf16 %v2888_v20, %v2887_v28 }
 0xd94   : > { %5213 = vmatprep.subr.bf16.mxu0 %v5212_v29 }
 0xd95   : > { %5215 = vmatpush3.bf16.msra.mxu0 %v5212_v29 }
 0xd98   : > { %4954 = vmatmul.mubr.msk.f32.vlgmr.msra.gmra.mrb[28].mxu0 %vm1218_vm4, %v4365_v34 }
 0xd99   : > { %4956 = vmatprep.mubr.msk.f32.mxu0 %vm1218_vm4, %v4366_v35 }
 0xd9c   : > { %4957 = vmatmul.mubr.msk.f32.gmra.mrb[30].mxu0 %vm1218_vm4, %v4367_v37 }
 0xe6b   : > { %v4955_v39 = vpop.f32.mrb[28].mxu0 }
 0xe6c   : > { %v3043_v42 = vadd.f32 %v4955_v39, %v2915_v40  ;;  %v3037_v43 = vpop.f32.mrb[29].mxu0  ;;  %v4389_v39 = vld [vmem:[%s6979_s8 + $0x108] sm:$0xff] }
 0xe6d   : > { %v3038_v44 = vadd.f32 %v3037_v43, %v2910_v30  ;;  %v4391_v43 = vld [vmem:[%s6979_s8 + $0x118] sm:$0xff] }
 0xe6e   : > { %v3077_v33 = vadd.f32 %v3043_v42, %v6447_v45  ;;  %v4390_v42 = vld [vmem:[%s6979_s8 + $0x110] sm:$0xff] }
 0xe6f   : > { %v3076_v47 = vadd.f32 %v3038_v44, %v6450_v36  ;;  %v4958_v32 = vpop.f32.mrb[30].mxu0  ;;  %v4392_v44 = vld [vmem:[%s6979_s8 + $0x120] sm:$0xff] }
 0xe70   : > { %v6571_v41 = vmul.f32 %v6389_v57, %v3077_v33  ;;  %v3053_v50 = vadd.f32 %v4958_v32, %v2925_v46  ;;  %v3047_v51 = vpop.f32.mrb[31].mxu0  ;;  %v4393_v33 = vld [vmem:[%s6979_s8 + $0x128] sm:$0xff]  ;;  %v4394_v46 = vld [vmem:[%s6979_s8 + $0x130] sm:$0xff]  ;;  %v4416_v32 = vld [vmem:[%s6981_s10 + $0xc0] sm:$0xff] }
 0xe71   : > { %v6574_v52 = vmul.f32 %v6389_v57, %v3076_v47  ;;  %v3048_v53 = vadd.f32 %v3047_v51, %v2920_v18  ;;  %v4395_v47 = vld [vmem:[%s6979_s8 + $0x138] sm:$0xff] }
 0xe72   : > { %v3079_v54 = vadd.f32 %v3053_v50, %v6457_v48  ;;  %3094 = vrot.lane.b32.xlu0 %v6571_v41, %s7042_s19  ;;  %v4368_v48 = vld [vmem:[%s6981_s10 + $0xa0] sm:$0xff] }
 0xe73   : > { %v3078_v45 = vadd.f32 %v3048_v53, %v6460_v49  ;;  %3092 = vrot.lane.b32.xlu1 %v6574_v52, %s7042_s19  ;;  %v4369_v49 = vld [vmem:[%s6981_s10 + $0xa8] sm:$0xff]  ;;  %4959 = vmatprep.mubr.msk.f32.mxu0 %vm1218_vm4, %v4368_v48  ;;  %v5224_v25 = vpack.c.bf16 %v6571_v41, %v6574_v52 }
 0xe74   : > { %v6583_v36 = vmul.f32 %v6389_v57, %v3079_v54  ;;  %4960 = vmatmul.mubr.msk.f32.gmra.mrb[32].mxu0 %vm1218_vm4, %v4369_v49 }
 0xe75   : > { %v6586_v55 = vmul.f32 %v6389_v57, %v3078_v45  ;;  %4962 = vmatprep.mubr.msk.f32.mxu0 %vm1218_vm4, %v4370_v56 }
 0xe76   : > { %3098 = vrot.lane.b32.xlu0 %v6583_v36, %s7042_s19 }
 0xe77   : > { %3096 = vrot.lane.b32.xlu1 %v6586_v55, %s7042_s19  ;;  %v5228_v28 = vpack.c.bf16 %v6583_v36, %v6586_v55 }
 0xe78   : > { %4963 = vmatmul.mubr.msk.f32.gmra.mrb[34].mxu0 %vm1218_vm4, %v4371_v58 }
 0xe79   : > { %4989 = vmatprep.mubr.msk.f32.mxu0 %vm1000_vm3, %v4388_v60 }
 0xe7a   : > { %3110 = vrot.lane.b32.xlu0 %v6571_v41, %s7043_s0 }
 0xe7b   : > { %3108 = vrot.lane.b32.xlu1 %v6574_v52, %s7043_s0 }
 0xe7e   : > { %3114 = vrot.lane.b32.xlu0 %v6583_v36, %s7043_s0 }
 0xe7f   : > { %3112 = vrot.lane.b32.xlu1 %v6586_v55, %s7043_s0 }
 0xe82   : > { %3169 = vperm.xlu0 %5379, %v4401_v59  }
 0xe83   : > { %3164 = vperm.xlu1 %5380, %v4400_v61  }
 0xe86   : > { %3179 = vperm.xlu0 %5379, %v4403_v62  }
 0xe87   : > { %3174 = vperm.xlu1 %5380, %v4402_v63  }
 0xe8a   : > { %3149 = vperm.xlu0 %5379, %v4397_v1  }
 0xe8b   : > { %3144 = vperm.xlu1 %5380, %v4396_v2  }
 0xe8e   : > { %3159 = vperm.xlu0 %5379, %v4399_v3  }
 0xe8f   : > { %3154 = vperm.xlu1 %5380, %v4398_v4  }
 0xe92   : > { %3368 = vperm.xlu0 %5379, %v4425_v5  }
 0xe93   : > { %3363 = vperm.xlu1 %5380, %v4424_v6  }
 0xe96   : > { %3378 = vperm.xlu0 %5379, %v4427_v7  }
 0xe97   : > { %3373 = vperm.xlu1 %5380, %v4426_v8  }
 0xee4   : > { %v3095_v9 = vpop.permute.xlu0 %3094 }
 0xee5   : > { %v3105_v12 = vmul.f32 %v5532_v10, %v3095_v9  ;;  %v3093_v13 = vpop.permute.xlu1 %3092 }
 0xee6   : > { %v3104_v14 = vmul.f32 %v5532_v10, %v3093_v13 }
 0xee8   : > { %v5216_v15 = vpack.c.bf16 %v3105_v12, %v3104_v14  ;;  %v3099_v16 = vpop.permute.xlu0 %3098 }
 0xee9   : > { %v3107_v17 = vmul.f32 %v5532_v10, %v3099_v16  ;;  %v3097_v19 = vpop.permute.xlu1 %3096 }
 0xeea   : > { %v3106_v21 = vmul.f32 %v5532_v10, %v3097_v19  ;;  %5217 = vmatprep.subr.bf16.mxu0 %v5216_v15 }
 0xeeb   : > { %5219 = vmatpush3.bf16.msra.mxu0 %v5216_v15 }
 0xeec   : > { %v5220_v22 = vpack.c.bf16 %v3107_v17, %v3106_v21  ;;  %v3111_v23 = vpop.permute.xlu0 %3110 }
 0xeed   : > { %v3109_v24 = vpop.permute.xlu1 %3108  ;;  %v3121_v27 = vmul.f32 %v5533_v26, %v3111_v23 }
 0xeee   : > { %5221 = vmatprep.subr.bf16.mxu0 %v5220_v22  ;;  %v3120_v20 = vmul.f32 %v5533_v26, %v3109_v24 }
 0xeef   : > { %5223 = vmatpush3.bf16.msra.mxu0 %v5220_v22 }
 0xef0   : > { %5225 = vmatprep.subr.bf16.mxu0 %v5224_v25  ;;  %v3115_v29 = vpop.permute.xlu0 %3114  ;;  %v5232_v35 = vpack.c.bf16 %v3121_v27, %v3120_v20 }
 0xef1   : > { %v3113_v34 = vpop.permute.xlu1 %3112  ;;  %v3123_v37 = vmul.f32 %v5533_v26, %v3115_v29 }
 0xef2   : > { %v3122_v40 = vmul.f32 %v5533_v26, %v3113_v34 }
 0xef3   : > { %5227 = vmatpush3.bf16.msra.mxu0 %v5224_v25 }
 0xef4   : > { %5229 = vmatprep.subr.bf16.mxu0 %v5228_v28  ;;  %v5236_v30 = vpack.c.bf16 %v3123_v37, %v3122_v40 }
 0xef7   : > { %5231 = vmatpush3.bf16.msra.mxu0 %v5228_v28 }
 0xef8   : > { %5233 = vmatprep.subr.bf16.mxu0 %v5232_v35 }
 0xefb   : > { %5235 = vmatpush3.bf16.msra.mxu0 %v5232_v35 }
 0xefc   : > { %5237 = vmatprep.subr.bf16.mxu0 %v5236_v30 }
 0xeff   : > { %5239 = vmatpush3.bf16.msra.mxu0 %v5236_v30 }
 0xf01   : > { %v3170_v53 = vpop.permute.xlu0 %3169 }
 0xf02   : > { %4990 = vmatmul.mubr.msk.f32.vlgmr.msra.gmra.mrb[36].mxu0 %vm1000_vm3, %v4389_v39  ;;  %v3165_v45 = vpop.permute.xlu1 %3164 }
 0xf03   : > { %4992 = vmatprep.mubr.msk.f32.mxu0 %vm1000_vm3, %v4390_v42 }
 0xf05   : > { %v3180_v59 = vpop.permute.xlu0 %3179 }
 0xf06   : > { %4993 = vmatmul.mubr.msk.f32.gmra.mrb[38].mxu0 %vm1000_vm3, %v4391_v43  ;;  %v3175_v61 = vpop.permute.xlu1 %3174 }
 0xf07   : > { %4995 = vmatprep.mubr.msk.f32.mxu0 %vm1000_vm3, %v4392_v44  ;;  %v4417_v44 = vld [vmem:[%s6981_s10 + $0xc8] sm:$0xff] }
 0xf09   : > { %v3150_v6 = vpop.permute.xlu0 %3149 }
 0xf0a   : > { %4996 = vmatmul.mubr.msk.f32.gmra.mrb[40].mxu0 %vm1000_vm3, %v4393_v33  ;;  %v3145_v7 = vpop.permute.xlu1 %3144  ;;  %v4418_v33 = vld [vmem:[%s6981_s10 + $0xd0] sm:$0xff] }
 0xf0b   : > { %4998 = vmatprep.mubr.msk.f32.mxu0 %vm1000_vm3, %v4394_v46  ;;  %v4419_v46 = vld [vmem:[%s6981_s10 + $0xd8] sm:$0xff] }
 0xf0d   : > { %v3160_v12 = vpop.permute.xlu0 %3159 }
 0xf0e   : > { %4999 = vmatmul.mubr.msk.f32.gmra.mrb[42].mxu0 %vm1000_vm3, %v4395_v47  ;;  %v3155_v14 = vpop.permute.xlu1 %3154 }
 0xf0f   : > { %5009 = vmatprep.mubr.msk.f32.mxu0 %vm1218_vm4, %v4416_v32 }
 0xf11   : > { %v3369_v47 = vpop.permute.xlu0 %3368 }
 0xf12   : > { %v3364_v32 = vpop.permute.xlu1 %3363 }
 0xfd5   : > { %v4991_v18 = vpop.f32.mrb[36].mxu0 }
 0xfd6   : > { %v3272_v50 = vpop.f32.mrb[37].mxu0  ;;  %v3278_v8 = vadd.f32 %v4991_v18, %v3150_v6  ;;  %v4449_v6 = vld [vmem:[%s6980_s9 + $0x148] sm:$0xff] }
 0xfd7   : > { %v3273_v9 = vadd.f32 %v3272_v50, %v3145_v7  ;;  %v4448_v7 = vld [vmem:[%s6980_s9 + $0x140] sm:$0xff] }
 0xfd9   : > { %v4994_v51 = vpop.f32.mrb[38].mxu0 }
 0xfda   : > { %v3282_v54 = vpop.f32.mrb[39].mxu0  ;;  %v3288_v15 = vadd.f32 %v4994_v51, %v3160_v12  ;;  %v4376_v12 = vld [vmem:[%s6982_s11 + $0xa0] sm:$0xff] }
 0xfdb   : > { %v3283_v17 = vadd.f32 %v3282_v54, %v3155_v14  ;;  %v4428_v14 = vld [vmem:[%s6982_s11 + $0xe0] sm:$0xff] }
 0xfdd   : > { %v4997_v48 = vpop.f32.mrb[40].mxu0 }
 0xfde   : > { %v3298_v49 = vadd.f32 %v4997_v48, %v3170_v53  ;;  %v3292_v56 = vpop.f32.mrb[41].mxu0 }
 0xfdf   : > { %v3293_v58 = vadd.f32 %v3292_v56, %v3165_v45  ;;  %v3379_v45 = vpop.permute.xlu0 %3378  ;;  %v3374_v56 = vpop.permute.xlu1 %3373 }
 0xfe0   : > { %v4413_v60 = vmul.f32 -1.442695, %v3298_v49 }
 0xfe1   : > { %v4412_v62 = vmul.f32 -1.442695, %v3293_v58  ;;  %v5000_v63 = vpop.f32.mrb[42].mxu0 }
 0xfe2   : > { %5479 = vpow2.f32 %v4413_v60  ;;  %v3308_v1 = vadd.f32 %v5000_v63, %v3180_v59  ;;  %v3302_v2 = vpop.f32.mrb[43].mxu0 }
 0xfe3   : > { %5481 = vpow2.f32 %v4412_v62  ;;  %v3303_v3 = vadd.f32 %v3302_v2, %v3175_v61 }
 0xfe4   : > { %v4415_v4 = vmul.f32 -1.442695, %v3308_v1 }
 0xfe5   : > { %v4414_v5 = vmul.f32 -1.442695, %v3303_v3 }
 0xfe6   : > { %5483 = vpow2.f32 %v4415_v4  ;;  %v4455_v4 = vld [vmem:[%s6980_s9 + $0x178] sm:$0xff] }
 0xfe7   : > { %5485 = vpow2.f32 %v4414_v5  ;;  %v4454_v5 = vld [vmem:[%s6980_s9 + $0x170] sm:$0xff] }
 0xfe8   : > { %5487 = vtanh.f32 %v3278_v8  ;;  %v4451_v8 = vld [vmem:[%s6980_s9 + $0x158] sm:$0xff] }
 0xfe9   : > { %5489 = vtanh.f32 %v3273_v9  ;;  %v4450_v9 = vld [vmem:[%s6980_s9 + $0x150] sm:$0xff] }
 0xfec   : > { %v5480_v10 = vpop.eup %5479 }
 0xfed   : > { %v5482_v13 = vpop.eup %5481  ;;  %v3328_v16 = vadd.f32 1.0, %v5480_v10  ;;  %v4377_v10 = vld [vmem:[%s6982_s11 + $0xa8] sm:$0xff] }
 0xfee   : > { %v3327_v19 = vadd.f32 1.0, %v5482_v13  ;;  %v4429_v13 = vld [vmem:[%s6982_s11 + $0xe8] sm:$0xff] }
 0xfef   : > { %5491 = vrcp.f32 %v3328_v16  ;;  %v4378_v16 = vld [vmem:[%s6982_s11 + $0xb0] sm:$0xff] }
 0xff0   : > { %v5484_v21 = vpop.eup %5483  ;;  %5493 = vrcp.f32 %v3327_v19  ;;  %v4430_v19 = vld [vmem:[%s6982_s11 + $0xf0] sm:$0xff] }
 0xff1   : > { %v5486_v22 = vpop.eup %5485  ;;  %5495 = vtanh.f32 %v3288_v15  ;;  %v3330_v23 = vadd.f32 1.0, %v5484_v21  ;;  %v4379_v15 = vld [vmem:[%s6982_s11 + $0xb8] sm:$0xff]  ;;  %v4477_v21 = vld [vmem:[%s6984_s13 + $0x28] sm:$0xff] }
 0xff2   : > { %5497 = vtanh.f32 %v3283_v17  ;;  %v3329_v24 = vadd.f32 1.0, %v5486_v22  ;;  %v5488_v25 = vpop.eup %5487  ;;  %v4431_v17 = vld [vmem:[%s6982_s11 + $0xf8] sm:$0xff]  ;;  %v4476_v22 = vld [vmem:[%s6984_s13 + $0x20] sm:$0xff] }
 0xff3   : > { %5499 = vrcp.f32 %v3330_v23  ;;  %v5490_v26 = vpop.eup %5489  ;;  %v4479_v23 = vld [vmem:[%s6984_s13 + $0x38] sm:$0xff] }
 0xff4   : > { %5501 = vrcp.f32 %v3329_v24  ;;  %v4478_v24 = vld [vmem:[%s6984_s13 + $0x30] sm:$0xff] }
 0xff9   : > { %v5492_v27 = vpop.eup %5491 }
 0xffa   : > { %v5494_v20 = vpop.eup %5493  ;;  %v3340_v28 = vmul.f32 %v5492_v27, %v5488_v25  ;;  %v4481_v25 = vld [vmem:[%s6986_s15 + $0x8] sm:$0xff]  ;;  %v5534_v27 = vld [vmem:[%s7038_s2 + $0x4] ss:$0 sm:$0xff] }
 0xffb   : > { %v5496_v29 = vpop.eup %5495  ;;  %v3339_v34 = vmul.f32 %v5494_v20, %v5490_v26 }
 0xffc   : > { %v5498_v35 = vpop.eup %5497 }
 0xffd   : > { %v5500_v37 = vpop.eup %5499  ;;  %v5240_v40 = vpack.c.bf16 %v3340_v28, %v3339_v34 }
 0xffe   : > { %v5502_v30 = vpop.eup %5501  ;;  %v3342_v39 = vmul.f32 %v5500_v37, %v5496_v29 }
 0xfff   : > { %5241 = vmatprep.subr.bf16.mxu0 %v5240_v40  ;;  %v3341_v42 = vmul.f32 %v5502_v30, %v5498_v35 }
0x1000   : > { %5243 = vmatpush3.bf16.msra.mxu0 %v5240_v40 }
0x1001   : > { %v5244_v43 = vpack.c.bf16 %v3342_v39, %v3341_v42 }
0x1003   : > { %5245 = vmatprep.subr.bf16.mxu0 %v5244_v43 }
0x1004   : > { %5247 = vmatpush3.bf16.msra.mxu0 %v5244_v43 }
0x1007   : > { %5010 = vmatmul.mubr.msk.f32.vlgmr.msra.gmra.mrb[44].mxu0 %vm1218_vm4, %v4417_v44  ;;  %v5535_v44 = vld [vmem:[%s7038_s2 + $0x5] ss:$0 sm:$0xff] }
0x1008   : > { %5012 = vmatprep.mubr.msk.f32.mxu0 %vm1218_vm4, %v4418_v33 }
0x100b   : > { %5013 = vmatmul.mubr.msk.f32.gmra.mrb[46].mxu0 %vm1218_vm4, %v4419_v46 }
0x10da   : > { %v5011_v18 = vpop.f32.mrb[44].mxu0 }
0x10db   : > { %v3497_v50 = vadd.f32 %v5011_v18, %v3369_v47  ;;  %v3491_v51 = vpop.f32.mrb[45].mxu0 }
0x10dc   : > { %v3492_v53 = vadd.f32 %v3491_v51, %v3364_v32 }
0x10dd   : > { %v3531_v54 = vadd.f32 %v3497_v50, %v6571_v41 }
0x10de   : > { %v3530_v48 = vadd.f32 %v3492_v53, %v6574_v52  ;;  %v5014_v49 = vpop.f32.mrb[46].mxu0 }
0x10df   : > { %v3535_v58 = vmul.f32 %v6389_v57, %v3531_v54  ;;  %v3507_v59 = vadd.f32 %v5014_v49, %v3379_v45  ;;  %v3501_v60 = vpop.f32.mrb[47].mxu0  ;;  %v4441_v54 = vld [vmem:[%s6979_s8 + $0x148] sm:$0xff]  ;;  %v4442_v45 = vld [vmem:[%s6979_s8 + $0x150] sm:$0xff]  ;;  %v4444_v49 = vld [vmem:[%s6979_s8 + $0x160] sm:$0xff] }
0x10e0   : > { %v3534_v61 = vmul.f32 %v6389_v57, %v3530_v48  ;;  %v3502_v62 = vadd.f32 %v3501_v60, %v3374_v56  ;;  %v4443_v48 = vld [vmem:[%s6979_s8 + $0x158] sm:$0xff]  ;;  %v4445_v56 = vld [vmem:[%s6979_s8 + $0x168] sm:$0xff]  ;;  %v4420_v60 = vld [vmem:[%s6981_s10 + $0xe0] sm:$0xff] }
0x10e1   : > { %v3533_v63 = vadd.f32 %v3507_v59, %v6583_v36  ;;  %3548 = vrot.lane.b32.xlu0 %v3535_v58, %s7044_s21  ;;  %v4453_v36 = vld [vmem:[%s6980_s9 + $0x168] sm:$0xff]  ;;  %v4447_v59 = vld [vmem:[%s6979_s8 + $0x178] sm:$0xff]  ;;  %5015 = vmatprep.mubr.msk.f32.mxu0 %vm1218_vm4, %v4420_v60 }
0x10e2   : > { %v3532_v1 = vadd.f32 %v3502_v62, %v6586_v55  ;;  %3546 = vrot.lane.b32.xlu1 %v3534_v61, %s7044_s21  ;;  %v6718_v41 = vpack.c.bf16 %v3535_v58, %v3534_v61  ;;  %v4452_v55 = vld [vmem:[%s6980_s9 + $0x160] sm:$0xff]  ;;  %v4422_v62 = vld [vmem:[%s6981_s10 + $0xf0] sm:$0xff] }
0x10e3   : > { %v3537_v52 = vmul.f32 %v6389_v57, %v3533_v63  ;;  %v4468_v63 = vld [vmem:[%s6983_s12 + $0x20] sm:$0xff] }
0x10e4   : > { %v3536_v2 = vmul.f32 %v6389_v57, %v3532_v1  ;;  %v4440_v57 = vld [vmem:[%s6979_s8 + $0x140] sm:$0xff] }
0x10e5   : > { %3552 = vrot.lane.b32.xlu0 %v3537_v52, %s7044_s21  ;;  %5045 = vmatprep.mubr.msk.f32.mxu1 %vm1000_vm3, %v4440_v57 }
0x10e6   : > { %3550 = vrot.lane.b32.xlu1 %v3536_v2, %s7044_s21  ;;  %v6724_v3 = vpack.c.bf16 %v3537_v52, %v3536_v2  ;;  %s7048_s21 = sshll.u32 %s5875_s24, 3 }
0x10e9   : > { %3564 = vrot.lane.b32.xlu0 %v3535_v58, %s7045_s17  ;;  %v4446_v58 = vld [vmem:[%s6979_s8 + $0x170] sm:$0xff] }
0x10ea   : > { %3562 = vrot.lane.b32.xlu1 %v3534_v61, %s7045_s17  ;;  %v4421_v61 = vld [vmem:[%s6981_s10 + $0xe8] sm:$0xff] }
0x10eb   : > { %5016 = vmatmul.mubr.msk.f32.gmra.mrb[32].mxu0 %vm1218_vm4, %v4421_v61 }
0x10ec   : > { %5018 = vmatprep.mubr.msk.f32.mxu0 %vm1218_vm4, %v4422_v62 }
0x10ed   : > { %3568 = vrot.lane.b32.xlu0 %v3537_v52, %s7045_s17 }
0x10ee   : > { %3566 = vrot.lane.b32.xlu1 %v3536_v2, %s7045_s17  ;;  %s6892_s17 = scalar_lea.vmem [#allocation5], %s7048_s21 }
0x10f1   : > { %3623 = vperm.xlu0 %5379, %v4453_v36  }
0x10f2   : > { %3618 = vperm.xlu1 %5380, %v4452_v55  }
0x10f5   : > { %3633 = vperm.xlu0 %5379, %v4455_v4  }
0x10f6   : > { %3628 = vperm.xlu1 %5380, %v4454_v5  }
0x10f9   : > { %3603 = vperm.xlu0 %5379, %v4449_v6  }
0x10fa   : > { %3598 = vperm.xlu1 %5380, %v4448_v7  }
0x10fd   : > { %3613 = vperm.xlu0 %5379, %v4451_v8  }
0x10fe   : > { %3608 = vperm.xlu1 %5380, %v4450_v9  }
0x1101   : > { %2934 = vperm.xlu0 %5379, %v4377_v10  }
0x1102   : > { %2929 = vperm.xlu1 %5380, %v4376_v12  }
0x1105   : > { %3388 = vperm.xlu0 %5379, %v4429_v13  }
0x1106   : > { %3383 = vperm.xlu1 %5380, %v4428_v14  }
0x1109   : > { %2944 = vperm.xlu0 %5379, %v4379_v15  }
0x110a   : > { %2939 = vperm.xlu1 %5380, %v4378_v16  }
0x110d   : > { %3398 = vperm.xlu0 %5379, %v4431_v17  }
0x110e   : > { %3393 = vperm.xlu1 %5380, %v4430_v19  }
0x1111   : > { %3915 = vperm.xlu0 %5379, %v4477_v21  }
0x1112   : > { %3910 = vperm.xlu1 %5380, %v4476_v22  }
0x1115   : > { %3925 = vperm.xlu0 %5379, %v4479_v23  }
0x1116   : > { %3920 = vperm.xlu1 %5380, %v4478_v24  }
0x111a   : > { %3942 = vperm.xlu1 %5380, %v4481_v25  }
0x1153   : > { %v3549_v26 = vpop.permute.xlu0 %3548 }
0x1154   : > { %v3559_v20 = vmul.f32 %v5534_v27, %v3549_v26  ;;  %v3547_v28 = vpop.permute.xlu1 %3546 }
0x1155   : > { %v3558_v29 = vmul.f32 %v5534_v27, %v3547_v28 }
0x1157   : > { %v5248_v34 = vpack.c.bf16 %v3559_v20, %v3558_v29  ;;  %v3553_v35 = vpop.permute.xlu0 %3552 }
0x1158   : > { %v3561_v37 = vmul.f32 %v5534_v27, %v3553_v35  ;;  %v3551_v40 = vpop.permute.xlu1 %3550 }
0x1159   : > { %v3560_v30 = vmul.f32 %v5534_v27, %v3551_v40  ;;  %5249 = vmatprep.subr.bf16.mxu1 %v5248_v34 }
0x115a   : > { %5251 = vmatpush3.bf16.msra.mxu1 %v5248_v34 }
0x115b   : > { %v5252_v39 = vpack.c.bf16 %v3561_v37, %v3560_v30  ;;  %v3565_v42 = vpop.permute.xlu0 %3564 }
0x115c   : > { %v3563_v43 = vpop.permute.xlu1 %3562  ;;  %v3575_v33 = vmul.f32 %v5535_v44, %v3565_v42 }
0x115d   : > { %5253 = vmatprep.subr.bf16.mxu1 %v5252_v39  ;;  %v3574_v46 = vmul.f32 %v5535_v44, %v3563_v43 }
0x115e   : > { %5255 = vmatpush3.bf16.msra.mxu1 %v5252_v39 }
0x115f   : > { %5257 = vmatprep.subr.bf16.mxu1 %v6718_v41  ;;  %v3569_v47 = vpop.permute.xlu0 %3568  ;;  %v5264_v18 = vpack.c.bf16 %v3575_v33, %v3574_v46 }
0x1160   : > { %v3567_v32 = vpop.permute.xlu1 %3566  ;;  %v3577_v50 = vmul.f32 %v5535_v44, %v3569_v47 }
0x1161   : > { %v3576_v51 = vmul.f32 %v5535_v44, %v3567_v32 }
0x1162   : > { %5259 = vmatpush3.bf16.msra.mxu1 %v6718_v41 }
0x1163   : > { %5261 = vmatprep.subr.bf16.mxu1 %v6724_v3  ;;  %v5268_v53 = vpack.c.bf16 %v3577_v50, %v3576_v51 }
0x1166   : > { %5263 = vmatpush3.bf16.msra.mxu1 %v6724_v3 }
0x1167   : > { %5265 = vmatprep.subr.bf16.mxu1 %v5264_v18 }
0x116a   : > { %5267 = vmatpush3.bf16.msra.mxu1 %v5264_v18 }
0x116b   : > { %5269 = vmatprep.subr.bf16.mxu1 %v5268_v53 }
0x116e   : > { %5271 = vmatpush3.bf16.msra.mxu1 %v5268_v53 }
0x116f   : > { %5280 = vmatprep.subr.bf16.mxu1 %v5677_v38 }
0x1170   : > { %v3624_v2 = vpop.permute.xlu0 %3623 }
0x1171   : > { %5046 = vmatmul.mubr.msk.f32.vlgmr.msra.gmra.mrb[34].mxu1 %vm1000_vm3, %v4441_v54  ;;  %v3619_v36 = vpop.permute.xlu1 %3618 }
0x1172   : > { %5048 = vmatprep.mubr.msk.f32.mxu1 %vm1000_vm3, %v4442_v45  ;;  %v4469_v45 = vld [vmem:[%s6983_s12 + $0x28] sm:$0xff] }
0x1174   : > { %v3634_v6 = vpop.permute.xlu0 %3633 }
0x1175   : > { %5049 = vmatmul.mubr.msk.f32.gmra.mrb[36].mxu1 %vm1000_vm3, %v4443_v48  ;;  %v3629_v8 = vpop.permute.xlu1 %3628  ;;  %v4470_v48 = vld [vmem:[%s6983_s12 + $0x30] sm:$0xff] }
0x1176   : > { %5051 = vmatprep.mubr.msk.f32.mxu1 %vm1000_vm3, %v4444_v49  ;;  %v4471_v49 = vld [vmem:[%s6983_s12 + $0x38] sm:$0xff] }
0x1178   : > { %v3604_v17 = vpop.permute.xlu0 %3603 }
0x1179   : > { %5052 = vmatmul.mubr.msk.f32.gmra.mrb[38].mxu1 %vm1000_vm3, %v4445_v56  ;;  %v3599_v19 = vpop.permute.xlu1 %3598 }
0x117a   : > { %5054 = vmatprep.mubr.msk.f32.mxu1 %vm1000_vm3, %v4446_v58 }
0x117c   : > { %v3614_v24 = vpop.permute.xlu0 %3613 }
0x117d   : > { %5055 = vmatmul.mubr.msk.f32.gmra.mrb[40].mxu1 %vm1000_vm3, %v4447_v59  ;;  %v3609_v26 = vpop.permute.xlu1 %3608 }
0x117e   : > { %5079 = vmatprep.mubr.msk.f32.mxu1 %vm5669_vm0, %v5668_v0  ;;  %v4423_v0 = vld [vmem:[%s6981_s10 + $0xf8] sm:$0xff] }
0x117f   : > { %5019 = vmatmul.mubr.msk.f32.gmra.mrb[34].mxu0 %vm1218_vm4, %v4423_v0 }
0x1180   : > { %5065 = vmatprep.mubr.msk.f32.mxu0 %vm1218_vm4, %v4468_v63  ;;  %v2935_v56 = vpop.permute.xlu0 %2934 }
0x1181   : > { %v2930_v58 = vpop.permute.xlu1 %2929 }
0x1184   : > { %v3389_v59 = vpop.permute.xlu0 %3388 }
0x1185   : > { %v3384_v60 = vpop.permute.xlu1 %3383 }
0x1188   : > { %v2945_v61 = vpop.permute.xlu0 %2944 }
0x1189   : > { %v2940_v62 = vpop.permute.xlu1 %2939 }
0x118c   : > { %v3399_v0 = vpop.permute.xlu0 %3398 }
0x118d   : > { %v3394_v63 = vpop.permute.xlu1 %3393 }
0x1244   : > { %v5047_v1 = vpop.f32.mrb[34].mxu1 }
0x1245   : > { %v3726_v41 = vpop.f32.mrb[35].mxu1  ;;  %v3732_v21 = vadd.f32 %v5047_v1, %v3604_v17  ;;  %v5294_v1 = vadd.f32 %v3389_v59, %v2935_v56 }
0x1246   : > { %v3727_v22 = vadd.f32 %v3726_v41, %v3599_v19  ;;  %v5296_v41 = vadd.f32 %v3384_v60, %v2930_v58 }
0x1248   : > { %v5050_v52 = vpop.f32.mrb[36].mxu1 }
0x1249   : > { %v3736_v3 = vpop.f32.mrb[37].mxu1  ;;  %v3742_v27 = vadd.f32 %v5050_v52, %v3614_v24  ;;  %v3916_v52 = vpop.permute.xlu0 %3915 }
0x124a   : > { %v3737_v28 = vadd.f32 %v3736_v3, %v3609_v26  ;;  %v3911_v3 = vpop.permute.xlu1 %3910  ;;  %v4480_v26 = vld [vmem:[%s7039_s29 + $0x8] sm:$0xff] }
0x124c   : > { %v5053_v57 = vpop.f32.mrb[38].mxu1 }
0x124d   : > { %v3752_v55 = vadd.f32 %v5053_v57, %v3624_v2  ;;  %v3746_v4 = vpop.f32.mrb[39].mxu1 }
0x124e   : > { %v3747_v5 = vadd.f32 %v3746_v4, %v3619_v36  ;;  %v5298_v4 = vadd.f32 %v3399_v0, %v2945_v61  ;;  %v3921_v17 = vpop.permute.xlu1 %3920 }
0x124f   : > { %v4465_v7 = vmul.f32 -1.442695, %v3752_v55 }
0x1250   : > { %v4464_v9 = vmul.f32 -1.442695, %v3747_v5  ;;  %v5056_v10 = vpop.f32.mrb[40].mxu1 }
0x1251   : > { %5503 = vpow2.f32 %v4465_v7  ;;  %v3762_v12 = vadd.f32 %v5056_v10, %v3634_v6  ;;  %v3756_v13 = vpop.f32.mrb[41].mxu1  ;;  %v5300_v6 = vadd.f32 %v3394_v63, %v2940_v62 }
0x1252   : > { %5505 = vpow2.f32 %v4464_v9  ;;  %v3757_v14 = vadd.f32 %v3756_v13, %v3629_v8  ;;  %v5536_v9 = vld [vmem:[%s5925_s14] ss:$0 sm:$0xff]  ;;  %s4485_s14 = sshll.u32 %s5791_s28, 4 }
0x1253   : > { %v4467_v15 = vmul.f32 -1.442695, %v3762_v12  ;;  %s6885_s19 = scalar_lea.hbm %s7047_s18, %s4485_s14  ;;  %s5678_s14 = smov [#allocation6]  }
0x1254   : > { %v4466_v16 = vmul.f32 -1.442695, %v3757_v14  ;;  %v3926_v14 = vpop.permute.xlu0 %3925  ;;  %s5571_s23 = sshll.u32 %s5678_s14, 4  ;;  %s5572_s23 = int_to_ptr.vmem [resolvable:$false] %s5571_s23 }
0x1255   : > { %5507 = vpow2.f32 %v4467_v15  ;;  %s5573_s0 = scalar_lea.vmem %s5572_s23, 32  ;;  %p5574_p10 = scmp.lt.s32.totalorder %s6887_s3, %s5572_s23 }
0x1256   : > { %5509 = vpow2.f32 %v4466_v16  ;;  %p5575_p2 = scmp.lt.s32.totalorder %s5573_s0, %s5567_s5 }
0x1257   : > { %5511 = vtanh.f32 %v3732_v21 }
0x1258   : > { %5513 = vtanh.f32 %v3727_v22  ;;  %p5576_p4 = por %p5575_p2, %p5574_p10 }
0x125a   : > { %p5577_p5 = pnand %p5576_p4, %p5570_p7 }
0x125b   : > { %v5504_v23 = vpop.eup %5503 }
0x125c   : > { %v5506_v25 = vpop.eup %5505  ;;  %v3782_v20 = vadd.f32 1.0, %v5504_v23 }
0x125d   : > { %v3781_v29 = vadd.f32 1.0, %v5506_v25 }
0x125e   : > { %5515 = vrcp.f32 %v3782_v20 }
0x125f   : > { %v5508_v34 = vpop.eup %5507  ;;  %5517 = vrcp.f32 %v3781_v29 }
0x1260   : > { %v5510_v35 = vpop.eup %5509  ;;  %5519 = vtanh.f32 %v3742_v27  ;;  %v3784_v37 = vadd.f32 1.0, %v5508_v34  ;;  %v2326_v27 = vmul.f32 %v5536_v9, %v6403_v11  ;;  %v3943_v34 = vpop.permute.xlu1 %3942 }
0x1261   : > { %5521 = vtanh.f32 %v3737_v28  ;;  %v3783_v40 = vadd.f32 1.0, %v5510_v35  ;;  %v5512_v30 = vpop.eup %5511 }
0x1262   : > { %5523 = vrcp.f32 %v3784_v37  ;;  %v5514_v39 = vpop.eup %5513  ;;  %v2328_v20 = vrot.slane %v2326_v27, 4 }
0x1263   : > { %5525 = vrcp.f32 %v3783_v40 }
0x1264   : > { %v2330_v28 = vsel %vm597_vm1, %v2328_v20, 0.0 }
0x1265   : > { %v2331_v29 = vrot.slane %v2330_v28, 4 }
0x1268   : > { %v5516_v42 = vpop.eup %5515 }
0x1269   : > { %v5518_v43 = vpop.eup %5517  ;;  %v3794_v44 = vmul.f32 %v5516_v42, %v5512_v30  ;;  %v2332_v30 = vadd.f32 %v2331_v29, %v2330_v28 }
0x126a   : > { %v5520_v33 = vpop.eup %5519  ;;  %v3793_v46 = vmul.f32 %v5518_v43, %v5514_v39 }
0x126b   : > { %v5522_v47 = vpop.eup %5521  ;;  %v2333_v43 = vrot.slane %v2332_v30, 2 }
0x126c   : > { %v5524_v32 = vpop.eup %5523  ;;  %v5272_v18 = vpack.c.bf16 %v3794_v44, %v3793_v46 }
0x126d   : > { %v5526_v50 = vpop.eup %5525  ;;  %v3796_v51 = vmul.f32 %v5524_v32, %v5520_v33  ;;  %v2334_v11 = vadd.f32 %v2333_v43, %v2332_v30 }
0x126e   : > { %5273 = vmatprep.subr.bf16.mxu0 %v5272_v18  ;;  %v3795_v53 = vmul.f32 %v5526_v50, %v5522_v47 }
0x126f   : > { %5275 = vmatpush3.bf16.msra.mxu0 %v5272_v18  ;;  %v2335_v32 = vrot.slane %v2334_v11, 1 }
0x1270   : > { %v5276_v54 = vpack.c.bf16 %v3796_v51, %v3795_v53 }
0x1272   : > { %5277 = vmatprep.subr.bf16.mxu0 %v5276_v54 }
0x1273   : > { %5279 = vmatpush3.bf16.msra.mxu0 %v5276_v54 }
0x1276   : > { %5066 = vmatmul.mubr.msk.f32.vlgmr.msra.gmra.mrb[32].mxu0 %vm1218_vm4, %v4469_v45  ;;  %v2336_v45 = vadd.f32 %v2335_v32, %v2334_v11 }
0x1277   : > { %5068 = vmatprep.mubr.msk.f32.mxu0 %vm1218_vm4, %v4470_v48 }
0x127a   : > { %5069 = vmatmul.mubr.msk.f32.gmra.mrb[34].mxu0 %vm1218_vm4, %v4471_v49 }
0x1349   : > { %v5067_v2 = vpop.f32.mrb[32].mxu0 }
0x134a   : > { %v5295_v36 = vadd.f32 %v5294_v1, %v5067_v2  ;;  %v3880_v57 = vpop.f32.mrb[33].mxu0 }
0x134b   : > { %v5297_v55 = vadd.f32 %v5296_v41, %v3880_v57 }
0x134c   : > { %v3929_v5 = vadd.f32 %v5295_v36, %v3916_v52 }
0x134d   : > { %v3928_v7 = vadd.f32 %v5297_v55, %v3911_v3  ;;  %v5070_v8 = vpop.f32.mrb[34].mxu0 }
0x134e   : > { %v3933_v10 = vmul.f32 %v5536_v9, %v3929_v5  ;;  %v5299_v12 = vadd.f32 %v5298_v4, %v5070_v8  ;;  %v3890_v13 = vpop.f32.mrb[35].mxu0 }
0x134f   : > { %v3932_v15 = vmul.f32 %v5536_v9, %v3928_v7  ;;  %v5301_v16 = vadd.f32 %v5300_v6, %v3890_v13 }
0x1350   : > { %v3931_v19 = vadd.f32 %v5299_v12, %v3926_v14 }
0x1351   : > { %v5281_v21 = vpack.c.bf16 %v3933_v10, %v3932_v15  ;;  %v3930_v22 = vadd.f32 %v5301_v16, %v3921_v17 }
0x1352   : > { %v3935_v23 = vmul.f32 %v5536_v9, %v3931_v19 }
0x1353   : > { %v3934_v24 = vmul.f32 %v5536_v9, %v3930_v22  ;;  %5282 = vmatpush3.bf16.msra.mxu1 %v5281_v21 }
0x1354   : > { %5283 = vmatprep.subr.bf16.mxu1 %v5677_v38 }
0x1355   : > { %v5284_v25 = vpack.c.bf16 %v3935_v23, %v3934_v24 }
0x1357   : > { %5285 = vmatpush3.bf16.msra.mxu1 %v5284_v25 }
0x135a   : > { %5080 = vmatmul.mubr.msk.f32.vlgmr.msra.gmra.mrb[42].mxu1 %vm1218_vm4, %v4480_v26 }
0x142d   : > { %v4014_v35 = vpop.f32.mrb[42].mxu1 }
0x142e   : > { %v4015_v37 = vadd.f32 %v4014_v35, %v3943_v34  ;;  %v5081_v40 = vpop.f32.mrb[43].mxu1 }
0x1430   : > { %v4018_v38 = vmul.f32 1.442695, %v4015_v37  ;;  %v4026_v39 = vmul.f32 %v5536_v9, %v4015_v37 }
0x1432   : > { %5527 = vpow2.f32 %v4018_v38  ;;  %v4028_v42 = vrot.slane %v4026_v39, 4 }
0x1434   : > { %v4030_v44 = vsel %vm597_vm1, %v4028_v42, 0.0 }
0x1435   : > { %v4031_v33 = vrot.slane %v4030_v44, 4 }
0x1437   : > { %v4032_v46 = vadd.f32 %v4031_v33, %v4030_v44 }
0x1439   : > { %v4033_v47 = vrot.slane %v4032_v46, 2 }
0x143b   : > { %v4034_v18 = vadd.f32 %v4033_v47, %v4032_v46 }
0x143c   : > { %v5528_v50 = vpop.eup %5527 }
0x143d   : > { %v4020_v51 = vmul.f32 %v5528_v50, %v6428_v31  ;;  %v4035_v53 = vrot.slane %v4034_v18, 1 }
0x143f   : > { %v4022_v54 = vrot.slane %v4020_v51, 4  ;;  %v4036_v48 = vadd.f32 %v4035_v53, %v4034_v18 }
0x1441   : > { %v4024_v49 = vadd.f32 %v4022_v54, %v4015_v37  ;;  %v4037_v56 = vadd.f32 %v4036_v48, %v2336_v45 }
0x1443   : > { %v4025_v58 = vmul.f32 %v5536_v9, %v4024_v49  ;;  %4043 = vst [vmem:[%s584_s20] sm:$0x1] %v4037_v56 }
0x1444   : > { %5580 = shalt.err (!%p5577_p5)
}
0x1445   : > { %s5581_s20 = scalar_lea.hbm %s6885_s19, 16  ;;  %s5585_s14 = scalar_lea.hbm %s7047_s18, 32 }
0x1446   : > { %p5582_p8 = scmp.ne.s32.totalorder %s6885_s19, %s5581_s20  ;;  %p5586_p1 = scmp.lt.u32.totalorder %s6885_s19, %s7047_s18 }
0x1447   : > { %p5587_p3 = scmp.lt.u32.totalorder %s5585_s14, %s5581_s20  ;;  %p5589_p11 = scmp.lt.u32.totalorder %s5581_s20, %s6885_s19 }
0x1448   : > { %p5583_p9 = pnand %p5582_p8, %p7049_p12 }
0x1449   : > { %p5588_p6 = por %p5587_p3, %p5586_p1 }
0x144a   : > { %p5584_p0 = pneg %p5583_p9 }
0x144b   : > { %p5590_p13 = por %p5589_p11, %p5588_p6 }
0x144d   : > { %p5591_p7 = pnand %p5590_p13, %p5584_p0 }
0x144f   : > { %5594 = shalt.err (!%p5591_p7)
}
0x1450   : > { %5321 = dma.vmem_to_hbm [thread:$0]  (%p7049_p12), %s6887_s3, 16, %s6885_s19, %s4050_s4   ;;  %v4039_v59 = vrot.slane %v4025_v58, 4 }
0x1451   : > { %s7050_s2 = sshll.u32 %s5791_s28, 7  ;;  %s7051_s0 = sld [smem:[#allocation22_spill]] }
0x1452   : > { %s7052_s20 = sshll.u32 %s6892_s17, 4  ;;  %v4041_v60 = vsel %vm597_vm1, %v6428_v31, %v4039_v59  ;;  %s4045_s14 = scalar_lea.sflag [#allocation4], %s5875_s24  ;;  %s6926_s20 = int_to_ptr.vmem [resolvable:$true] %s7052_s20 }
0x1453   : > { %4042 = vst [vmem:[%s6892_s17] sm:$0xff] %v4041_v60  ;;  %s5595_s23 = scalar_lea.vmem %s6926_s20, 128  ;;  %s5679_s4 = smov [#allocation5]  }
0x1454   : > { %p5596_p10 = scmp.ne.s32.totalorder %s6926_s20, %s5595_s23  ;;  %s5599_s28 = sshll.u32 %s5679_s4, 4  ;;  %s5600_s28 = int_to_ptr.vmem [resolvable:$false] %s5599_s28 }
0x1455   : > { %s5601_s3 = scalar_lea.vmem %s5600_s28, 256  ;;  %p5602_p5 = scmp.lt.s32.totalorder %s6926_s20, %s5600_s28 }
0x1456   : > { %p5597_p2 = pnand %p5596_p10, %p7049_p12  ;;  %p5603_p8 = scmp.lt.s32.totalorder %s5601_s3, %s5595_s23 }
0x1457   : > { %s6922_s21 = scalar_lea.hbm %s7051_s0, %s7050_s2 }
0x1458   : > { %p5598_p4 = pneg %p5597_p2  ;;  %p5604_p9 = por %p5603_p8, %p5602_p5 }
0x145a   : > { %p5605_p0 = pnand %p5604_p9, %p5598_p4 }
0x145c   : > { %5608 = shalt.err (!%p5605_p0)
}
0x145d   : > { %s5609_s24 = scalar_lea.hbm %s6922_s21, 128  ;;  %s5613_s2 = scalar_lea.hbm %s7051_s0, 256 }
0x145e   : > { %p5610_p1 = scmp.ne.s32.totalorder %s6922_s21, %s5609_s24  ;;  %p5614_p11 = scmp.lt.u32.totalorder %s6922_s21, %s7051_s0 }
0x145f   : > { %p5615_p13 = scmp.lt.u32.totalorder %s5613_s2, %s5609_s24  ;;  %p5617_p10 = scmp.lt.u32.totalorder %s5609_s24, %s6922_s21 }
0x1460   : > { %p5611_p3 = pnand %p5610_p1, %p7049_p12 }
0x1461   : > { %p5616_p7 = por %p5615_p13, %p5614_p11 }
0x1462   : > { %p5612_p6 = pneg %p5611_p3 }
0x1463   : > { %p5618_p2 = por %p5617_p10, %p5616_p7 }
0x1465   : > { %p5619_p4 = pnand %p5618_p2, %p5612_p6 }
0x1467   : > { %5622 = shalt.err (!%p5619_p4)
}
0x1468   : > { %5320 = dma.vmem_to_hbm [thread:$0]  (%p7049_p12), %s6926_s20, 128, %s6922_s21, %s4045_s14  }
0x1469 PF: > { %s7053_s23 = sld [smem:[#allocation11_spill]]  ;;  %p7054_p5 = scmp.ne.s32.totalorder %s7028_s22, 0 }
0x146a   : > { %p7055_p8 = scmp.ge.s32.totalorder %s5665_s27, 2 }
0x146c   : > { %p5329_p9 = pnand %p7055_p8, %p7054_p5 }
0x146f   : > { %s4087_s4 = sand.u32 1, %s7053_s23  }
0x1470   : > { %s4088_s28 = scalar_lea.sflag [#allocation4], %s4087_s4 }
0x1471   : > { %5644 = dma.done.wait (!%p5329_p9), %s4088_s28, 128  }
0x1472   : > { %5646 = vsyncadd (!%p5329_p9), %s4088_s28, 4294967168  ;;  %s4097_s3 = scalar_lea.sflag [#allocation7], %s4087_s4 }
0x1473   : > { %5648 = dma.done.wait (!%p5329_p9), %s4097_s3, 16  }
0x1474   : > { %5650 = vsyncadd (!%p5329_p9), %s4097_s3, 4294967280  ;;  %s7056_s27 = sld [smem:[#allocation12_spill]]  ;;  %s7057_s1 = sld [smem:[#allocation13_spill]] }
0x1475   : > { %s7058_s24 = smov %s5657_s25  ;;  %s7059_s25 = smov %s5661_s26 }
0x147a   : > { %p34_p12 = scmp.ge.s32.totalorder %s7056_s27, 4   ;;  %s7060_s26 = smov %s7057_s1 }
0x147c   :  { %36 = sbr.rel (!%p34_p12) target bundleno = 17 (0x11), region = 179 }
0x1483   :  { %4101 = vsyncpa [#allocation3], 1 }
0x1484   :  { %4103 = vsyncpa [#allocation3 + $0x1], 1 }
0x1485   :  { %4104 = vsyncpa [#allocation4], 1 }
0x1486   :  { %4106 = vsyncpa [#allocation4 + $0x1], 1 }
0x1487   :  { %4107 = vsyncpa [#allocation7], 1 }
0x1488   :  { %4109 = vsyncpa [#allocation7 + $0x1], 1 }

</bundles_post_ra>
